<compile_context>
chip_gen: v5e
topology: v5e:2x2
jax: 0.10.0
libtpu: 0.0.40
codegen_flags: <defaults>
</compile_context>

<pallas_src>
import functools

import jax
import jax.numpy as jnp
from jax import lax
from jax.experimental import pallas as pl
from jax.experimental.pallas import tpu as pltpu

F32 = jnp.float32
BF16 = jnp.bfloat16


# ----------------------------- small helpers -----------------------------

def _round_up(x, m):
    return ((x + m - 1) // m) * m


def _tile(dim, target, align):
    """Return (padded_dim, tile) with tile | padded_dim and tile % align == 0."""
    padded = _round_up(dim, align)
    if padded <= target:
        return padded, padded
    return _round_up(dim, target), target


def _pad2(a, rows, cols):
    r, c = a.shape
    if r == rows and c == cols:
        return a
    return jnp.pad(a, ((0, rows - r), (0, cols - c)))


def _layer_norm(z, g, b, eps=1e-5):
    mu = jnp.mean(z, axis=-1, keepdims=True)
    var = jnp.mean((z - mu) ** 2, axis=-1, keepdims=True)
    return (z - mu) * lax.rsqrt(var + eps) * g + b


# ----------------------------- tiled linear (output vocab projection) -----------------------------

def _linear_kernel(x_ref, w_ref, b_ref, o_ref, acc_ref):
    @pl.when(pl.program_id(2) == 0)
    def _():
        acc_ref[...] = jnp.zeros_like(acc_ref)

    acc_ref[...] += jnp.dot(x_ref[...], w_ref[...], preferred_element_type=jnp.float32)

    @pl.when(pl.program_id(2) == pl.num_programs(2) - 1)
    def _():
        o_ref[...] = (acc_ref[...] + b_ref[...]).astype(o_ref.dtype)


def linear(x2d, w, b):
    """x2d: [M, K], w: [K, N] (bf16), b: [1, N] f32 -> [M, N] f32 (tiled matmul)."""
    M, K = x2d.shape
    N = w.shape[1]
    Mp, tm = _tile(M, 256, 8)
    Kp, tk = _tile(K, 512, 128)
    Np, tn = _tile(N, 256, 128)
    xp = _pad2(x2d, Mp, Kp).astype(BF16)
    wp = _pad2(w, Kp, Np).astype(BF16)
    bp = _pad2(b, 1, Np)
    out = pl.pallas_call(
        _linear_kernel,
        grid=(Mp // tm, Np // tn, Kp // tk),
        out_shape=jax.ShapeDtypeStruct((Mp, Np), F32),
        in_specs=[pl.BlockSpec((tm, tk), lambda i, j, k: (i, k)),
                  pl.BlockSpec((tk, tn), lambda i, j, k: (k, j)),
                  pl.BlockSpec((1, tn), lambda i, j, k: (0, j))],
        out_specs=pl.BlockSpec((tm, tn), lambda i, j, k: (i, j)),
        scratch_shapes=[pltpu.VMEM((tm, tn), F32)],
        compiler_params=pltpu.CompilerParams(
            dimension_semantics=("parallel", "parallel", "arbitrary")),
    )(xp, wp, bp)
    return out[:M, :N]


# ----------------------------- fused encoder layer (FNet + LN + CNN + LN) -----------------------------

def _encoder_layer_kernel(x_ref, f1_ref, cd_ref, sd_ref, shift_ref,
                          w1_ref, b1_ref, w2_ref, b2_ref,
                          g1_ref, gb1_ref, g2_ref, gb2_ref, o_ref, *, S, K):
    x = x_ref[0]                                                     # (S, D) f32

    # ---- FNet mixing: Re(F_seq X F_dim) = Cs X Cd - Ss X Sd ----
    y = jnp.dot(f1_ref[...], x.astype(BF16), preferred_element_type=jnp.float32)
    yb = y.astype(BF16)
    mixed = (jnp.dot(yb[:S, :], cd_ref[...], preferred_element_type=jnp.float32)
             - jnp.dot(yb[S:, :], sd_ref[...], preferred_element_type=jnp.float32))
    x1 = _layer_norm(x + mixed, g1_ref[...], gb1_ref[...])

    # ---- conv1 ('same' padding via stacked 0/1 shift matrices) + ReLU ----
    E = w1_ref.shape[2]
    xs = jnp.dot(shift_ref[...], x1.astype(BF16),
                 preferred_element_type=jnp.float32).astype(BF16)    # (K*S, D)
    h = jnp.zeros((S, E), jnp.float32)
    for k in range(K):                                               # small static loop
        h = h + jnp.dot(xs[k * S:(k + 1) * S, :], w1_ref[k],
                        preferred_element_type=jnp.float32)
    h = jnp.maximum(h + b1_ref[...], 0.0)

    # ---- conv2 + residual + LN ----
    D = w2_ref.shape[2]
    hs = jnp.dot(shift_ref[...], h.astype(BF16),
                 preferred_element_type=jnp.float32).astype(BF16)    # (K*S, E)
    y2 = jnp.zeros((S, D), jnp.float32)
    for k in range(K):
        y2 = y2 + jnp.dot(hs[k * S:(k + 1) * S, :], w2_ref[k],
                          preferred_element_type=jnp.float32)
    o_ref[0] = _layer_norm(x1 + y2 + b2_ref[...],
                           g2_ref[...], gb2_ref[...]).astype(o_ref.dtype)


def encoder_layer(x, p, f1, cd, sd, shift):
    B, S, D = x.shape
    K, _, E = p["conv1_w"].shape
    return pl.pallas_call(
        functools.partial(_encoder_layer_kernel, S=S, K=K),
        grid=(B,),
        out_shape=jax.ShapeDtypeStruct((B, S, D), F32),
        in_specs=[pl.BlockSpec((1, S, D), lambda i: (i, 0, 0)),
                  pl.BlockSpec((2 * S, S), lambda i: (0, 0)),
                  pl.BlockSpec((D, D), lambda i: (0, 0)),
                  pl.BlockSpec((D, D), lambda i: (0, 0)),
                  pl.BlockSpec((K * S, S), lambda i: (0, 0)),
                  pl.BlockSpec((K, D, E), lambda i: (0, 0, 0)),
                  pl.BlockSpec((1, E), lambda i: (0, 0)),
                  pl.BlockSpec((K, E, D), lambda i: (0, 0, 0)),
                  pl.BlockSpec((1, D), lambda i: (0, 0)),
                  pl.BlockSpec((1, D), lambda i: (0, 0)),
                  pl.BlockSpec((1, D), lambda i: (0, 0)),
                  pl.BlockSpec((1, D), lambda i: (0, 0)),
                  pl.BlockSpec((1, D), lambda i: (0, 0))],
        out_specs=pl.BlockSpec((1, S, D), lambda i: (i, 0, 0)),
        compiler_params=pltpu.CompilerParams(dimension_semantics=("parallel",)),
    )(x, f1, cd, sd, shift,
      p["conv1_w"].astype(BF16), p["conv1_b"],
      p["conv2_w"].astype(BF16), p["conv2_b"],
      p["ln1_g"], p["ln1_b"], p["ln2_g"], p["ln2_b"])


# ----------------------------- fused decoder layer (MHA + cross-attn + FFN) -----------------------------

def _mha_block(q, k, v, wo, mask, num_heads, scale):
    """Multi-head attention + output projection, accumulated head by head."""
    Sq, D = q.shape
    Dh = D // num_heads
    out = jnp.zeros((Sq, D), jnp.float32)
    for h in range(num_heads):                                       # static loop
        qh = q[:, h * Dh:(h + 1) * Dh].astype(BF16)
        kh = k[:, h * Dh:(h + 1) * Dh].astype(BF16)
        vh = v[:, h * Dh:(h + 1) * Dh].astype(BF16)
        s = lax.dot_general(qh, kh, (((1,), (1,)), ((), ())),
                            preferred_element_type=jnp.float32) * scale
        if mask is not None:
            s = s + mask
        m = jnp.max(s, axis=-1, keepdims=True)
        p = jnp.exp(s - m)
        p = p * pl.reciprocal(jnp.sum(p, axis=-1, keepdims=True), approx=True)
        oh = jnp.dot(p.astype(BF16), vh, preferred_element_type=jnp.float32)
        # concat_h(o_h) @ Wo == sum_h o_h @ Wo[h*Dh:(h+1)*Dh]  (avoids lane concat)
        out = out + jnp.dot(oh.astype(BF16), wo[h * Dh:(h + 1) * Dh, :],
                            preferred_element_type=jnp.float32)
    return out


def _decoder_layer_kernel(y_ref, enc_ref, mask_ref,
                          wqkv_ref, bqkv_ref, wo1_ref, bo1_ref, g1_ref, b1_ref,
                          wq_ref, bq_ref, wkv_ref, bkv_ref, wo2_ref, bo2_ref,
                          g2_ref, b2_ref,
                          wf1_ref, bf1_ref, wf2_ref, bf2_ref, g3_ref, b3_ref,
                          o_ref, *, num_heads, scale):
    D = y_ref.shape[2]
    y = y_ref[0]                                                     # (Ssum, D) f32
    enc = enc_ref[0]                                                 # (Sdoc, D) f32
    mask = mask_ref[...]

    # causal multi-head self-attention + out-proj + residual + LN1
    qkv = jnp.dot(y.astype(BF16), wqkv_ref[...],
                  preferred_element_type=jnp.float32) + bqkv_ref[...]
    sa = _mha_block(qkv[:, :D], qkv[:, D:2 * D], qkv[:, 2 * D:],
                    wo1_ref[...], mask, num_heads, scale)
    y1 = _layer_norm(y + sa + bo1_ref[...], g1_ref[...], b1_ref[...])

    # cross-attention with encoder output + out-proj + residual + LN2
    qc = jnp.dot(y1.astype(BF16), wq_ref[...],
                 preferred_element_type=jnp.float32) + bq_ref[...]
    kv = jnp.dot(enc.astype(BF16), wkv_ref[...],
                 preferred_element_type=jnp.float32) + bkv_ref[...]
    ca = _mha_block(qc, kv[:, :D], kv[:, D:], wo2_ref[...], None, num_heads, scale)
    y2 = _layer_norm(y1 + ca + bo2_ref[...], g2_ref[...], b2_ref[...])

    # FFN + residual + LN3
    hdd = jnp.maximum(jnp.dot(y2.astype(BF16), wf1_ref[...],
                              preferred_element_type=jnp.float32) + bf1_ref[...], 0.0)
    ff = jnp.dot(hdd.astype(BF16), wf2_ref[...],
                 preferred_element_type=jnp.float32) + bf2_ref[...]
    o_ref[0] = _layer_norm(y2 + ff, g3_ref[...], b3_ref[...]).astype(o_ref.dtype)


def decoder_layer(y, enc_out, p, causal_mask, num_heads):
    B, S, D = y.shape
    Sk = enc_out.shape[1]
    E = p["ff1_w"].shape[1]
    scale = 1.0 / float(D // num_heads) ** 0.5
    sa, ca = p["self_attn"], p["cross_attn"]

    def full2d(r, c):
        return pl.BlockSpec((r, c), lambda i: (0, 0))

    return pl.pallas_call(
        functools.partial(_decoder_layer_kernel, num_heads=num_heads, scale=scale),
        grid=(B,),
        out_shape=jax.ShapeDtypeStruct((B, S, D), F32),
        in_specs=[pl.BlockSpec((1, S, D), lambda i: (i, 0, 0)),
                  pl.BlockSpec((1, Sk, D), lambda i: (i, 0, 0)),
                  full2d(S, S),
                  full2d(D, 3 * D), full2d(1, 3 * D), full2d(D, D), full2d(1, D),
                  full2d(1, D), full2d(1, D),
                  full2d(D, D), full2d(1, D), full2d(D, 2 * D), full2d(1, 2 * D),
                  full2d(D, D), full2d(1, D), full2d(1, D), full2d(1, D),
                  full2d(D, E), full2d(1, E), full2d(E, D), full2d(1, D),
                  full2d(1, D), full2d(1, D)],
        out_specs=pl.BlockSpec((1, S, D), lambda i: (i, 0, 0)),
        compiler_params=pltpu.CompilerParams(dimension_semantics=("parallel",)),
    )(y, enc_out, causal_mask,
      sa["w_qkv"].astype(BF16), sa["b_qkv"], sa["wo"].astype(BF16), sa["bo"],
      p["ln1_g"], p["ln1_b"],
      ca["wq"].astype(BF16), ca["bq"], ca["w_kv"].astype(BF16), ca["b_kv"],
      ca["wo"].astype(BF16), ca["bo"], p["ln2_g"], p["ln2_b"],
      p["ff1_w"].astype(BF16), p["ff1_b"], p["ff2_w"].astype(BF16), p["ff2_b"],
      p["ln3_g"], p["ln3_b"])


# ----------------------------- model glue (plain JAX) -----------------------------

def dft_matrices(n):
    idx = jnp.arange(n, dtype=F32)
    ang = 2.0 * jnp.pi * jnp.outer(idx, idx) / n
    return jnp.cos(ang), jnp.sin(ang)


def conv_shift_matrix(S, K):
    """A[k*S + t, s] = 1 iff s == t + k - (K-1)//2  ->  (A_k @ x)[t] = x_pad[t+k]."""
    pad_l = (K - 1) // 2
    t = jnp.arange(S)
    cols = jnp.arange(S)
    mats = []
    for k in range(K):
        src = t + k - pad_l
        mats.append((src[:, None] == cols[None, :]).astype(F32))
    return jnp.concatenate(mats, axis=0)                             # (K*S, S)


def embed(tokens, token_types, word_emb, type_emb, pos_emb, scale):
    S = tokens.shape[1]
    return word_emb[tokens] * scale + type_emb[token_types] + pos_emb[None, :S, :]


def ufnet_cnn_forward(params, doc_tokens, doc_token_types, sum_tokens,
                      sum_token_types, *, num_heads):
    # dropout(p=0.5) is identity in eval mode -> not applied.
    D = params["enc_word_emb"].shape[1]
    scale = jnp.sqrt(jnp.asarray(D, F32))

    # ----- encoder (returns output list, U-Net style) -----
    x = embed(doc_tokens, doc_token_types, params["enc_word_emb"],
              params["enc_type_emb"], params["enc_pos_emb"], scale)
    S_doc = doc_tokens.shape[1]
    cs, ss = dft_matrices(S_doc)
    cd, sd = dft_matrices(D)
    f1 = jnp.concatenate([cs, ss], axis=0).astype(BF16)              # [Cs ; Ss]
    cd = cd.astype(BF16)
    sd = sd.astype(BF16)
    K = params["encoder_layers"][0]["conv1_w"].shape[0]
    shift = conv_shift_matrix(S_doc, K).astype(BF16)

    enc_outputs = []
    for lp in params["encoder_layers"]:
        x = encoder_layer(x, lp, f1, cd, sd, shift)
        enc_outputs.append(x)

    # ----- decoder with causal mask -----
    S_sum = sum_tokens.shape[1]
    y = embed(sum_tokens, sum_token_types, params["dec_word_emb"],
              params["dec_type_emb"], params["dec_pos_emb"], scale)
    causal = jnp.where(jnp.triu(jnp.ones((S_sum, S_sum), bool), k=1),
                       jnp.asarray(-1e9, F32), jnp.asarray(0.0, F32))
    n_layers = len(params["decoder_layers"])
    for i, lp in enumerate(params["decoder_layers"]):
        enc_out = enc_outputs[n_layers - 1 - i]                      # U-Net skip pairing
        y = decoder_layer(y, enc_out, lp, causal, num_heads)

    # ----- output projection (tiled, lane-padded vocab) -----
    B, S, _ = y.shape
    V = params["out_b"].shape[1]
    logits = linear(y.reshape(B * S, D), params["out_w"], params["out_b"])
    return logits.reshape(B, S, V)


# ----------------------------- deterministic parameter init -----------------------------

def init_params(key, cfg):
    D, E, L = cfg["model_dim"], cfg["extend_dim"], cfg["num_layers"]
    K = cfg["fnet_cnn_kernel_size"]
    keys = iter(jax.random.split(key, 512))

    def w(*shape, scale=0.02, dtype=BF16):
        return (scale * jax.random.normal(next(keys), shape, dtype=F32)).astype(dtype)

    def zeros(*shape):
        return jnp.zeros(shape, F32)

    def ones(*shape):
        return jnp.ones(shape, F32)

    def self_attn_params():
        return {"w_qkv": w(D, 3 * D), "b_qkv": zeros(1, 3 * D),
                "wo": w(D, D), "bo": zeros(1, D)}

    def cross_attn_params():
        return {"wq": w(D, D), "bq": zeros(1, D),
                "w_kv": w(D, 2 * D), "b_kv": zeros(1, 2 * D),
                "wo": w(D, D), "bo": zeros(1, D)}

    enc_layers = []
    for _ in range(L):
        enc_layers.append({
            "conv1_w": w(K, D, E), "conv1_b": zeros(1, E),
            "conv2_w": w(K, E, D), "conv2_b": zeros(1, D),
            "ln1_g": ones(1, D), "ln1_b": zeros(1, D),
            "ln2_g": ones(1, D), "ln2_b": zeros(1, D),
        })

    dec_layers = []
    for _ in range(L):
        dec_layers.append({
            "self_attn": self_attn_params(),
            "cross_attn": cross_attn_params(),
            "ff1_w": w(D, E), "ff1_b": zeros(1, E),
            "ff2_w": w(E, D), "ff2_b": zeros(1, D),
            "ln1_g": ones(1, D), "ln1_b": zeros(1, D),
            "ln2_g": ones(1, D), "ln2_b": zeros(1, D),
            "ln3_g": ones(1, D), "ln3_b": zeros(1, D),
        })

    return {
        "enc_word_emb": w(cfg["document_vocab_size"], D, scale=0.1, dtype=F32),
        "enc_type_emb": w(cfg["max_document_sentences"], D, scale=0.1, dtype=F32),
        "enc_pos_emb": w(cfg["doc_sequence_len"], D, scale=0.1, dtype=F32),
        "dec_word_emb": w(cfg["summary_vocab_size"], D, scale=0.1, dtype=F32),
        "dec_type_emb": w(cfg["max_summary_sentences"], D, scale=0.1, dtype=F32),
        "dec_pos_emb": w(cfg["summary_sequence_len"], D, scale=0.1, dtype=F32),
        "encoder_layers": enc_layers,
        "decoder_layers": dec_layers,
        "out_w": w(D, cfg["summary_vocab_size"]),
        "out_b": zeros(1, cfg["summary_vocab_size"]),
    }


# ----------------------------- main -----------------------------

if __name__ == "__main__":
    cfg = dict(model_dim=32, extend_dim=64, num_layers=2,
               document_vocab_size=50, max_document_sentences=4,
               doc_sequence_len=16, num_heads=4,
               summary_vocab_size=40, max_summary_sentences=4,
               summary_sequence_len=8, fnet_cnn_kernel_size=3)

    key = jax.random.PRNGKey(0)
    kp, k1, k2, k3, k4 = jax.random.split(key, 5)
    params = init_params(kp, cfg)

    B = 2
    doc_tokens = jax.random.randint(k1, (B, cfg["doc_sequence_len"]), 0,
                                    cfg["document_vocab_size"], dtype=jnp.int32)
    doc_types = jax.random.randint(k2, (B, cfg["doc_sequence_len"]), 0,
                                   cfg["max_document_sentences"], dtype=jnp.int32)
    sum_tokens = jax.random.randint(k3, (B, cfg["summary_sequence_len"]), 0,
                                    cfg["summary_vocab_size"], dtype=jnp.int32)
    sum_types = jax.random.randint(k4, (B, cfg["summary_sequence_len"]), 0,
                                   cfg["max_summary_sentences"], dtype=jnp.int32)

    fwd = jax.jit(functools.partial(ufnet_cnn_forward, num_heads=cfg["num_heads"]))
    out = fwd(params, doc_tokens, doc_types, sum_tokens, sum_types)
    out = jax.block_until_ready(out)

    assert out.shape == (B, cfg["summary_sequence_len"], cfg["summary_vocab_size"]), out.shape
    assert bool(jnp.all(jnp.isfinite(out)))
    print("KERNEL_OK")
</pallas_src>

<mosaic_0001>
module attributes {stable_mosaic.version = 11 : i64} {
  func.func @_encoder_layer_kernel(%arg0: i32, %arg1: memref<1x16x32xf32, #tpu.memory_space<vmem>>, %arg2: memref<32x16xbf16, #tpu.memory_space<vmem>>, %arg3: memref<32x32xbf16, #tpu.memory_space<vmem>>, %arg4: memref<32x32xbf16, #tpu.memory_space<vmem>>, %arg5: memref<48x16xbf16, #tpu.memory_space<vmem>>, %arg6: memref<3x32x64xbf16, #tpu.memory_space<vmem>>, %arg7: memref<1x64xf32, #tpu.memory_space<vmem>>, %arg8: memref<3x64x32xbf16, #tpu.memory_space<vmem>>, %arg9: memref<1x32xf32, #tpu.memory_space<vmem>>, %arg10: memref<1x32xf32, #tpu.memory_space<vmem>>, %arg11: memref<1x32xf32, #tpu.memory_space<vmem>>, %arg12: memref<1x32xf32, #tpu.memory_space<vmem>>, %arg13: memref<1x32xf32, #tpu.memory_space<vmem>>, %arg14: memref<1x16x32xf32, #tpu.memory_space<vmem>>) attributes {dimension_semantics = [#tpu.dimension_semantics<parallel>], iteration_bounds = array<i64: 2>, scalar_prefetch = 0 : i64, scratch_operands = 0 : i64, tpu.core_type = #tpu.core_type<tc>, window_params = [{transform_indices = @transform_0, window_bounds = array<i64: 1, 16, 32>}, {pipeline_mode = #tpu.pipeline_mode<synchronous>, transform_indices = @transform_1, window_bounds = array<i64: 32, 16>}, {pipeline_mode = #tpu.pipeline_mode<synchronous>, transform_indices = @transform_2, window_bounds = array<i64: 32, 32>}, {pipeline_mode = #tpu.pipeline_mode<synchronous>, transform_indices = @transform_3, window_bounds = array<i64: 32, 32>}, {pipeline_mode = #tpu.pipeline_mode<synchronous>, transform_indices = @transform_4, window_bounds = array<i64: 48, 16>}, {pipeline_mode = #tpu.pipeline_mode<synchronous>, transform_indices = @transform_5, window_bounds = array<i64: 3, 32, 64>}, {pipeline_mode = #tpu.pipeline_mode<synchronous>, transform_indices = @transform_6, window_bounds = array<i64: 1, 64>}, {pipeline_mode = #tpu.pipeline_mode<synchronous>, transform_indices = @transform_7, window_bounds = array<i64: 3, 64, 32>}, {pipeline_mode = #tpu.pipeline_mode<synchronous>, transform_indices = @transform_8, window_bounds = array<i64: 1, 32>}, {pipeline_mode = #tpu.pipeline_mode<synchronous>, transform_indices = @transform_9, window_bounds = array<i64: 1, 32>}, {pipeline_mode = #tpu.pipeline_mode<synchronous>, transform_indices = @transform_10, window_bounds = array<i64: 1, 32>}, {pipeline_mode = #tpu.pipeline_mode<synchronous>, transform_indices = @transform_11, window_bounds = array<i64: 1, 32>}, {pipeline_mode = #tpu.pipeline_mode<synchronous>, transform_indices = @transform_12, window_bounds = array<i64: 1, 32>}, {transform_indices = @transform_13, window_bounds = array<i64: 1, 16, 32>}]} {
    %c0 = arith.constant 0 : index
    %c0_0 = arith.constant 0 : index
    %c0_1 = arith.constant 0 : index
    %0 = vector.load %arg1[%c0, %c0_0, %c0_1] : memref<1x16x32xf32, #tpu.memory_space<vmem>>, vector<1x16x32xf32>
    %1 = vector.shape_cast %0 : vector<1x16x32xf32> to vector<16x32xf32>
    %c0_2 = arith.constant 0 : index
    %c0_3 = arith.constant 0 : index
    %2 = vector.load %arg2[%c0_2, %c0_3] : memref<32x16xbf16, #tpu.memory_space<vmem>>, vector<32x16xbf16>
    %3 = arith.truncf %1 : vector<16x32xf32> to vector<16x32xbf16>
    %cst = arith.constant dense<0.000000e+00> : vector<32x32xf32>
    %4 = tpu.matmul %2, %3, %cst {dimension_numbers = #tpu.dot_dimension_numbers<[1], [0], [0], [1], [0, 0, 1, 1], [], []>} : vector<32x16xbf16>, vector<16x32xbf16>, vector<32x32xf32> -> vector<32x32xf32>
    %5 = arith.truncf %4 : vector<32x32xf32> to vector<32x32xbf16>
    %6 = vector.extract_strided_slice %5 {offsets = [0, 0], sizes = [16, 32], strides = [1, 1]} : vector<32x32xbf16> to vector<16x32xbf16>
    %c0_4 = arith.constant 0 : index
    %c0_5 = arith.constant 0 : index
    %7 = vector.load %arg3[%c0_4, %c0_5] : memref<32x32xbf16, #tpu.memory_space<vmem>>, vector<32x32xbf16>
    %cst_6 = arith.constant dense<0.000000e+00> : vector<16x32xf32>
    %8 = tpu.matmul %6, %7, %cst_6 {dimension_numbers = #tpu.dot_dimension_numbers<[1], [0], [0], [1], [0, 0, 1, 1], [], []>} : vector<16x32xbf16>, vector<32x32xbf16>, vector<16x32xf32> -> vector<16x32xf32>
    %9 = vector.extract_strided_slice %5 {offsets = [16, 0], sizes = [16, 32], strides = [1, 1]} : vector<32x32xbf16> to vector<16x32xbf16>
    %c0_7 = arith.constant 0 : index
    %c0_8 = arith.constant 0 : index
    %10 = vector.load %arg4[%c0_7, %c0_8] : memref<32x32xbf16, #tpu.memory_space<vmem>>, vector<32x32xbf16>
    %cst_9 = arith.constant dense<0.000000e+00> : vector<16x32xf32>
    %11 = tpu.matmul %9, %10, %cst_9 {dimension_numbers = #tpu.dot_dimension_numbers<[1], [0], [0], [1], [0, 0, 1, 1], [], []>} : vector<16x32xbf16>, vector<32x32xbf16>, vector<16x32xf32> -> vector<16x32xf32>
    %12 = arith.subf %8, %11 : vector<16x32xf32>
    %13 = arith.addf %1, %12 : vector<16x32xf32>
    %c0_10 = arith.constant 0 : index
    %c0_11 = arith.constant 0 : index
    %14 = vector.load %arg10[%c0_10, %c0_11] : memref<1x32xf32, #tpu.memory_space<vmem>>, vector<1x32xf32>
    %c0_12 = arith.constant 0 : index
    %c0_13 = arith.constant 0 : index
    %15 = vector.load %arg11[%c0_12, %c0_13] : memref<1x32xf32, #tpu.memory_space<vmem>>, vector<1x32xf32>
    %cst_14 = arith.constant dense<0.000000e+00> : vector<16xf32>
    %16 = vector.multi_reduction <add>, %13, %cst_14 [1] : vector<16x32xf32> to vector<16xf32>
    %17 = vector.shape_cast %16 : vector<16xf32> to vector<16x1xf32>
    %cst_15 = arith.constant 3.200000e+01 : f32
    %18 = vector.broadcast %cst_15 : f32 to vector<16x1xf32>
    %19 = arith.divf %17, %18 : vector<16x1xf32>
    %20 = vector.broadcast %19 : vector<16x1xf32> to vector<16x32xf32>
    %21 = arith.subf %13, %20 : vector<16x32xf32>
    %22 = arith.mulf %21, %21 : vector<16x32xf32>
    %cst_16 = arith.constant dense<0.000000e+00> : vector<16xf32>
    %23 = vector.multi_reduction <add>, %22, %cst_16 [1] : vector<16x32xf32> to vector<16xf32>
    %24 = vector.shape_cast %23 : vector<16xf32> to vector<16x1xf32>
    %cst_17 = arith.constant 3.200000e+01 : f32
    %25 = vector.broadcast %cst_17 : f32 to vector<16x1xf32>
    %26 = arith.divf %24, %25 : vector<16x1xf32>
    %27 = vector.broadcast %19 : vector<16x1xf32> to vector<16x32xf32>
    %28 = arith.subf %13, %27 : vector<16x32xf32>
    %cst_18 = arith.constant 9.99999974E-6 : f32
    %29 = vector.broadcast %cst_18 : f32 to vector<16x1xf32>
    %30 = arith.addf %26, %29 : vector<16x1xf32>
    %31 = math.rsqrt %30 : vector<16x1xf32>
    %32 = vector.broadcast %31 : vector<16x1xf32> to vector<16x32xf32>
    %33 = arith.mulf %28, %32 : vector<16x32xf32>
    %34 = vector.broadcast %14 : vector<1x32xf32> to vector<16x32xf32>
    %35 = arith.mulf %33, %34 : vector<16x32xf32>
    %36 = vector.broadcast %15 : vector<1x32xf32> to vector<16x32xf32>
    %37 = arith.addf %35, %36 : vector<16x32xf32>
    %c0_19 = arith.constant 0 : index
    %c0_20 = arith.constant 0 : index
    %38 = vector.load %arg5[%c0_19, %c0_20] : memref<48x16xbf16, #tpu.memory_space<vmem>>, vector<48x16xbf16>
    %39 = arith.truncf %37 : vector<16x32xf32> to vector<16x32xbf16>
    %cst_21 = arith.constant dense<0.000000e+00> : vector<48x32xf32>
    %40 = tpu.matmul %38, %39, %cst_21 {dimension_numbers = #tpu.dot_dimension_numbers<[1], [0], [0], [1], [0, 0, 1, 1], [], []>} : vector<48x16xbf16>, vector<16x32xbf16>, vector<48x32xf32> -> vector<48x32xf32>
    %41 = arith.truncf %40 : vector<48x32xf32> to vector<48x32xbf16>
    %cst_22 = arith.constant 0.000000e+00 : f32
    %42 = vector.broadcast %cst_22 : f32 to vector<16x64xf32>
    %43 = vector.extract_strided_slice %41 {offsets = [0, 0], sizes = [16, 32], strides = [1, 1]} : vector<48x32xbf16> to vector<16x32xbf16>
    %c0_23 = arith.constant 0 : index
    %c0_24 = arith.constant 0 : index
    %c0_25 = arith.constant 0 : index
    %44 = vector.load %arg6[%c0_23, %c0_24, %c0_25] : memref<3x32x64xbf16, #tpu.memory_space<vmem>>, vector<1x32x64xbf16>
    %45 = vector.shape_cast %44 : vector<1x32x64xbf16> to vector<32x64xbf16>
    %cst_26 = arith.constant dense<0.000000e+00> : vector<16x64xf32>
    %46 = tpu.matmul %43, %45, %cst_26 {dimension_numbers = #tpu.dot_dimension_numbers<[1], [0], [0], [1], [0, 0, 1, 1], [], []>} : vector<16x32xbf16>, vector<32x64xbf16>, vector<16x64xf32> -> vector<16x64xf32>
    %47 = arith.addf %42, %46 : vector<16x64xf32>
    %48 = vector.extract_strided_slice %41 {offsets = [16, 0], sizes = [16, 32], strides = [1, 1]} : vector<48x32xbf16> to vector<16x32xbf16>
    %c1 = arith.constant 1 : index
    %c0_27 = arith.constant 0 : index
    %c0_28 = arith.constant 0 : index
    %49 = vector.load %arg6[%c1, %c0_27, %c0_28] : memref<3x32x64xbf16, #tpu.memory_space<vmem>>, vector<1x32x64xbf16>
    %50 = vector.shape_cast %49 : vector<1x32x64xbf16> to vector<32x64xbf16>
    %cst_29 = arith.constant dense<0.000000e+00> : vector<16x64xf32>
    %51 = tpu.matmul %48, %50, %cst_29 {dimension_numbers = #tpu.dot_dimension_numbers<[1], [0], [0], [1], [0, 0, 1, 1], [], []>} : vector<16x32xbf16>, vector<32x64xbf16>, vector<16x64xf32> -> vector<16x64xf32>
    %52 = arith.addf %47, %51 : vector<16x64xf32>
    %53 = vector.extract_strided_slice %41 {offsets = [32, 0], sizes = [16, 32], strides = [1, 1]} : vector<48x32xbf16> to vector<16x32xbf16>
    %c2 = arith.constant 2 : index
    %c0_30 = arith.constant 0 : index
    %c0_31 = arith.constant 0 : index
    %54 = vector.load %arg6[%c2, %c0_30, %c0_31] : memref<3x32x64xbf16, #tpu.memory_space<vmem>>, vector<1x32x64xbf16>
    %55 = vector.shape_cast %54 : vector<1x32x64xbf16> to vector<32x64xbf16>
    %cst_32 = arith.constant dense<0.000000e+00> : vector<16x64xf32>
    %56 = tpu.matmul %53, %55, %cst_32 {dimension_numbers = #tpu.dot_dimension_numbers<[1], [0], [0], [1], [0, 0, 1, 1], [], []>} : vector<16x32xbf16>, vector<32x64xbf16>, vector<16x64xf32> -> vector<16x64xf32>
    %57 = arith.addf %52, %56 : vector<16x64xf32>
    %c0_33 = arith.constant 0 : index
    %c0_34 = arith.constant 0 : index
    %58 = vector.load %arg7[%c0_33, %c0_34] : memref<1x64xf32, #tpu.memory_space<vmem>>, vector<1x64xf32>
    %59 = vector.broadcast %58 : vector<1x64xf32> to vector<16x64xf32>
    %60 = arith.addf %57, %59 : vector<16x64xf32>
    %cst_35 = arith.constant 0.000000e+00 : f32
    %61 = vector.broadcast %cst_35 : f32 to vector<16x64xf32>
    %62 = arith.maximumf %60, %61 : vector<16x64xf32>
    %c0_36 = arith.constant 0 : index
    %c0_37 = arith.constant 0 : index
    %63 = vector.load %arg5[%c0_36, %c0_37] : memref<48x16xbf16, #tpu.memory_space<vmem>>, vector<48x16xbf16>
    %64 = arith.truncf %62 : vector<16x64xf32> to vector<16x64xbf16>
    %cst_38 = arith.constant dense<0.000000e+00> : vector<48x64xf32>
    %65 = tpu.matmul %63, %64, %cst_38 {dimension_numbers = #tpu.dot_dimension_numbers<[1], [0], [0], [1], [0, 0, 1, 1], [], []>} : vector<48x16xbf16>, vector<16x64xbf16>, vector<48x64xf32> -> vector<48x64xf32>
    %66 = arith.truncf %65 : vector<48x64xf32> to vector<48x64xbf16>
    %cst_39 = arith.constant 0.000000e+00 : f32
    %67 = vector.broadcast %cst_39 : f32 to vector<16x32xf32>
    %68 = vector.extract_strided_slice %66 {offsets = [0, 0], sizes = [16, 64], strides = [1, 1]} : vector<48x64xbf16> to vector<16x64xbf16>
    %c0_40 = arith.constant 0 : index
    %c0_41 = arith.constant 0 : index
    %c0_42 = arith.constant 0 : index
    %69 = vector.load %arg8[%c0_40, %c0_41, %c0_42] : memref<3x64x32xbf16, #tpu.memory_space<vmem>>, vector<1x64x32xbf16>
    %70 = vector.shape_cast %69 : vector<1x64x32xbf16> to vector<64x32xbf16>
    %cst_43 = arith.constant dense<0.000000e+00> : vector<16x32xf32>
    %71 = tpu.matmul %68, %70, %cst_43 {dimension_numbers = #tpu.dot_dimension_numbers<[1], [0], [0], [1], [0, 0, 1, 1], [], []>} : vector<16x64xbf16>, vector<64x32xbf16>, vector<16x32xf32> -> vector<16x32xf32>
    %72 = arith.addf %67, %71 : vector<16x32xf32>
    %73 = vector.extract_strided_slice %66 {offsets = [16, 0], sizes = [16, 64], strides = [1, 1]} : vector<48x64xbf16> to vector<16x64xbf16>
    %c1_44 = arith.constant 1 : index
    %c0_45 = arith.constant 0 : index
    %c0_46 = arith.constant 0 : index
    %74 = vector.load %arg8[%c1_44, %c0_45, %c0_46] : memref<3x64x32xbf16, #tpu.memory_space<vmem>>, vector<1x64x32xbf16>
    %75 = vector.shape_cast %74 : vector<1x64x32xbf16> to vector<64x32xbf16>
    %cst_47 = arith.constant dense<0.000000e+00> : vector<16x32xf32>
    %76 = tpu.matmul %73, %75, %cst_47 {dimension_numbers = #tpu.dot_dimension_numbers<[1], [0], [0], [1], [0, 0, 1, 1], [], []>} : vector<16x64xbf16>, vector<64x32xbf16>, vector<16x32xf32> -> vector<16x32xf32>
    %77 = arith.addf %72, %76 : vector<16x32xf32>
    %78 = vector.extract_strided_slice %66 {offsets = [32, 0], sizes = [16, 64], strides = [1, 1]} : vector<48x64xbf16> to vector<16x64xbf16>
    %c2_48 = arith.constant 2 : index
    %c0_49 = arith.constant 0 : index
    %c0_50 = arith.constant 0 : index
    %79 = vector.load %arg8[%c2_48, %c0_49, %c0_50] : memref<3x64x32xbf16, #tpu.memory_space<vmem>>, vector<1x64x32xbf16>
    %80 = vector.shape_cast %79 : vector<1x64x32xbf16> to vector<64x32xbf16>
    %cst_51 = arith.constant dense<0.000000e+00> : vector<16x32xf32>
    %81 = tpu.matmul %78, %80, %cst_51 {dimension_numbers = #tpu.dot_dimension_numbers<[1], [0], [0], [1], [0, 0, 1, 1], [], []>} : vector<16x64xbf16>, vector<64x32xbf16>, vector<16x32xf32> -> vector<16x32xf32>
    %82 = arith.addf %77, %81 : vector<16x32xf32>
    %83 = arith.addf %37, %82 : vector<16x32xf32>
    %c0_52 = arith.constant 0 : index
    %c0_53 = arith.constant 0 : index
    %84 = vector.load %arg9[%c0_52, %c0_53] : memref<1x32xf32, #tpu.memory_space<vmem>>, vector<1x32xf32>
    %85 = vector.broadcast %84 : vector<1x32xf32> to vector<16x32xf32>
    %86 = arith.addf %83, %85 : vector<16x32xf32>
    %c0_54 = arith.constant 0 : index
    %c0_55 = arith.constant 0 : index
    %87 = vector.load %arg12[%c0_54, %c0_55] : memref<1x32xf32, #tpu.memory_space<vmem>>, vector<1x32xf32>
    %c0_56 = arith.constant 0 : index
    %c0_57 = arith.constant 0 : index
    %88 = vector.load %arg13[%c0_56, %c0_57] : memref<1x32xf32, #tpu.memory_space<vmem>>, vector<1x32xf32>
    %cst_58 = arith.constant dense<0.000000e+00> : vector<16xf32>
    %89 = vector.multi_reduction <add>, %86, %cst_58 [1] : vector<16x32xf32> to vector<16xf32>
    %90 = vector.shape_cast %89 : vector<16xf32> to vector<16x1xf32>
    %cst_59 = arith.constant 3.200000e+01 : f32
    %91 = vector.broadcast %cst_59 : f32 to vector<16x1xf32>
    %92 = arith.divf %90, %91 : vector<16x1xf32>
    %93 = vector.broadcast %92 : vector<16x1xf32> to vector<16x32xf32>
    %94 = arith.subf %86, %93 : vector<16x32xf32>
    %95 = arith.mulf %94, %94 : vector<16x32xf32>
    %cst_60 = arith.constant dense<0.000000e+00> : vector<16xf32>
    %96 = vector.multi_reduction <add>, %95, %cst_60 [1] : vector<16x32xf32> to vector<16xf32>
    %97 = vector.shape_cast %96 : vector<16xf32> to vector<16x1xf32>
    %cst_61 = arith.constant 3.200000e+01 : f32
    %98 = vector.broadcast %cst_61 : f32 to vector<16x1xf32>
    %99 = arith.divf %97, %98 : vector<16x1xf32>
    %100 = vector.broadcast %92 : vector<16x1xf32> to vector<16x32xf32>
    %101 = arith.subf %86, %100 : vector<16x32xf32>
    %cst_62 = arith.constant 9.99999974E-6 : f32
    %102 = vector.broadcast %cst_62 : f32 to vector<16x1xf32>
    %103 = arith.addf %99, %102 : vector<16x1xf32>
    %104 = math.rsqrt %103 : vector<16x1xf32>
    %105 = vector.broadcast %104 : vector<16x1xf32> to vector<16x32xf32>
    %106 = arith.mulf %101, %105 : vector<16x32xf32>
    %107 = vector.broadcast %87 : vector<1x32xf32> to vector<16x32xf32>
    %108 = arith.mulf %106, %107 : vector<16x32xf32>
    %109 = vector.broadcast %88 : vector<1x32xf32> to vector<16x32xf32>
    %110 = arith.addf %108, %109 : vector<16x32xf32>
    %c0_63 = arith.constant 0 : index
    %c0_64 = arith.constant 0 : index
    %c0_65 = arith.constant 0 : index
    %111 = vector.load %arg14[%c0_63, %c0_64, %c0_65] : memref<1x16x32xf32, #tpu.memory_space<vmem>>, vector<1x16x32xf32>
    %112 = vector.shape_cast %111 : vector<1x16x32xf32> to vector<16x32xf32>
    %113 = vector.shape_cast %110 : vector<16x32xf32> to vector<1x16x32xf32>
    tpu.vector_store %arg14[%c0_63, %c0_64, %c0_65], %113 {strides = array<i32>} : memref<1x16x32xf32, #tpu.memory_space<vmem>>, vector<1x16x32xf32>,
    return
  }
  func.func @transform_0(%arg0: i32) -> (i32, i32, i32) {
    %c0_i32 = arith.constant 0 : i32
    %c0_i32_0 = arith.constant 0 : i32
    %c0_i32_1 = arith.constant 0 : i32
    return %arg0, %c0_i32, %c0_i32_0 : i32, i32, i32
  }
  func.func @transform_1(%arg0: i32) -> (i32, i32) {
    %c0_i32 = arith.constant 0 : i32
    %c0_i32_0 = arith.constant 0 : i32
    %c0_i32_1 = arith.constant 0 : i32
    return %c0_i32, %c0_i32_0 : i32, i32
  }
  func.func @transform_2(%arg0: i32) -> (i32, i32) {
    %c0_i32 = arith.constant 0 : i32
    %c0_i32_0 = arith.constant 0 : i32
    %c0_i32_1 = arith.constant 0 : i32
    return %c0_i32, %c0_i32_0 : i32, i32
  }
  func.func @transform_3(%arg0: i32) -> (i32, i32) {
    %c0_i32 = arith.constant 0 : i32
    %c0_i32_0 = arith.constant 0 : i32
    %c0_i32_1 = arith.constant 0 : i32
    return %c0_i32, %c0_i32_0 : i32, i32
  }
  func.func @transform_4(%arg0: i32) -> (i32, i32) {
    %c0_i32 = arith.constant 0 : i32
    %c0_i32_0 = arith.constant 0 : i32
    %c0_i32_1 = arith.constant 0 : i32
    return %c0_i32, %c0_i32_0 : i32, i32
  }
  func.func @transform_5(%arg0: i32) -> (i32, i32, i32) {
    %c0_i32 = arith.constant 0 : i32
    %c0_i32_0 = arith.constant 0 : i32
    %c0_i32_1 = arith.constant 0 : i32
    %c0_i32_2 = arith.constant 0 : i32
    return %c0_i32, %c0_i32_0, %c0_i32_1 : i32, i32, i32
  }
  func.func @transform_6(%arg0: i32) -> (i32, i32) {
    %c0_i32 = arith.constant 0 : i32
    %c0_i32_0 = arith.constant 0 : i32
    %c0_i32_1 = arith.constant 0 : i32
    return %c0_i32, %c0_i32_0 : i32, i32
  }
  func.func @transform_7(%arg0: i32) -> (i32, i32, i32) {
    %c0_i32 = arith.constant 0 : i32
    %c0_i32_0 = arith.constant 0 : i32
    %c0_i32_1 = arith.constant 0 : i32
    %c0_i32_2 = arith.constant 0 : i32
    return %c0_i32, %c0_i32_0, %c0_i32_1 : i32, i32, i32
  }
  func.func @transform_8(%arg0: i32) -> (i32, i32) {
    %c0_i32 = arith.constant 0 : i32
    %c0_i32_0 = arith.constant 0 : i32
    %c0_i32_1 = arith.constant 0 : i32
    return %c0_i32, %c0_i32_0 : i32, i32
  }
  func.func @transform_9(%arg0: i32) -> (i32, i32) {
    %c0_i32 = arith.constant 0 : i32
    %c0_i32_0 = arith.constant 0 : i32
    %c0_i32_1 = arith.constant 0 : i32
    return %c0_i32, %c0_i32_0 : i32, i32
  }
  func.func @transform_10(%arg0: i32) -> (i32, i32) {
    %c0_i32 = arith.constant 0 : i32
    %c0_i32_0 = arith.constant 0 : i32
    %c0_i32_1 = arith.constant 0 : i32
    return %c0_i32, %c0_i32_0 : i32, i32
  }
  func.func @transform_11(%arg0: i32) -> (i32, i32) {
    %c0_i32 = arith.constant 0 : i32
    %c0_i32_0 = arith.constant 0 : i32
    %c0_i32_1 = arith.constant 0 : i32
    return %c0_i32, %c0_i32_0 : i32, i32
  }
  func.func @transform_12(%arg0: i32) -> (i32, i32) {
    %c0_i32 = arith.constant 0 : i32
    %c0_i32_0 = arith.constant 0 : i32
    %c0_i32_1 = arith.constant 0 : i32
    return %c0_i32, %c0_i32_0 : i32, i32
  }
  func.func @transform_13(%arg0: i32) -> (i32, i32, i32) {
    %c0_i32 = arith.constant 0 : i32
    %c0_i32_0 = arith.constant 0 : i32
    %c0_i32_1 = arith.constant 0 : i32
    return %arg0, %c0_i32, %c0_i32_0 : i32, i32, i32
  }
}

module attributes {stable_mosaic.version = 11 : i64} {
  func.func @_decoder_layer_kernel(%arg0: i32, %arg1: memref<1x8x32xf32, #tpu.memory_space<vmem>>, %arg2: memref<1x16x32xf32, #tpu.memory_space<vmem>>, %arg3: memref<8x8xf32, #tpu.memory_space<vmem>>, %arg4: memref<32x96xbf16, #tpu.memory_space<vmem>>, %arg5: memref<1x96xf32, #tpu.memory_space<vmem>>, %arg6: memref<32x32xbf16, #tpu.memory_space<vmem>>, %arg7: memref<1x32xf32, #tpu.memory_space<vmem>>, %arg8: memref<1x32xf32, #tpu.memory_space<vmem>>, %arg9: memref<1x32xf32, #tpu.memory_space<vmem>>, %arg10: memref<32x32xbf16, #tpu.memory_space<vmem>>, %arg11: memref<1x32xf32, #tpu.memory_space<vmem>>, %arg12: memref<32x64xbf16, #tpu.memory_space<vmem>>, %arg13: memref<1x64xf32, #tpu.memory_space<vmem>>, %arg14: memref<32x32xbf16, #tpu.memory_space<vmem>>, %arg15: memref<1x32xf32, #tpu.memory_space<vmem>>, %arg16: memref<1x32xf32, #tpu.memory_space<vmem>>, %arg17: memref<1x32xf32, #tpu.memory_space<vmem>>, %arg18: memref<32x64xbf16, #tpu.memory_space<vmem>>, %arg19: memref<1x64xf32, #tpu.memory_space<vmem>>, %arg20: memref<64x32xbf16, #tpu.memory_space<vmem>>, %arg21: memref<1x32xf32, #tpu.memory_space<vmem>>, %arg22: memref<1x32xf32, #tpu.memory_space<vmem>>, %arg23: memref<1x32xf32, #tpu.memory_space<vmem>>, %arg24: memref<1x8x32xf32, #tpu.memory_space<vmem>>) attributes {dimension_semantics = [#tpu.dimension_semantics<parallel>], iteration_bounds = array<i64: 2>, scalar_prefetch = 0 : i64, scratch_operands = 0 : i64, tpu.core_type = #tpu.core_type<tc>, window_params = [{transform_indices = @transform_0, window_bounds = array<i64: 1, 8, 32>}, {transform_indices = @transform_1, window_bounds = array<i64: 1, 16, 32>}, {pipeline_mode = #tpu.pipeline_mode<synchronous>, transform_indices = @transform_2, window_bounds = array<i64: 8, 8>}, {pipeline_mode = #tpu.pipeline_mode<synchronous>, transform_indices = @transform_3, window_bounds = array<i64: 32, 96>}, {pipeline_mode = #tpu.pipeline_mode<synchronous>, transform_indices = @transform_4, window_bounds = array<i64: 1, 96>}, {pipeline_mode = #tpu.pipeline_mode<synchronous>, transform_indices = @transform_5, window_bounds = array<i64: 32, 32>}, {pipeline_mode = #tpu.pipeline_mode<synchronous>, transform_indices = @transform_6, window_bounds = array<i64: 1, 32>}, {pipeline_mode = #tpu.pipeline_mode<synchronous>, transform_indices = @transform_7, window_bounds = array<i64: 1, 32>}, {pipeline_mode = #tpu.pipeline_mode<synchronous>, transform_indices = @transform_8, window_bounds = array<i64: 1, 32>}, {pipeline_mode = #tpu.pipeline_mode<synchronous>, transform_indices = @transform_9, window_bounds = array<i64: 32, 32>}, {pipeline_mode = #tpu.pipeline_mode<synchronous>, transform_indices = @transform_10, window_bounds = array<i64: 1, 32>}, {pipeline_mode = #tpu.pipeline_mode<synchronous>, transform_indices = @transform_11, window_bounds = array<i64: 32, 64>}, {pipeline_mode = #tpu.pipeline_mode<synchronous>, transform_indices = @transform_12, window_bounds = array<i64: 1, 64>}, {pipeline_mode = #tpu.pipeline_mode<synchronous>, transform_indices = @transform_13, window_bounds = array<i64: 32, 32>}, {pipeline_mode = #tpu.pipeline_mode<synchronous>, transform_indices = @transform_14, window_bounds = array<i64: 1, 32>}, {pipeline_mode = #tpu.pipeline_mode<synchronous>, transform_indices = @transform_15, window_bounds = array<i64: 1, 32>}, {pipeline_mode = #tpu.pipeline_mode<synchronous>, transform_indices = @transform_16, window_bounds = array<i64: 1, 32>}, {pipeline_mode = #tpu.pipeline_mode<synchronous>, transform_indices = @transform_17, window_bounds = array<i64: 32, 64>}, {pipeline_mode = #tpu.pipeline_mode<synchronous>, transform_indices = @transform_18, window_bounds = array<i64: 1, 64>}, {pipeline_mode = #tpu.pipeline_mode<synchronous>, transform_indices = @transform_19, window_bounds = array<i64: 64, 32>}, {pipeline_mode = #tpu.pipeline_mode<synchronous>, transform_indices = @transform_20, window_bounds = array<i64: 1, 32>}, {pipeline_mode = #tpu.pipeline_mode<synchronous>, transform_indices = @transform_21, window_bounds = array<i64: 1, 32>}, {pipeline_mode = #tpu.pipeline_mode<synchronous>, transform_indices = @transform_22, window_bounds = array<i64: 1, 32>}, {transform_indices = @transform_23, window_bounds = array<i64: 1, 8, 32>}]} {
    %c0 = arith.constant 0 : index
    %c0_0 = arith.constant 0 : index
    %c0_1 = arith.constant 0 : index
    %0 = vector.load %arg1[%c0, %c0_0, %c0_1] : memref<1x8x32xf32, #tpu.memory_space<vmem>>, vector<1x8x32xf32>
    %1 = vector.shape_cast %0 : vector<1x8x32xf32> to vector<8x32xf32>
    %c0_2 = arith.constant 0 : index
    %c0_3 = arith.constant 0 : index
    %c0_4 = arith.constant 0 : index
    %2 = vector.load %arg2[%c0_2, %c0_3, %c0_4] : memref<1x16x32xf32, #tpu.memory_space<vmem>>, vector<1x16x32xf32>
    %3 = vector.shape_cast %2 : vector<1x16x32xf32> to vector<16x32xf32>
    %c0_5 = arith.constant 0 : index
    %c0_6 = arith.constant 0 : index
    %4 = vector.load %arg3[%c0_5, %c0_6] : memref<8x8xf32, #tpu.memory_space<vmem>>, vector<8x8xf32>
    %5 = arith.truncf %1 : vector<8x32xf32> to vector<8x32xbf16>
    %c0_7 = arith.constant 0 : index
    %c0_8 = arith.constant 0 : index
    %6 = vector.load %arg4[%c0_7, %c0_8] : memref<32x96xbf16, #tpu.memory_space<vmem>>, vector<32x96xbf16>
    %cst = arith.constant dense<0.000000e+00> : vector<8x96xf32>
    %7 = tpu.matmul %5, %6, %cst {dimension_numbers = #tpu.dot_dimension_numbers<[1], [0], [0], [1], [0, 0, 1, 1], [], []>} : vector<8x32xbf16>, vector<32x96xbf16>, vector<8x96xf32> -> vector<8x96xf32>
    %c0_9 = arith.constant 0 : index
    %c0_10 = arith.constant 0 : index
    %8 = vector.load %arg5[%c0_9, %c0_10] : memref<1x96xf32, #tpu.memory_space<vmem>>, vector<1x96xf32>
    %9 = vector.broadcast %8 : vector<1x96xf32> to vector<8x96xf32>
    %10 = arith.addf %7, %9 : vector<8x96xf32>
    %11 = vector.extract_strided_slice %10 {offsets = [0, 0], sizes = [8, 32], strides = [1, 1]} : vector<8x96xf32> to vector<8x32xf32>
    %12 = vector.extract_strided_slice %10 {offsets = [0, 32], sizes = [8, 32], strides = [1, 1]} : vector<8x96xf32> to vector<8x32xf32>
    %13 = vector.extract_strided_slice %10 {offsets = [0, 64], sizes = [8, 32], strides = [1, 1]} : vector<8x96xf32> to vector<8x32xf32>
    %c0_11 = arith.constant 0 : index
    %c0_12 = arith.constant 0 : index
    %14 = vector.load %arg6[%c0_11, %c0_12] : memref<32x32xbf16, #tpu.memory_space<vmem>>, vector<32x32xbf16>
    %cst_13 = arith.constant 0.000000e+00 : f32
    %15 = vector.broadcast %cst_13 : f32 to vector<8x32xf32>
    %16 = vector.extract_strided_slice %11 {offsets = [0, 0], sizes = [8, 8], strides = [1, 1]} : vector<8x32xf32> to vector<8x8xf32>
    %17 = arith.truncf %16 : vector<8x8xf32> to vector<8x8xbf16>
    %18 = vector.extract_strided_slice %12 {offsets = [0, 0], sizes = [8, 8], strides = [1, 1]} : vector<8x32xf32> to vector<8x8xf32>
    %19 = arith.truncf %18 : vector<8x8xf32> to vector<8x8xbf16>
    %20 = vector.extract_strided_slice %13 {offsets = [0, 0], sizes = [8, 8], strides = [1, 1]} : vector<8x32xf32> to vector<8x8xf32>
    %21 = arith.truncf %20 : vector<8x8xf32> to vector<8x8xbf16>
    %cst_14 = arith.constant dense<0.000000e+00> : vector<8x8xf32>
    %22 = tpu.matmul %17, %19, %cst_14 {dimension_numbers = #tpu.dot_dimension_numbers<[1], [1], [0], [0], [0, 0, 1, 0], [], []>} : vector<8x8xbf16>, vector<8x8xbf16>, vector<8x8xf32> -> vector<8x8xf32>
    %cst_15 = arith.constant 0.353553385 : f32
    %23 = vector.broadcast %cst_15 : f32 to vector<8x8xf32>
    %24 = arith.mulf %22, %23 : vector<8x8xf32>
    %25 = arith.addf %24, %4 : vector<8x8xf32>
    %cst_16 = arith.constant dense<0xFF800000> : vector<8xf32>
    %26 = vector.multi_reduction <maximumf>, %25, %cst_16 [1] : vector<8x8xf32> to vector<8xf32>
    %27 = vector.shape_cast %26 : vector<8xf32> to vector<8x1xf32>
    %28 = vector.broadcast %27 : vector<8x1xf32> to vector<8x8xf32>
    %29 = arith.subf %25, %28 : vector<8x8xf32>
    %30 = math.exp %29 : vector<8x8xf32>
    %cst_17 = arith.constant dense<0.000000e+00> : vector<8xf32>
    %31 = vector.multi_reduction <add>, %30, %cst_17 [1] : vector<8x8xf32> to vector<8xf32>
    %32 = vector.shape_cast %31 : vector<8xf32> to vector<8x1xf32>
    %33 = tpu.reciprocal %32 {approx = true} : vector<8x1xf32> -> vector<8x1xf32>
    %34 = vector.broadcast %33 : vector<8x1xf32> to vector<8x8xf32>
    %35 = arith.mulf %30, %34 : vector<8x8xf32>
    %36 = arith.truncf %35 : vector<8x8xf32> to vector<8x8xbf16>
    %cst_18 = arith.constant dense<0.000000e+00> : vector<8x8xf32>
    %37 = tpu.matmul %36, %21, %cst_18 {dimension_numbers = #tpu.dot_dimension_numbers<[1], [0], [0], [1], [0, 0, 1, 1], [], []>} : vector<8x8xbf16>, vector<8x8xbf16>, vector<8x8xf32> -> vector<8x8xf32>
    %38 = arith.truncf %37 : vector<8x8xf32> to vector<8x8xbf16>
    %39 = vector.extract_strided_slice %14 {offsets = [0, 0], sizes = [8, 32], strides = [1, 1]} : vector<32x32xbf16> to vector<8x32xbf16>
    %cst_19 = arith.constant dense<0.000000e+00> : vector<8x32xf32>
    %40 = tpu.matmul %38, %39, %cst_19 {dimension_numbers = #tpu.dot_dimension_numbers<[1], [0], [0], [1], [0, 0, 1, 1], [], []>} : vector<8x8xbf16>, vector<8x32xbf16>, vector<8x32xf32> -> vector<8x32xf32>
    %41 = arith.addf %15, %40 : vector<8x32xf32>
    %42 = vector.extract_strided_slice %11 {offsets = [0, 8], sizes = [8, 8], strides = [1, 1]} : vector<8x32xf32> to vector<8x8xf32>
    %43 = arith.truncf %42 : vector<8x8xf32> to vector<8x8xbf16>
    %44 = vector.extract_strided_slice %12 {offsets = [0, 8], sizes = [8, 8], strides = [1, 1]} : vector<8x32xf32> to vector<8x8xf32>
    %45 = arith.truncf %44 : vector<8x8xf32> to vector<8x8xbf16>
    %46 = vector.extract_strided_slice %13 {offsets = [0, 8], sizes = [8, 8], strides = [1, 1]} : vector<8x32xf32> to vector<8x8xf32>
    %47 = arith.truncf %46 : vector<8x8xf32> to vector<8x8xbf16>
    %cst_20 = arith.constant dense<0.000000e+00> : vector<8x8xf32>
    %48 = tpu.matmul %43, %45, %cst_20 {dimension_numbers = #tpu.dot_dimension_numbers<[1], [1], [0], [0], [0, 0, 1, 0], [], []>} : vector<8x8xbf16>, vector<8x8xbf16>, vector<8x8xf32> -> vector<8x8xf32>
    %cst_21 = arith.constant 0.353553385 : f32
    %49 = vector.broadcast %cst_21 : f32 to vector<8x8xf32>
    %50 = arith.mulf %48, %49 : vector<8x8xf32>
    %51 = arith.addf %50, %4 : vector<8x8xf32>
    %cst_22 = arith.constant dense<0xFF800000> : vector<8xf32>
    %52 = vector.multi_reduction <maximumf>, %51, %cst_22 [1] : vector<8x8xf32> to vector<8xf32>
    %53 = vector.shape_cast %52 : vector<8xf32> to vector<8x1xf32>
    %54 = vector.broadcast %53 : vector<8x1xf32> to vector<8x8xf32>
    %55 = arith.subf %51, %54 : vector<8x8xf32>
    %56 = math.exp %55 : vector<8x8xf32>
    %cst_23 = arith.constant dense<0.000000e+00> : vector<8xf32>
    %57 = vector.multi_reduction <add>, %56, %cst_23 [1] : vector<8x8xf32> to vector<8xf32>
    %58 = vector.shape_cast %57 : vector<8xf32> to vector<8x1xf32>
    %59 = tpu.reciprocal %58 {approx = true} : vector<8x1xf32> -> vector<8x1xf32>
    %60 = vector.broadcast %59 : vector<8x1xf32> to vector<8x8xf32>
    %61 = arith.mulf %56, %60 : vector<8x8xf32>
    %62 = arith.truncf %61 : vector<8x8xf32> to vector<8x8xbf16>
    %cst_24 = arith.constant dense<0.000000e+00> : vector<8x8xf32>
    %63 = tpu.matmul %62, %47, %cst_24 {dimension_numbers = #tpu.dot_dimension_numbers<[1], [0], [0], [1], [0, 0, 1, 1], [], []>} : vector<8x8xbf16>, vector<8x8xbf16>, vector<8x8xf32> -> vector<8x8xf32>
    %64 = arith.truncf %63 : vector<8x8xf32> to vector<8x8xbf16>
    %65 = vector.extract_strided_slice %14 {offsets = [8, 0], sizes = [8, 32], strides = [1, 1]} : vector<32x32xbf16> to vector<8x32xbf16>
    %cst_25 = arith.constant dense<0.000000e+00> : vector<8x32xf32>
    %66 = tpu.matmul %64, %65, %cst_25 {dimension_numbers = #tpu.dot_dimension_numbers<[1], [0], [0], [1], [0, 0, 1, 1], [], []>} : vector<8x8xbf16>, vector<8x32xbf16>, vector<8x32xf32> -> vector<8x32xf32>
    %67 = arith.addf %41, %66 : vector<8x32xf32>
    %68 = vector.extract_strided_slice %11 {offsets = [0, 16], sizes = [8, 8], strides = [1, 1]} : vector<8x32xf32> to vector<8x8xf32>
    %69 = arith.truncf %68 : vector<8x8xf32> to vector<8x8xbf16>
    %70 = vector.extract_strided_slice %12 {offsets = [0, 16], sizes = [8, 8], strides = [1, 1]} : vector<8x32xf32> to vector<8x8xf32>
    %71 = arith.truncf %70 : vector<8x8xf32> to vector<8x8xbf16>
    %72 = vector.extract_strided_slice %13 {offsets = [0, 16], sizes = [8, 8], strides = [1, 1]} : vector<8x32xf32> to vector<8x8xf32>
    %73 = arith.truncf %72 : vector<8x8xf32> to vector<8x8xbf16>
    %cst_26 = arith.constant dense<0.000000e+00> : vector<8x8xf32>
    %74 = tpu.matmul %69, %71, %cst_26 {dimension_numbers = #tpu.dot_dimension_numbers<[1], [1], [0], [0], [0, 0, 1, 0], [], []>} : vector<8x8xbf16>, vector<8x8xbf16>, vector<8x8xf32> -> vector<8x8xf32>
    %cst_27 = arith.constant 0.353553385 : f32
    %75 = vector.broadcast %cst_27 : f32 to vector<8x8xf32>
    %76 = arith.mulf %74, %75 : vector<8x8xf32>
    %77 = arith.addf %76, %4 : vector<8x8xf32>
    %cst_28 = arith.constant dense<0xFF800000> : vector<8xf32>
    %78 = vector.multi_reduction <maximumf>, %77, %cst_28 [1] : vector<8x8xf32> to vector<8xf32>
    %79 = vector.shape_cast %78 : vector<8xf32> to vector<8x1xf32>
    %80 = vector.broadcast %79 : vector<8x1xf32> to vector<8x8xf32>
    %81 = arith.subf %77, %80 : vector<8x8xf32>
    %82 = math.exp %81 : vector<8x8xf32>
    %cst_29 = arith.constant dense<0.000000e+00> : vector<8xf32>
    %83 = vector.multi_reduction <add>, %82, %cst_29 [1] : vector<8x8xf32> to vector<8xf32>
    %84 = vector.shape_cast %83 : vector<8xf32> to vector<8x1xf32>
    %85 = tpu.reciprocal %84 {approx = true} : vector<8x1xf32> -> vector<8x1xf32>
    %86 = vector.broadcast %85 : vector<8x1xf32> to vector<8x8xf32>
    %87 = arith.mulf %82, %86 : vector<8x8xf32>
    %88 = arith.truncf %87 : vector<8x8xf32> to vector<8x8xbf16>
    %cst_30 = arith.constant dense<0.000000e+00> : vector<8x8xf32>
    %89 = tpu.matmul %88, %73, %cst_30 {dimension_numbers = #tpu.dot_dimension_numbers<[1], [0], [0], [1], [0, 0, 1, 1], [], []>} : vector<8x8xbf16>, vector<8x8xbf16>, vector<8x8xf32> -> vector<8x8xf32>
    %90 = arith.truncf %89 : vector<8x8xf32> to vector<8x8xbf16>
    %91 = vector.extract_strided_slice %14 {offsets = [16, 0], sizes = [8, 32], strides = [1, 1]} : vector<32x32xbf16> to vector<8x32xbf16>
    %cst_31 = arith.constant dense<0.000000e+00> : vector<8x32xf32>
    %92 = tpu.matmul %90, %91, %cst_31 {dimension_numbers = #tpu.dot_dimension_numbers<[1], [0], [0], [1], [0, 0, 1, 1], [], []>} : vector<8x8xbf16>, vector<8x32xbf16>, vector<8x32xf32> -> vector<8x32xf32>
    %93 = arith.addf %67, %92 : vector<8x32xf32>
    %94 = vector.extract_strided_slice %11 {offsets = [0, 24], sizes = [8, 8], strides = [1, 1]} : vector<8x32xf32> to vector<8x8xf32>
    %95 = arith.truncf %94 : vector<8x8xf32> to vector<8x8xbf16>
    %96 = vector.extract_strided_slice %12 {offsets = [0, 24], sizes = [8, 8], strides = [1, 1]} : vector<8x32xf32> to vector<8x8xf32>
    %97 = arith.truncf %96 : vector<8x8xf32> to vector<8x8xbf16>
    %98 = vector.extract_strided_slice %13 {offsets = [0, 24], sizes = [8, 8], strides = [1, 1]} : vector<8x32xf32> to vector<8x8xf32>
    %99 = arith.truncf %98 : vector<8x8xf32> to vector<8x8xbf16>
    %cst_32 = arith.constant dense<0.000000e+00> : vector<8x8xf32>
    %100 = tpu.matmul %95, %97, %cst_32 {dimension_numbers = #tpu.dot_dimension_numbers<[1], [1], [0], [0], [0, 0, 1, 0], [], []>} : vector<8x8xbf16>, vector<8x8xbf16>, vector<8x8xf32> -> vector<8x8xf32>
    %cst_33 = arith.constant 0.353553385 : f32
    %101 = vector.broadcast %cst_33 : f32 to vector<8x8xf32>
    %102 = arith.mulf %100, %101 : vector<8x8xf32>
    %103 = arith.addf %102, %4 : vector<8x8xf32>
    %cst_34 = arith.constant dense<0xFF800000> : vector<8xf32>
    %104 = vector.multi_reduction <maximumf>, %103, %cst_34 [1] : vector<8x8xf32> to vector<8xf32>
    %105 = vector.shape_cast %104 : vector<8xf32> to vector<8x1xf32>
    %106 = vector.broadcast %105 : vector<8x1xf32> to vector<8x8xf32>
    %107 = arith.subf %103, %106 : vector<8x8xf32>
    %108 = math.exp %107 : vector<8x8xf32>
    %cst_35 = arith.constant dense<0.000000e+00> : vector<8xf32>
    %109 = vector.multi_reduction <add>, %108, %cst_35 [1] : vector<8x8xf32> to vector<8xf32>
    %110 = vector.shape_cast %109 : vector<8xf32> to vector<8x1xf32>
    %111 = tpu.reciprocal %110 {approx = true} : vector<8x1xf32> -> vector<8x1xf32>
    %112 = vector.broadcast %111 : vector<8x1xf32> to vector<8x8xf32>
    %113 = arith.mulf %108, %112 : vector<8x8xf32>
    %114 = arith.truncf %113 : vector<8x8xf32> to vector<8x8xbf16>
    %cst_36 = arith.constant dense<0.000000e+00> : vector<8x8xf32>
    %115 = tpu.matmul %114, %99, %cst_36 {dimension_numbers = #tpu.dot_dimension_numbers<[1], [0], [0], [1], [0, 0, 1, 1], [], []>} : vector<8x8xbf16>, vector<8x8xbf16>, vector<8x8xf32> -> vector<8x8xf32>
    %116 = arith.truncf %115 : vector<8x8xf32> to vector<8x8xbf16>
    %117 = vector.extract_strided_slice %14 {offsets = [24, 0], sizes = [8, 32], strides = [1, 1]} : vector<32x32xbf16> to vector<8x32xbf16>
    %cst_37 = arith.constant dense<0.000000e+00> : vector<8x32xf32>
    %118 = tpu.matmul %116, %117, %cst_37 {dimension_numbers = #tpu.dot_dimension_numbers<[1], [0], [0], [1], [0, 0, 1, 1], [], []>} : vector<8x8xbf16>, vector<8x32xbf16>, vector<8x32xf32> -> vector<8x32xf32>
    %119 = arith.addf %93, %118 : vector<8x32xf32>
    %120 = arith.addf %1, %119 : vector<8x32xf32>
    %c0_38 = arith.constant 0 : index
    %c0_39 = arith.constant 0 : index
    %121 = vector.load %arg7[%c0_38, %c0_39] : memref<1x32xf32, #tpu.memory_space<vmem>>, vector<1x32xf32>
    %122 = vector.broadcast %121 : vector<1x32xf32> to vector<8x32xf32>
    %123 = arith.addf %120, %122 : vector<8x32xf32>
    %c0_40 = arith.constant 0 : index
    %c0_41 = arith.constant 0 : index
    %124 = vector.load %arg8[%c0_40, %c0_41] : memref<1x32xf32, #tpu.memory_space<vmem>>, vector<1x32xf32>
    %c0_42 = arith.constant 0 : index
    %c0_43 = arith.constant 0 : index
    %125 = vector.load %arg9[%c0_42, %c0_43] : memref<1x32xf32, #tpu.memory_space<vmem>>, vector<1x32xf32>
    %cst_44 = arith.constant dense<0.000000e+00> : vector<8xf32>
    %126 = vector.multi_reduction <add>, %123, %cst_44 [1] : vector<8x32xf32> to vector<8xf32>
    %127 = vector.shape_cast %126 : vector<8xf32> to vector<8x1xf32>
    %cst_45 = arith.constant 3.200000e+01 : f32
    %128 = vector.broadcast %cst_45 : f32 to vector<8x1xf32>
    %129 = arith.divf %127, %128 : vector<8x1xf32>
    %130 = vector.broadcast %129 : vector<8x1xf32> to vector<8x32xf32>
    %131 = arith.subf %123, %130 : vector<8x32xf32>
    %132 = arith.mulf %131, %131 : vector<8x32xf32>
    %cst_46 = arith.constant dense<0.000000e+00> : vector<8xf32>
    %133 = vector.multi_reduction <add>, %132, %cst_46 [1] : vector<8x32xf32> to vector<8xf32>
    %134 = vector.shape_cast %133 : vector<8xf32> to vector<8x1xf32>
    %cst_47 = arith.constant 3.200000e+01 : f32
    %135 = vector.broadcast %cst_47 : f32 to vector<8x1xf32>
    %136 = arith.divf %134, %135 : vector<8x1xf32>
    %137 = vector.broadcast %129 : vector<8x1xf32> to vector<8x32xf32>
    %138 = arith.subf %123, %137 : vector<8x32xf32>
    %cst_48 = arith.constant 9.99999974E-6 : f32
    %139 = vector.broadcast %cst_48 : f32 to vector<8x1xf32>
    %140 = arith.addf %136, %139 : vector<8x1xf32>
    %141 = math.rsqrt %140 : vector<8x1xf32>
    %142 = vector.broadcast %141 : vector<8x1xf32> to vector<8x32xf32>
    %143 = arith.mulf %138, %142 : vector<8x32xf32>
    %144 = vector.broadcast %124 : vector<1x32xf32> to vector<8x32xf32>
    %145 = arith.mulf %143, %144 : vector<8x32xf32>
    %146 = vector.broadcast %125 : vector<1x32xf32> to vector<8x32xf32>
    %147 = arith.addf %145, %146 : vector<8x32xf32>
    %148 = arith.truncf %147 : vector<8x32xf32> to vector<8x32xbf16>
    %c0_49 = arith.constant 0 : index
    %c0_50 = arith.constant 0 : index
    %149 = vector.load %arg10[%c0_49, %c0_50] : memref<32x32xbf16, #tpu.memory_space<vmem>>, vector<32x32xbf16>
    %cst_51 = arith.constant dense<0.000000e+00> : vector<8x32xf32>
    %150 = tpu.matmul %148, %149, %cst_51 {dimension_numbers = #tpu.dot_dimension_numbers<[1], [0], [0], [1], [0, 0, 1, 1], [], []>} : vector<8x32xbf16>, vector<32x32xbf16>, vector<8x32xf32> -> vector<8x32xf32>
    %c0_52 = arith.constant 0 : index
    %c0_53 = arith.constant 0 : index
    %151 = vector.load %arg11[%c0_52, %c0_53] : memref<1x32xf32, #tpu.memory_space<vmem>>, vector<1x32xf32>
    %152 = vector.broadcast %151 : vector<1x32xf32> to vector<8x32xf32>
    %153 = arith.addf %150, %152 : vector<8x32xf32>
    %154 = arith.truncf %3 : vector<16x32xf32> to vector<16x32xbf16>
    %c0_54 = arith.constant 0 : index
    %c0_55 = arith.constant 0 : index
    %155 = vector.load %arg12[%c0_54, %c0_55] : memref<32x64xbf16, #tpu.memory_space<vmem>>, vector<32x64xbf16>
    %cst_56 = arith.constant dense<0.000000e+00> : vector<16x64xf32>
    %156 = tpu.matmul %154, %155, %cst_56 {dimension_numbers = #tpu.dot_dimension_numbers<[1], [0], [0], [1], [0, 0, 1, 1], [], []>} : vector<16x32xbf16>, vector<32x64xbf16>, vector<16x64xf32> -> vector<16x64xf32>
    %c0_57 = arith.constant 0 : index
    %c0_58 = arith.constant 0 : index
    %157 = vector.load %arg13[%c0_57, %c0_58] : memref<1x64xf32, #tpu.memory_space<vmem>>, vector<1x64xf32>
    %158 = vector.broadcast %157 : vector<1x64xf32> to vector<16x64xf32>
    %159 = arith.addf %156, %158 : vector<16x64xf32>
    %160 = vector.extract_strided_slice %159 {offsets = [0, 0], sizes = [16, 32], strides = [1, 1]} : vector<16x64xf32> to vector<16x32xf32>
    %161 = vector.extract_strided_slice %159 {offsets = [0, 32], sizes = [16, 32], strides = [1, 1]} : vector<16x64xf32> to vector<16x32xf32>
    %c0_59 = arith.constant 0 : index
    %c0_60 = arith.constant 0 : index
    %162 = vector.load %arg14[%c0_59, %c0_60] : memref<32x32xbf16, #tpu.memory_space<vmem>>, vector<32x32xbf16>
    %cst_61 = arith.constant 0.000000e+00 : f32
    %163 = vector.broadcast %cst_61 : f32 to vector<8x32xf32>
    %164 = vector.extract_strided_slice %153 {offsets = [0, 0], sizes = [8, 8], strides = [1, 1]} : vector<8x32xf32> to vector<8x8xf32>
    %165 = arith.truncf %164 : vector<8x8xf32> to vector<8x8xbf16>
    %166 = vector.extract_strided_slice %160 {offsets = [0, 0], sizes = [16, 8], strides = [1, 1]} : vector<16x32xf32> to vector<16x8xf32>
    %167 = arith.truncf %166 : vector<16x8xf32> to vector<16x8xbf16>
    %168 = vector.extract_strided_slice %161 {offsets = [0, 0], sizes = [16, 8], strides = [1, 1]} : vector<16x32xf32> to vector<16x8xf32>
    %169 = arith.truncf %168 : vector<16x8xf32> to vector<16x8xbf16>
    %cst_62 = arith.constant dense<0.000000e+00> : vector<8x16xf32>
    %170 = tpu.matmul %165, %167, %cst_62 {dimension_numbers = #tpu.dot_dimension_numbers<[1], [1], [0], [0], [0, 0, 1, 0], [], []>} : vector<8x8xbf16>, vector<16x8xbf16>, vector<8x16xf32> -> vector<8x16xf32>
    %cst_63 = arith.constant 0.353553385 : f32
    %171 = vector.broadcast %cst_63 : f32 to vector<8x16xf32>
    %172 = arith.mulf %170, %171 : vector<8x16xf32>
    %cst_64 = arith.constant dense<0xFF800000> : vector<8xf32>
    %173 = vector.multi_reduction <maximumf>, %172, %cst_64 [1] : vector<8x16xf32> to vector<8xf32>
    %174 = vector.shape_cast %173 : vector<8xf32> to vector<8x1xf32>
    %175 = vector.broadcast %174 : vector<8x1xf32> to vector<8x16xf32>
    %176 = arith.subf %172, %175 : vector<8x16xf32>
    %177 = math.exp %176 : vector<8x16xf32>
    %cst_65 = arith.constant dense<0.000000e+00> : vector<8xf32>
    %178 = vector.multi_reduction <add>, %177, %cst_65 [1] : vector<8x16xf32> to vector<8xf32>
    %179 = vector.shape_cast %178 : vector<8xf32> to vector<8x1xf32>
    %180 = tpu.reciprocal %179 {approx = true} : vector<8x1xf32> -> vector<8x1xf32>
    %181 = vector.broadcast %180 : vector<8x1xf32> to vector<8x16xf32>
    %182 = arith.mulf %177, %181 : vector<8x16xf32>
    %183 = arith.truncf %182 : vector<8x16xf32> to vector<8x16xbf16>
    %cst_66 = arith.constant dense<0.000000e+00> : vector<8x8xf32>
    %184 = tpu.matmul %183, %169, %cst_66 {dimension_numbers = #tpu.dot_dimension_numbers<[1], [0], [0], [1], [0, 0, 1, 1], [], []>} : vector<8x16xbf16>, vector<16x8xbf16>, vector<8x8xf32> -> vector<8x8xf32>
    %185 = arith.truncf %184 : vector<8x8xf32> to vector<8x8xbf16>
    %186 = vector.extract_strided_slice %162 {offsets = [0, 0], sizes = [8, 32], strides = [1, 1]} : vector<32x32xbf16> to vector<8x32xbf16>
    %cst_67 = arith.constant dense<0.000000e+00> : vector<8x32xf32>
    %187 = tpu.matmul %185, %186, %cst_67 {dimension_numbers = #tpu.dot_dimension_numbers<[1], [0], [0], [1], [0, 0, 1, 1], [], []>} : vector<8x8xbf16>, vector<8x32xbf16>, vector<8x32xf32> -> vector<8x32xf32>
    %188 = arith.addf %163, %187 : vector<8x32xf32>
    %189 = vector.extract_strided_slice %153 {offsets = [0, 8], sizes = [8, 8], strides = [1, 1]} : vector<8x32xf32> to vector<8x8xf32>
    %190 = arith.truncf %189 : vector<8x8xf32> to vector<8x8xbf16>
    %191 = vector.extract_strided_slice %160 {offsets = [0, 8], sizes = [16, 8], strides = [1, 1]} : vector<16x32xf32> to vector<16x8xf32>
    %192 = arith.truncf %191 : vector<16x8xf32> to vector<16x8xbf16>
    %193 = vector.extract_strided_slice %161 {offsets = [0, 8], sizes = [16, 8], strides = [1, 1]} : vector<16x32xf32> to vector<16x8xf32>
    %194 = arith.truncf %193 : vector<16x8xf32> to vector<16x8xbf16>
    %cst_68 = arith.constant dense<0.000000e+00> : vector<8x16xf32>
    %195 = tpu.matmul %190, %192, %cst_68 {dimension_numbers = #tpu.dot_dimension_numbers<[1], [1], [0], [0], [0, 0, 1, 0], [], []>} : vector<8x8xbf16>, vector<16x8xbf16>, vector<8x16xf32> -> vector<8x16xf32>
    %cst_69 = arith.constant 0.353553385 : f32
    %196 = vector.broadcast %cst_69 : f32 to vector<8x16xf32>
    %197 = arith.mulf %195, %196 : vector<8x16xf32>
    %cst_70 = arith.constant dense<0xFF800000> : vector<8xf32>
    %198 = vector.multi_reduction <maximumf>, %197, %cst_70 [1] : vector<8x16xf32> to vector<8xf32>
    %199 = vector.shape_cast %198 : vector<8xf32> to vector<8x1xf32>
    %200 = vector.broadcast %199 : vector<8x1xf32> to vector<8x16xf32>
    %201 = arith.subf %197, %200 : vector<8x16xf32>
    %202 = math.exp %201 : vector<8x16xf32>
    %cst_71 = arith.constant dense<0.000000e+00> : vector<8xf32>
    %203 = vector.multi_reduction <add>, %202, %cst_71 [1] : vector<8x16xf32> to vector<8xf32>
    %204 = vector.shape_cast %203 : vector<8xf32> to vector<8x1xf32>
    %205 = tpu.reciprocal %204 {approx = true} : vector<8x1xf32> -> vector<8x1xf32>
    %206 = vector.broadcast %205 : vector<8x1xf32> to vector<8x16xf32>
    %207 = arith.mulf %202, %206 : vector<8x16xf32>
    %208 = arith.truncf %207 : vector<8x16xf32> to vector<8x16xbf16>
    %cst_72 = arith.constant dense<0.000000e+00> : vector<8x8xf32>
    %209 = tpu.matmul %208, %194, %cst_72 {dimension_numbers = #tpu.dot_dimension_numbers<[1], [0], [0], [1], [0, 0, 1, 1], [], []>} : vector<8x16xbf16>, vector<16x8xbf16>, vector<8x8xf32> -> vector<8x8xf32>
    %210 = arith.truncf %209 : vector<8x8xf32> to vector<8x8xbf16>
    %211 = vector.extract_strided_slice %162 {offsets = [8, 0], sizes = [8, 32], strides = [1, 1]} : vector<32x32xbf16> to vector<8x32xbf16>
    %cst_73 = arith.constant dense<0.000000e+00> : vector<8x32xf32>
    %212 = tpu.matmul %210, %211, %cst_73 {dimension_numbers = #tpu.dot_dimension_numbers<[1], [0], [0], [1], [0, 0, 1, 1], [], []>} : vector<8x8xbf16>, vector<8x32xbf16>, vector<8x32xf32> -> vector<8x32xf32>
    %213 = arith.addf %188, %212 : vector<8x32xf32>
    %214 = vector.extract_strided_slice %153 {offsets = [0, 16], sizes = [8, 8], strides = [1, 1]} : vector<8x32xf32> to vector<8x8xf32>
    %215 = arith.truncf %214 : vector<8x8xf32> to vector<8x8xbf16>
    %216 = vector.extract_strided_slice %160 {offsets = [0, 16], sizes = [16, 8], strides = [1, 1]} : vector<16x32xf32> to vector<16x8xf32>
    %217 = arith.truncf %216 : vector<16x8xf32> to vector<16x8xbf16>
    %218 = vector.extract_strided_slice %161 {offsets = [0, 16], sizes = [16, 8], strides = [1, 1]} : vector<16x32xf32> to vector<16x8xf32>
    %219 = arith.truncf %218 : vector<16x8xf32> to vector<16x8xbf16>
    %cst_74 = arith.constant dense<0.000000e+00> : vector<8x16xf32>
    %220 = tpu.matmul %215, %217, %cst_74 {dimension_numbers = #tpu.dot_dimension_numbers<[1], [1], [0], [0], [0, 0, 1, 0], [], []>} : vector<8x8xbf16>, vector<16x8xbf16>, vector<8x16xf32> -> vector<8x16xf32>
    %cst_75 = arith.constant 0.353553385 : f32
    %221 = vector.broadcast %cst_75 : f32 to vector<8x16xf32>
    %222 = arith.mulf %220, %221 : vector<8x16xf32>
    %cst_76 = arith.constant dense<0xFF800000> : vector<8xf32>
    %223 = vector.multi_reduction <maximumf>, %222, %cst_76 [1] : vector<8x16xf32> to vector<8xf32>
    %224 = vector.shape_cast %223 : vector<8xf32> to vector<8x1xf32>
    %225 = vector.broadcast %224 : vector<8x1xf32> to vector<8x16xf32>
    %226 = arith.subf %222, %225 : vector<8x16xf32>
    %227 = math.exp %226 : vector<8x16xf32>
    %cst_77 = arith.constant dense<0.000000e+00> : vector<8xf32>
    %228 = vector.multi_reduction <add>, %227, %cst_77 [1] : vector<8x16xf32> to vector<8xf32>
    %229 = vector.shape_cast %228 : vector<8xf32> to vector<8x1xf32>
    %230 = tpu.reciprocal %229 {approx = true} : vector<8x1xf32> -> vector<8x1xf32>
    %231 = vector.broadcast %230 : vector<8x1xf32> to vector<8x16xf32>
    %232 = arith.mulf %227, %231 : vector<8x16xf32>
    %233 = arith.truncf %232 : vector<8x16xf32> to vector<8x16xbf16>
    %cst_78 = arith.constant dense<0.000000e+00> : vector<8x8xf32>
    %234 = tpu.matmul %233, %219, %cst_78 {dimension_numbers = #tpu.dot_dimension_numbers<[1], [0], [0], [1], [0, 0, 1, 1], [], []>} : vector<8x16xbf16>, vector<16x8xbf16>, vector<8x8xf32> -> vector<8x8xf32>
    %235 = arith.truncf %234 : vector<8x8xf32> to vector<8x8xbf16>
    %236 = vector.extract_strided_slice %162 {offsets = [16, 0], sizes = [8, 32], strides = [1, 1]} : vector<32x32xbf16> to vector<8x32xbf16>
    %cst_79 = arith.constant dense<0.000000e+00> : vector<8x32xf32>
    %237 = tpu.matmul %235, %236, %cst_79 {dimension_numbers = #tpu.dot_dimension_numbers<[1], [0], [0], [1], [0, 0, 1, 1], [], []>} : vector<8x8xbf16>, vector<8x32xbf16>, vector<8x32xf32> -> vector<8x32xf32>
    %238 = arith.addf %213, %237 : vector<8x32xf32>
    %239 = vector.extract_strided_slice %153 {offsets = [0, 24], sizes = [8, 8], strides = [1, 1]} : vector<8x32xf32> to vector<8x8xf32>
    %240 = arith.truncf %239 : vector<8x8xf32> to vector<8x8xbf16>
    %241 = vector.extract_strided_slice %160 {offsets = [0, 24], sizes = [16, 8], strides = [1, 1]} : vector<16x32xf32> to vector<16x8xf32>
    %242 = arith.truncf %241 : vector<16x8xf32> to vector<16x8xbf16>
    %243 = vector.extract_strided_slice %161 {offsets = [0, 24], sizes = [16, 8], strides = [1, 1]} : vector<16x32xf32> to vector<16x8xf32>
    %244 = arith.truncf %243 : vector<16x8xf32> to vector<16x8xbf16>
    %cst_80 = arith.constant dense<0.000000e+00> : vector<8x16xf32>
    %245 = tpu.matmul %240, %242, %cst_80 {dimension_numbers = #tpu.dot_dimension_numbers<[1], [1], [0], [0], [0, 0, 1, 0], [], []>} : vector<8x8xbf16>, vector<16x8xbf16>, vector<8x16xf32> -> vector<8x16xf32>
    %cst_81 = arith.constant 0.353553385 : f32
    %246 = vector.broadcast %cst_81 : f32 to vector<8x16xf32>
    %247 = arith.mulf %245, %246 : vector<8x16xf32>
    %cst_82 = arith.constant dense<0xFF800000> : vector<8xf32>
    %248 = vector.multi_reduction <maximumf>, %247, %cst_82 [1] : vector<8x16xf32> to vector<8xf32>
    %249 = vector.shape_cast %248 : vector<8xf32> to vector<8x1xf32>
    %250 = vector.broadcast %249 : vector<8x1xf32> to vector<8x16xf32>
    %251 = arith.subf %247, %250 : vector<8x16xf32>
    %252 = math.exp %251 : vector<8x16xf32>
    %cst_83 = arith.constant dense<0.000000e+00> : vector<8xf32>
    %253 = vector.multi_reduction <add>, %252, %cst_83 [1] : vector<8x16xf32> to vector<8xf32>
    %254 = vector.shape_cast %253 : vector<8xf32> to vector<8x1xf32>
    %255 = tpu.reciprocal %254 {approx = true} : vector<8x1xf32> -> vector<8x1xf32>
    %256 = vector.broadcast %255 : vector<8x1xf32> to vector<8x16xf32>
    %257 = arith.mulf %252, %256 : vector<8x16xf32>
    %258 = arith.truncf %257 : vector<8x16xf32> to vector<8x16xbf16>
    %cst_84 = arith.constant dense<0.000000e+00> : vector<8x8xf32>
    %259 = tpu.matmul %258, %244, %cst_84 {dimension_numbers = #tpu.dot_dimension_numbers<[1], [0], [0], [1], [0, 0, 1, 1], [], []>} : vector<8x16xbf16>, vector<16x8xbf16>, vector<8x8xf32> -> vector<8x8xf32>
    %260 = arith.truncf %259 : vector<8x8xf32> to vector<8x8xbf16>
    %261 = vector.extract_strided_slice %162 {offsets = [24, 0], sizes = [8, 32], strides = [1, 1]} : vector<32x32xbf16> to vector<8x32xbf16>
    %cst_85 = arith.constant dense<0.000000e+00> : vector<8x32xf32>
    %262 = tpu.matmul %260, %261, %cst_85 {dimension_numbers = #tpu.dot_dimension_numbers<[1], [0], [0], [1], [0, 0, 1, 1], [], []>} : vector<8x8xbf16>, vector<8x32xbf16>, vector<8x32xf32> -> vector<8x32xf32>
    %263 = arith.addf %238, %262 : vector<8x32xf32>
    %264 = arith.addf %147, %263 : vector<8x32xf32>
    %c0_86 = arith.constant 0 : index
    %c0_87 = arith.constant 0 : index
    %265 = vector.load %arg15[%c0_86, %c0_87] : memref<1x32xf32, #tpu.memory_space<vmem>>, vector<1x32xf32>
    %266 = vector.broadcast %265 : vector<1x32xf32> to vector<8x32xf32>
    %267 = arith.addf %264, %266 : vector<8x32xf32>
    %c0_88 = arith.constant 0 : index
    %c0_89 = arith.constant 0 : index
    %268 = vector.load %arg16[%c0_88, %c0_89] : memref<1x32xf32, #tpu.memory_space<vmem>>, vector<1x32xf32>
    %c0_90 = arith.constant 0 : index
    %c0_91 = arith.constant 0 : index
    %269 = vector.load %arg17[%c0_90, %c0_91] : memref<1x32xf32, #tpu.memory_space<vmem>>, vector<1x32xf32>
    %cst_92 = arith.constant dense<0.000000e+00> : vector<8xf32>
    %270 = vector.multi_reduction <add>, %267, %cst_92 [1] : vector<8x32xf32> to vector<8xf32>
    %271 = vector.shape_cast %270 : vector<8xf32> to vector<8x1xf32>
    %cst_93 = arith.constant 3.200000e+01 : f32
    %272 = vector.broadcast %cst_93 : f32 to vector<8x1xf32>
    %273 = arith.divf %271, %272 : vector<8x1xf32>
    %274 = vector.broadcast %273 : vector<8x1xf32> to vector<8x32xf32>
    %275 = arith.subf %267, %274 : vector<8x32xf32>
    %276 = arith.mulf %275, %275 : vector<8x32xf32>
    %cst_94 = arith.constant dense<0.000000e+00> : vector<8xf32>
    %277 = vector.multi_reduction <add>, %276, %cst_94 [1] : vector<8x32xf32> to vector<8xf32>
    %278 = vector.shape_cast %277 : vector<8xf32> to vector<8x1xf32>
    %cst_95 = arith.constant 3.200000e+01 : f32
    %279 = vector.broadcast %cst_95 : f32 to vector<8x1xf32>
    %280 = arith.divf %278, %279 : vector<8x1xf32>
    %281 = vector.broadcast %273 : vector<8x1xf32> to vector<8x32xf32>
    %282 = arith.subf %267, %281 : vector<8x32xf32>
    %cst_96 = arith.constant 9.99999974E-6 : f32
    %283 = vector.broadcast %cst_96 : f32 to vector<8x1xf32>
    %284 = arith.addf %280, %283 : vector<8x1xf32>
    %285 = math.rsqrt %284 : vector<8x1xf32>
    %286 = vector.broadcast %285 : vector<8x1xf32> to vector<8x32xf32>
    %287 = arith.mulf %282, %286 : vector<8x32xf32>
    %288 = vector.broadcast %268 : vector<1x32xf32> to vector<8x32xf32>
    %289 = arith.mulf %287, %288 : vector<8x32xf32>
    %290 = vector.broadcast %269 : vector<1x32xf32> to vector<8x32xf32>
    %291 = arith.addf %289, %290 : vector<8x32xf32>
    %292 = arith.truncf %291 : vector<8x32xf32> to vector<8x32xbf16>
    %c0_97 = arith.constant 0 : index
    %c0_98 = arith.constant 0 : index
    %293 = vector.load %arg18[%c0_97, %c0_98] : memref<32x64xbf16, #tpu.memory_space<vmem>>, vector<32x64xbf16>
    %cst_99 = arith.constant dense<0.000000e+00> : vector<8x64xf32>
    %294 = tpu.matmul %292, %293, %cst_99 {dimension_numbers = #tpu.dot_dimension_numbers<[1], [0], [0], [1], [0, 0, 1, 1], [], []>} : vector<8x32xbf16>, vector<32x64xbf16>, vector<8x64xf32> -> vector<8x64xf32>
    %c0_100 = arith.constant 0 : index
    %c0_101 = arith.constant 0 : index
    %295 = vector.load %arg19[%c0_100, %c0_101] : memref<1x64xf32, #tpu.memory_space<vmem>>, vector<1x64xf32>
    %296 = vector.broadcast %295 : vector<1x64xf32> to vector<8x64xf32>
    %297 = arith.addf %294, %296 : vector<8x64xf32>
    %cst_102 = arith.constant 0.000000e+00 : f32
    %298 = vector.broadcast %cst_102 : f32 to vector<8x64xf32>
    %299 = arith.maximumf %297, %298 : vector<8x64xf32>
    %300 = arith.truncf %299 : vector<8x64xf32> to vector<8x64xbf16>
    %c0_103 = arith.constant 0 : index
    %c0_104 = arith.constant 0 : index
    %301 = vector.load %arg20[%c0_103, %c0_104] : memref<64x32xbf16, #tpu.memory_space<vmem>>, vector<64x32xbf16>
    %cst_105 = arith.constant dense<0.000000e+00> : vector<8x32xf32>
    %302 = tpu.matmul %300, %301, %cst_105 {dimension_numbers = #tpu.dot_dimension_numbers<[1], [0], [0], [1], [0, 0, 1, 1], [], []>} : vector<8x64xbf16>, vector<64x32xbf16>, vector<8x32xf32> -> vector<8x32xf32>
    %c0_106 = arith.constant 0 : index
    %c0_107 = arith.constant 0 : index
    %303 = vector.load %arg21[%c0_106, %c0_107] : memref<1x32xf32, #tpu.memory_space<vmem>>, vector<1x32xf32>
    %304 = vector.broadcast %303 : vector<1x32xf32> to vector<8x32xf32>
    %305 = arith.addf %302, %304 : vector<8x32xf32>
    %306 = arith.addf %291, %305 : vector<8x32xf32>
    %c0_108 = arith.constant 0 : index
    %c0_109 = arith.constant 0 : index
    %307 = vector.load %arg22[%c0_108, %c0_109] : memref<1x32xf32, #tpu.memory_space<vmem>>, vector<1x32xf32>
    %c0_110 = arith.constant 0 : index
    %c0_111 = arith.constant 0 : index
    %308 = vector.load %arg23[%c0_110, %c0_111] : memref<1x32xf32, #tpu.memory_space<vmem>>, vector<1x32xf32>
    %cst_112 = arith.constant dense<0.000000e+00> : vector<8xf32>
    %309 = vector.multi_reduction <add>, %306, %cst_112 [1] : vector<8x32xf32> to vector<8xf32>
    %310 = vector.shape_cast %309 : vector<8xf32> to vector<8x1xf32>
    %cst_113 = arith.constant 3.200000e+01 : f32
    %311 = vector.broadcast %cst_113 : f32 to vector<8x1xf32>
    %312 = arith.divf %310, %311 : vector<8x1xf32>
    %313 = vector.broadcast %312 : vector<8x1xf32> to vector<8x32xf32>
    %314 = arith.subf %306, %313 : vector<8x32xf32>
    %315 = arith.mulf %314, %314 : vector<8x32xf32>
    %cst_114 = arith.constant dense<0.000000e+00> : vector<8xf32>
    %316 = vector.multi_reduction <add>, %315, %cst_114 [1] : vector<8x32xf32> to vector<8xf32>
    %317 = vector.shape_cast %316 : vector<8xf32> to vector<8x1xf32>
    %cst_115 = arith.constant 3.200000e+01 : f32
    %318 = vector.broadcast %cst_115 : f32 to vector<8x1xf32>
    %319 = arith.divf %317, %318 : vector<8x1xf32>
    %320 = vector.broadcast %312 : vector<8x1xf32> to vector<8x32xf32>
    %321 = arith.subf %306, %320 : vector<8x32xf32>
    %cst_116 = arith.constant 9.99999974E-6 : f32
    %322 = vector.broadcast %cst_116 : f32 to vector<8x1xf32>
    %323 = arith.addf %319, %322 : vector<8x1xf32>
    %324 = math.rsqrt %323 : vector<8x1xf32>
    %325 = vector.broadcast %324 : vector<8x1xf32> to vector<8x32xf32>
    %326 = arith.mulf %321, %325 : vector<8x32xf32>
    %327 = vector.broadcast %307 : vector<1x32xf32> to vector<8x32xf32>
    %328 = arith.mulf %326, %327 : vector<8x32xf32>
    %329 = vector.broadcast %308 : vector<1x32xf32> to vector<8x32xf32>
    %330 = arith.addf %328, %329 : vector<8x32xf32>
    %c0_117 = arith.constant 0 : index
    %c0_118 = arith.constant 0 : index
    %c0_119 = arith.constant 0 : index
    %331 = vector.load %arg24[%c0_117, %c0_118, %c0_119] : memref<1x8x32xf32, #tpu.memory_space<vmem>>, vector<1x8x32xf32>
    %332 = vector.shape_cast %331 : vector<1x8x32xf32> to vector<8x32xf32>
    %333 = vector.shape_cast %330 : vector<8x32xf32> to vector<1x8x32xf32>
    tpu.vector_store %arg24[%c0_117, %c0_118, %c0_119], %333 {strides = array<i32>} : memref<1x8x32xf32, #tpu.memory_space<vmem>>, vector<1x8x32xf32>,
    return
  }
  func.func @transform_0(%arg0: i32) -> (i32, i32, i32) {
    %c0_i32 = arith.constant 0 : i32
    %c0_i32_0 = arith.constant 0 : i32
    %c0_i32_1 = arith.constant 0 : i32
    return %arg0, %c0_i32, %c0_i32_0 : i32, i32, i32
  }
  func.func @transform_1(%arg0: i32) -> (i32, i32, i32) {
    %c0_i32 = arith.constant 0 : i32
    %c0_i32_0 = arith.constant 0 : i32
    %c0_i32_1 = arith.constant 0 : i32
    return %arg0, %c0_i32, %c0_i32_0 : i32, i32, i32
  }
  func.func @transform_2(%arg0: i32) -> (i32, i32) {
    %c0_i32 = arith.constant 0 : i32
    %c0_i32_0 = arith.constant 0 : i32
    %c0_i32_1 = arith.constant 0 : i32
    return %c0_i32, %c0_i32_0 : i32, i32
  }
  func.func @transform_3(%arg0: i32) -> (i32, i32) {
    %c0_i32 = arith.constant 0 : i32
    %c0_i32_0 = arith.constant 0 : i32
    %c0_i32_1 = arith.constant 0 : i32
    return %c0_i32, %c0_i32_0 : i32, i32
  }
  func.func @transform_4(%arg0: i32) -> (i32, i32) {
    %c0_i32 = arith.constant 0 : i32
    %c0_i32_0 = arith.constant 0 : i32
    %c0_i32_1 = arith.constant 0 : i32
    return %c0_i32, %c0_i32_0 : i32, i32
  }
  func.func @transform_5(%arg0: i32) -> (i32, i32) {
    %c0_i32 = arith.constant 0 : i32
    %c0_i32_0 = arith.constant 0 : i32
    %c0_i32_1 = arith.constant 0 : i32
    return %c0_i32, %c0_i32_0 : i32, i32
  }
  func.func @transform_6(%arg0: i32) -> (i32, i32) {
    %c0_i32 = arith.constant 0 : i32
    %c0_i32_0 = arith.constant 0 : i32
    %c0_i32_1 = arith.constant 0 : i32
    return %c0_i32, %c0_i32_0 : i32, i32
  }
  func.func @transform_7(%arg0: i32) -> (i32, i32) {
    %c0_i32 = arith.constant 0 : i32
    %c0_i32_0 = arith.constant 0 : i32
    %c0_i32_1 = arith.constant 0 : i32
    return %c0_i32, %c0_i32_0 : i32, i32
  }
  func.func @transform_8(%arg0: i32) -> (i32, i32) {
    %c0_i32 = arith.constant 0 : i32
    %c0_i32_0 = arith.constant 0 : i32
    %c0_i32_1 = arith.constant 0 : i32
    return %c0_i32, %c0_i32_0 : i32, i32
  }
  func.func @transform_9(%arg0: i32) -> (i32, i32) {
    %c0_i32 = arith.constant 0 : i32
    %c0_i32_0 = arith.constant 0 : i32
    %c0_i32_1 = arith.constant 0 : i32
    return %c0_i32, %c0_i32_0 : i32, i32
  }
  func.func @transform_10(%arg0: i32) -> (i32, i32) {
    %c0_i32 = arith.constant 0 : i32
    %c0_i32_0 = arith.constant 0 : i32
    %c0_i32_1 = arith.constant 0 : i32
    return %c0_i32, %c0_i32_0 : i32, i32
  }
  func.func @transform_11(%arg0: i32) -> (i32, i32) {
    %c0_i32 = arith.constant 0 : i32
    %c0_i32_0 = arith.constant 0 : i32
    %c0_i32_1 = arith.constant 0 : i32
    return %c0_i32, %c0_i32_0 : i32, i32
  }
  func.func @transform_12(%arg0: i32) -> (i32, i32) {
    %c0_i32 = arith.constant 0 : i32
    %c0_i32_0 = arith.constant 0 : i32
    %c0_i32_1 = arith.constant 0 : i32
    return %c0_i32, %c0_i32_0 : i32, i32
  }
  func.func @transform_13(%arg0: i32) -> (i32, i32) {
    %c0_i32 = arith.constant 0 : i32
    %c0_i32_0 = arith.constant 0 : i32
    %c0_i32_1 = arith.constant 0 : i32
    return %c0_i32, %c0_i32_0 : i32, i32
  }
  func.func @transform_14(%arg0: i32) -> (i32, i32) {
    %c0_i32 = arith.constant 0 : i32
    %c0_i32_0 = arith.constant 0 : i32
    %c0_i32_1 = arith.constant 0 : i32
    return %c0_i32, %c0_i32_0 : i32, i32
  }
  func.func @transform_15(%arg0: i32) -> (i32, i32) {
    %c0_i32 = arith.constant 0 : i32
    %c0_i32_0 = arith.constant 0 : i32
    %c0_i32_1 = arith.constant 0 : i32
    return %c0_i32, %c0_i32_0 : i32, i32
  }
  func.func @transform_16(%arg0: i32) -> (i32, i32) {
    %c0_i32 = arith.constant 0 : i32
    %c0_i32_0 = arith.constant 0 : i32
    %c0_i32_1 = arith.constant 0 : i32
    return %c0_i32, %c0_i32_0 : i32, i32
  }
  func.func @transform_17(%arg0: i32) -> (i32, i32) {
    %c0_i32 = arith.constant 0 : i32
    %c0_i32_0 = arith.constant 0 : i32
    %c0_i32_1 = arith.constant 0 : i32
    return %c0_i32, %c0_i32_0 : i32, i32
  }
  func.func @transform_18(%arg0: i32) -> (i32, i32) {
    %c0_i32 = arith.constant 0 : i32
    %c0_i32_0 = arith.constant 0 : i32
    %c0_i32_1 = arith.constant 0 : i32
    return %c0_i32, %c0_i32_0 : i32, i32
  }
  func.func @transform_19(%arg0: i32) -> (i32, i32) {
    %c0_i32 = arith.constant 0 : i32
    %c0_i32_0 = arith.constant 0 : i32
    %c0_i32_1 = arith.constant 0 : i32
    return %c0_i32, %c0_i32_0 : i32, i32
  }
  func.func @transform_20(%arg0: i32) -> (i32, i32) {
    %c0_i32 = arith.constant 0 : i32
    %c0_i32_0 = arith.constant 0 : i32
    %c0_i32_1 = arith.constant 0 : i32
    return %c0_i32, %c0_i32_0 : i32, i32
  }
  func.func @transform_21(%arg0: i32) -> (i32, i32) {
    %c0_i32 = arith.constant 0 : i32
    %c0_i32_0 = arith.constant 0 : i32
    %c0_i32_1 = arith.constant 0 : i32
    return %c0_i32, %c0_i32_0 : i32, i32
  }
  func.func @transform_22(%arg0: i32) -> (i32, i32) {
    %c0_i32 = arith.constant 0 : i32
    %c0_i32_0 = arith.constant 0 : i32
    %c0_i32_1 = arith.constant 0 : i32
    return %c0_i32, %c0_i32_0 : i32, i32
  }
  func.func @transform_23(%arg0: i32) -> (i32, i32, i32) {
    %c0_i32 = arith.constant 0 : i32
    %c0_i32_0 = arith.constant 0 : i32
    %c0_i32_1 = arith.constant 0 : i32
    return %arg0, %c0_i32, %c0_i32_0 : i32, i32, i32
  }
}

module attributes {stable_mosaic.version = 11 : i64} {
  func.func @_decoder_layer_kernel(%arg0: i32, %arg1: memref<1x8x32xf32, #tpu.memory_space<vmem>>, %arg2: memref<1x16x32xf32, #tpu.memory_space<vmem>>, %arg3: memref<8x8xf32, #tpu.memory_space<vmem>>, %arg4: memref<32x96xbf16, #tpu.memory_space<vmem>>, %arg5: memref<1x96xf32, #tpu.memory_space<vmem>>, %arg6: memref<32x32xbf16, #tpu.memory_space<vmem>>, %arg7: memref<1x32xf32, #tpu.memory_space<vmem>>, %arg8: memref<1x32xf32, #tpu.memory_space<vmem>>, %arg9: memref<1x32xf32, #tpu.memory_space<vmem>>, %arg10: memref<32x32xbf16, #tpu.memory_space<vmem>>, %arg11: memref<1x32xf32, #tpu.memory_space<vmem>>, %arg12: memref<32x64xbf16, #tpu.memory_space<vmem>>, %arg13: memref<1x64xf32, #tpu.memory_space<vmem>>, %arg14: memref<32x32xbf16, #tpu.memory_space<vmem>>, %arg15: memref<1x32xf32, #tpu.memory_space<vmem>>, %arg16: memref<1x32xf32, #tpu.memory_space<vmem>>, %arg17: memref<1x32xf32, #tpu.memory_space<vmem>>, %arg18: memref<32x64xbf16, #tpu.memory_space<vmem>>, %arg19: memref<1x64xf32, #tpu.memory_space<vmem>>, %arg20: memref<64x32xbf16, #tpu.memory_space<vmem>>, %arg21: memref<1x32xf32, #tpu.memory_space<vmem>>, %arg22: memref<1x32xf32, #tpu.memory_space<vmem>>, %arg23: memref<1x32xf32, #tpu.memory_space<vmem>>, %arg24: memref<1x8x32xf32, #tpu.memory_space<vmem>>) attributes {dimension_semantics = [#tpu.dimension_semantics<parallel>], iteration_bounds = array<i64: 2>, scalar_prefetch = 0 : i64, scratch_operands = 0 : i64, tpu.core_type = #tpu.core_type<tc>, window_params = [{transform_indices = @transform_0, window_bounds = array<i64: 1, 8, 32>}, {transform_indices = @transform_1, window_bounds = array<i64: 1, 16, 32>}, {pipeline_mode = #tpu.pipeline_mode<synchronous>, transform_indices = @transform_2, window_bounds = array<i64: 8, 8>}, {pipeline_mode = #tpu.pipeline_mode<synchronous>, transform_indices = @transform_3, window_bounds = array<i64: 32, 96>}, {pipeline_mode = #tpu.pipeline_mode<synchronous>, transform_indices = @transform_4, window_bounds = array<i64: 1, 96>}, {pipeline_mode = #tpu.pipeline_mode<synchronous>, transform_indices = @transform_5, window_bounds = array<i64: 32, 32>}, {pipeline_mode = #tpu.pipeline_mode<synchronous>, transform_indices = @transform_6, window_bounds = array<i64: 1, 32>}, {pipeline_mode = #tpu.pipeline_mode<synchronous>, transform_indices = @transform_7, window_bounds = array<i64: 1, 32>}, {pipeline_mode = #tpu.pipeline_mode<synchronous>, transform_indices = @transform_8, window_bounds = array<i64: 1, 32>}, {pipeline_mode = #tpu.pipeline_mode<synchronous>, transform_indices = @transform_9, window_bounds = array<i64: 32, 32>}, {pipeline_mode = #tpu.pipeline_mode<synchronous>, transform_indices = @transform_10, window_bounds = array<i64: 1, 32>}, {pipeline_mode = #tpu.pipeline_mode<synchronous>, transform_indices = @transform_11, window_bounds = array<i64: 32, 64>}, {pipeline_mode = #tpu.pipeline_mode<synchronous>, transform_indices = @transform_12, window_bounds = array<i64: 1, 64>}, {pipeline_mode = #tpu.pipeline_mode<synchronous>, transform_indices = @transform_13, window_bounds = array<i64: 32, 32>}, {pipeline_mode = #tpu.pipeline_mode<synchronous>, transform_indices = @transform_14, window_bounds = array<i64: 1, 32>}, {pipeline_mode = #tpu.pipeline_mode<synchronous>, transform_indices = @transform_15, window_bounds = array<i64: 1, 32>}, {pipeline_mode = #tpu.pipeline_mode<synchronous>, transform_indices = @transform_16, window_bounds = array<i64: 1, 32>}, {pipeline_mode = #tpu.pipeline_mode<synchronous>, transform_indices = @transform_17, window_bounds = array<i64: 32, 64>}, {pipeline_mode = #tpu.pipeline_mode<synchronous>, transform_indices = @transform_18, window_bounds = array<i64: 1, 64>}, {pipeline_mode = #tpu.pipeline_mode<synchronous>, transform_indices = @transform_19, window_bounds = array<i64: 64, 32>}, {pipeline_mode = #tpu.pipeline_mode<synchronous>, transform_indices = @transform_20, window_bounds = array<i64: 1, 32>}, {pipeline_mode = #tpu.pipeline_mode<synchronous>, transform_indices = @transform_21, window_bounds = array<i64: 1, 32>}, {pipeline_mode = #tpu.pipeline_mode<synchronous>, transform_indices = @transform_22, window_bounds = array<i64: 1, 32>}, {transform_indices = @transform_23, window_bounds = array<i64: 1, 8, 32>}]} {
    %c0 = arith.constant 0 : index
    %c0_0 = arith.constant 0 : index
    %c0_1 = arith.constant 0 : index
    %0 = vector.load %arg1[%c0, %c0_0, %c0_1] : memref<1x8x32xf32, #tpu.memory_space<vmem>>, vector<1x8x32xf32>
    %1 = vector.shape_cast %0 : vector<1x8x32xf32> to vector<8x32xf32>
    %c0_2 = arith.constant 0 : index
    %c0_3 = arith.constant 0 : index
    %c0_4 = arith.constant 0 : index
    %2 = vector.load %arg2[%c0_2, %c0_3, %c0_4] : memref<1x16x32xf32, #tpu.memory_space<vmem>>, vector<1x16x32xf32>
    %3 = vector.shape_cast %2 : vector<1x16x32xf32> to vector<16x32xf32>
    %c0_5 = arith.constant 0 : index
    %c0_6 = arith.constant 0 : index
    %4 = vector.load %arg3[%c0_5, %c0_6] : memref<8x8xf32, #tpu.memory_space<vmem>>, vector<8x8xf32>
    %5 = arith.truncf %1 : vector<8x32xf32> to vector<8x32xbf16>
    %c0_7 = arith.constant 0 : index
    %c0_8 = arith.constant 0 : index
    %6 = vector.load %arg4[%c0_7, %c0_8] : memref<32x96xbf16, #tpu.memory_space<vmem>>, vector<32x96xbf16>
    %cst = arith.constant dense<0.000000e+00> : vector<8x96xf32>
    %7 = tpu.matmul %5, %6, %cst {dimension_numbers = #tpu.dot_dimension_numbers<[1], [0], [0], [1], [0, 0, 1, 1], [], []>} : vector<8x32xbf16>, vector<32x96xbf16>, vector<8x96xf32> -> vector<8x96xf32>
    %c0_9 = arith.constant 0 : index
    %c0_10 = arith.constant 0 : index
    %8 = vector.load %arg5[%c0_9, %c0_10] : memref<1x96xf32, #tpu.memory_space<vmem>>, vector<1x96xf32>
    %9 = vector.broadcast %8 : vector<1x96xf32> to vector<8x96xf32>
    %10 = arith.addf %7, %9 : vector<8x96xf32>
    %11 = vector.extract_strided_slice %10 {offsets = [0, 0], sizes = [8, 32], strides = [1, 1]} : vector<8x96xf32> to vector<8x32xf32>
    %12 = vector.extract_strided_slice %10 {offsets = [0, 32], sizes = [8, 32], strides = [1, 1]} : vector<8x96xf32> to vector<8x32xf32>
    %13 = vector.extract_strided_slice %10 {offsets = [0, 64], sizes = [8, 32], strides = [1, 1]} : vector<8x96xf32> to vector<8x32xf32>
    %c0_11 = arith.constant 0 : index
    %c0_12 = arith.constant 0 : index
    %14 = vector.load %arg6[%c0_11, %c0_12] : memref<32x32xbf16, #tpu.memory_space<vmem>>, vector<32x32xbf16>
    %cst_13 = arith.constant 0.000000e+00 : f32
    %15 = vector.broadcast %cst_13 : f32 to vector<8x32xf32>
    %16 = vector.extract_strided_slice %11 {offsets = [0, 0], sizes = [8, 8], strides = [1, 1]} : vector<8x32xf32> to vector<8x8xf32>
    %17 = arith.truncf %16 : vector<8x8xf32> to vector<8x8xbf16>
    %18 = vector.extract_strided_slice %12 {offsets = [0, 0], sizes = [8, 8], strides = [1, 1]} : vector<8x32xf32> to vector<8x8xf32>
    %19 = arith.truncf %18 : vector<8x8xf32> to vector<8x8xbf16>
    %20 = vector.extract_strided_slice %13 {offsets = [0, 0], sizes = [8, 8], strides = [1, 1]} : vector<8x32xf32> to vector<8x8xf32>
    %21 = arith.truncf %20 : vector<8x8xf32> to vector<8x8xbf16>
    %cst_14 = arith.constant dense<0.000000e+00> : vector<8x8xf32>
    %22 = tpu.matmul %17, %19, %cst_14 {dimension_numbers = #tpu.dot_dimension_numbers<[1], [1], [0], [0], [0, 0, 1, 0], [], []>} : vector<8x8xbf16>, vector<8x8xbf16>, vector<8x8xf32> -> vector<8x8xf32>
    %cst_15 = arith.constant 0.353553385 : f32
    %23 = vector.broadcast %cst_15 : f32 to vector<8x8xf32>
    %24 = arith.mulf %22, %23 : vector<8x8xf32>
    %25 = arith.addf %24, %4 : vector<8x8xf32>
    %cst_16 = arith.constant dense<0xFF800000> : vector<8xf32>
    %26 = vector.multi_reduction <maximumf>, %25, %cst_16 [1] : vector<8x8xf32> to vector<8xf32>
    %27 = vector.shape_cast %26 : vector<8xf32> to vector<8x1xf32>
    %28 = vector.broadcast %27 : vector<8x1xf32> to vector<8x8xf32>
    %29 = arith.subf %25, %28 : vector<8x8xf32>
    %30 = math.exp %29 : vector<8x8xf32>
    %cst_17 = arith.constant dense<0.000000e+00> : vector<8xf32>
    %31 = vector.multi_reduction <add>, %30, %cst_17 [1] : vector<8x8xf32> to vector<8xf32>
    %32 = vector.shape_cast %31 : vector<8xf32> to vector<8x1xf32>
    %33 = tpu.reciprocal %32 {approx = true} : vector<8x1xf32> -> vector<8x1xf32>
    %34 = vector.broadcast %33 : vector<8x1xf32> to vector<8x8xf32>
    %35 = arith.mulf %30, %34 : vector<8x8xf32>
    %36 = arith.truncf %35 : vector<8x8xf32> to vector<8x8xbf16>
    %cst_18 = arith.constant dense<0.000000e+00> : vector<8x8xf32>
    %37 = tpu.matmul %36, %21, %cst_18 {dimension_numbers = #tpu.dot_dimension_numbers<[1], [0], [0], [1], [0, 0, 1, 1], [], []>} : vector<8x8xbf16>, vector<8x8xbf16>, vector<8x8xf32> -> vector<8x8xf32>
    %38 = arith.truncf %37 : vector<8x8xf32> to vector<8x8xbf16>
    %39 = vector.extract_strided_slice %14 {offsets = [0, 0], sizes = [8, 32], strides = [1, 1]} : vector<32x32xbf16> to vector<8x32xbf16>
    %cst_19 = arith.constant dense<0.000000e+00> : vector<8x32xf32>
    %40 = tpu.matmul %38, %39, %cst_19 {dimension_numbers = #tpu.dot_dimension_numbers<[1], [0], [0], [1], [0, 0, 1, 1], [], []>} : vector<8x8xbf16>, vector<8x32xbf16>, vector<8x32xf32> -> vector<8x32xf32>
    %41 = arith.addf %15, %40 : vector<8x32xf32>
    %42 = vector.extract_strided_slice %11 {offsets = [0, 8], sizes = [8, 8], strides = [1, 1]} : vector<8x32xf32> to vector<8x8xf32>
    %43 = arith.truncf %42 : vector<8x8xf32> to vector<8x8xbf16>
    %44 = vector.extract_strided_slice %12 {offsets = [0, 8], sizes = [8, 8], strides = [1, 1]} : vector<8x32xf32> to vector<8x8xf32>
    %45 = arith.truncf %44 : vector<8x8xf32> to vector<8x8xbf16>
    %46 = vector.extract_strided_slice %13 {offsets = [0, 8], sizes = [8, 8], strides = [1, 1]} : vector<8x32xf32> to vector<8x8xf32>
    %47 = arith.truncf %46 : vector<8x8xf32> to vector<8x8xbf16>
    %cst_20 = arith.constant dense<0.000000e+00> : vector<8x8xf32>
    %48 = tpu.matmul %43, %45, %cst_20 {dimension_numbers = #tpu.dot_dimension_numbers<[1], [1], [0], [0], [0, 0, 1, 0], [], []>} : vector<8x8xbf16>, vector<8x8xbf16>, vector<8x8xf32> -> vector<8x8xf32>
    %cst_21 = arith.constant 0.353553385 : f32
    %49 = vector.broadcast %cst_21 : f32 to vector<8x8xf32>
    %50 = arith.mulf %48, %49 : vector<8x8xf32>
    %51 = arith.addf %50, %4 : vector<8x8xf32>
    %cst_22 = arith.constant dense<0xFF800000> : vector<8xf32>
    %52 = vector.multi_reduction <maximumf>, %51, %cst_22 [1] : vector<8x8xf32> to vector<8xf32>
    %53 = vector.shape_cast %52 : vector<8xf32> to vector<8x1xf32>
    %54 = vector.broadcast %53 : vector<8x1xf32> to vector<8x8xf32>
    %55 = arith.subf %51, %54 : vector<8x8xf32>
    %56 = math.exp %55 : vector<8x8xf32>
    %cst_23 = arith.constant dense<0.000000e+00> : vector<8xf32>
    %57 = vector.multi_reduction <add>, %56, %cst_23 [1] : vector<8x8xf32> to vector<8xf32>
    %58 = vector.shape_cast %57 : vector<8xf32> to vector<8x1xf32>
    %59 = tpu.reciprocal %58 {approx = true} : vector<8x1xf32> -> vector<8x1xf32>
    %60 = vector.broadcast %59 : vector<8x1xf32> to vector<8x8xf32>
    %61 = arith.mulf %56, %60 : vector<8x8xf32>
    %62 = arith.truncf %61 : vector<8x8xf32> to vector<8x8xbf16>
    %cst_24 = arith.constant dense<0.000000e+00> : vector<8x8xf32>
    %63 = tpu.matmul %62, %47, %cst_24 {dimension_numbers = #tpu.dot_dimension_numbers<[1], [0], [0], [1], [0, 0, 1, 1], [], []>} : vector<8x8xbf16>, vector<8x8xbf16>, vector<8x8xf32> -> vector<8x8xf32>
    %64 = arith.truncf %63 : vector<8x8xf32> to vector<8x8xbf16>
    %65 = vector.extract_strided_slice %14 {offsets = [8, 0], sizes = [8, 32], strides = [1, 1]} : vector<32x32xbf16> to vector<8x32xbf16>
    %cst_25 = arith.constant dense<0.000000e+00> : vector<8x32xf32>
    %66 = tpu.matmul %64, %65, %cst_25 {dimension_numbers = #tpu.dot_dimension_numbers<[1], [0], [0], [1], [0, 0, 1, 1], [], []>} : vector<8x8xbf16>, vector<8x32xbf16>, vector<8x32xf32> -> vector<8x32xf32>
    %67 = arith.addf %41, %66 : vector<8x32xf32>
    %68 = vector.extract_strided_slice %11 {offsets = [0, 16], sizes = [8, 8], strides = [1, 1]} : vector<8x32xf32> to vector<8x8xf32>
    %69 = arith.truncf %68 : vector<8x8xf32> to vector<8x8xbf16>
    %70 = vector.extract_strided_slice %12 {offsets = [0, 16], sizes = [8, 8], strides = [1, 1]} : vector<8x32xf32> to vector<8x8xf32>
    %71 = arith.truncf %70 : vector<8x8xf32> to vector<8x8xbf16>
    %72 = vector.extract_strided_slice %13 {offsets = [0, 16], sizes = [8, 8], strides = [1, 1]} : vector<8x32xf32> to vector<8x8xf32>
    %73 = arith.truncf %72 : vector<8x8xf32> to vector<8x8xbf16>
    %cst_26 = arith.constant dense<0.000000e+00> : vector<8x8xf32>
    %74 = tpu.matmul %69, %71, %cst_26 {dimension_numbers = #tpu.dot_dimension_numbers<[1], [1], [0], [0], [0, 0, 1, 0], [], []>} : vector<8x8xbf16>, vector<8x8xbf16>, vector<8x8xf32> -> vector<8x8xf32>
    %cst_27 = arith.constant 0.353553385 : f32
    %75 = vector.broadcast %cst_27 : f32 to vector<8x8xf32>
    %76 = arith.mulf %74, %75 : vector<8x8xf32>
    %77 = arith.addf %76, %4 : vector<8x8xf32>
    %cst_28 = arith.constant dense<0xFF800000> : vector<8xf32>
    %78 = vector.multi_reduction <maximumf>, %77, %cst_28 [1] : vector<8x8xf32> to vector<8xf32>
    %79 = vector.shape_cast %78 : vector<8xf32> to vector<8x1xf32>
    %80 = vector.broadcast %79 : vector<8x1xf32> to vector<8x8xf32>
    %81 = arith.subf %77, %80 : vector<8x8xf32>
    %82 = math.exp %81 : vector<8x8xf32>
    %cst_29 = arith.constant dense<0.000000e+00> : vector<8xf32>
    %83 = vector.multi_reduction <add>, %82, %cst_29 [1] : vector<8x8xf32> to vector<8xf32>
    %84 = vector.shape_cast %83 : vector<8xf32> to vector<8x1xf32>
    %85 = tpu.reciprocal %84 {approx = true} : vector<8x1xf32> -> vector<8x1xf32>
    %86 = vector.broadcast %85 : vector<8x1xf32> to vector<8x8xf32>
    %87 = arith.mulf %82, %86 : vector<8x8xf32>
    %88 = arith.truncf %87 : vector<8x8xf32> to vector<8x8xbf16>
    %cst_30 = arith.constant dense<0.000000e+00> : vector<8x8xf32>
    %89 = tpu.matmul %88, %73, %cst_30 {dimension_numbers = #tpu.dot_dimension_numbers<[1], [0], [0], [1], [0, 0, 1, 1], [], []>} : vector<8x8xbf16>, vector<8x8xbf16>, vector<8x8xf32> -> vector<8x8xf32>
    %90 = arith.truncf %89 : vector<8x8xf32> to vector<8x8xbf16>
    %91 = vector.extract_strided_slice %14 {offsets = [16, 0], sizes = [8, 32], strides = [1, 1]} : vector<32x32xbf16> to vector<8x32xbf16>
    %cst_31 = arith.constant dense<0.000000e+00> : vector<8x32xf32>
    %92 = tpu.matmul %90, %91, %cst_31 {dimension_numbers = #tpu.dot_dimension_numbers<[1], [0], [0], [1], [0, 0, 1, 1], [], []>} : vector<8x8xbf16>, vector<8x32xbf16>, vector<8x32xf32> -> vector<8x32xf32>
    %93 = arith.addf %67, %92 : vector<8x32xf32>
    %94 = vector.extract_strided_slice %11 {offsets = [0, 24], sizes = [8, 8], strides = [1, 1]} : vector<8x32xf32> to vector<8x8xf32>
    %95 = arith.truncf %94 : vector<8x8xf32> to vector<8x8xbf16>
    %96 = vector.extract_strided_slice %12 {offsets = [0, 24], sizes = [8, 8], strides = [1, 1]} : vector<8x32xf32> to vector<8x8xf32>
    %97 = arith.truncf %96 : vector<8x8xf32> to vector<8x8xbf16>
    %98 = vector.extract_strided_slice %13 {offsets = [0, 24], sizes = [8, 8], strides = [1, 1]} : vector<8x32xf32> to vector<8x8xf32>
    %99 = arith.truncf %98 : vector<8x8xf32> to vector<8x8xbf16>
    %cst_32 = arith.constant dense<0.000000e+00> : vector<8x8xf32>
    %100 = tpu.matmul %95, %97, %cst_32 {dimension_numbers = #tpu.dot_dimension_numbers<[1], [1], [0], [0], [0, 0, 1, 0], [], []>} : vector<8x8xbf16>, vector<8x8xbf16>, vector<8x8xf32> -> vector<8x8xf32>
    %cst_33 = arith.constant 0.353553385 : f32
    %101 = vector.broadcast %cst_33 : f32 to vector<8x8xf32>
    %102 = arith.mulf %100, %101 : vector<8x8xf32>
    %103 = arith.addf %102, %4 : vector<8x8xf32>
    %cst_34 = arith.constant dense<0xFF800000> : vector<8xf32>
    %104 = vector.multi_reduction <maximumf>, %103, %cst_34 [1] : vector<8x8xf32> to vector<8xf32>
    %105 = vector.shape_cast %104 : vector<8xf32> to vector<8x1xf32>
    %106 = vector.broadcast %105 : vector<8x1xf32> to vector<8x8xf32>
    %107 = arith.subf %103, %106 : vector<8x8xf32>
    %108 = math.exp %107 : vector<8x8xf32>
    %cst_35 = arith.constant dense<0.000000e+00> : vector<8xf32>
    %109 = vector.multi_reduction <add>, %108, %cst_35 [1] : vector<8x8xf32> to vector<8xf32>
    %110 = vector.shape_cast %109 : vector<8xf32> to vector<8x1xf32>
    %111 = tpu.reciprocal %110 {approx = true} : vector<8x1xf32> -> vector<8x1xf32>
    %112 = vector.broadcast %111 : vector<8x1xf32> to vector<8x8xf32>
    %113 = arith.mulf %108, %112 : vector<8x8xf32>
    %114 = arith.truncf %113 : vector<8x8xf32> to vector<8x8xbf16>
    %cst_36 = arith.constant dense<0.000000e+00> : vector<8x8xf32>
    %115 = tpu.matmul %114, %99, %cst_36 {dimension_numbers = #tpu.dot_dimension_numbers<[1], [0], [0], [1], [0, 0, 1, 1], [], []>} : vector<8x8xbf16>, vector<8x8xbf16>, vector<8x8xf32> -> vector<8x8xf32>
    %116 = arith.truncf %115 : vector<8x8xf32> to vector<8x8xbf16>
    %117 = vector.extract_strided_slice %14 {offsets = [24, 0], sizes = [8, 32], strides = [1, 1]} : vector<32x32xbf16> to vector<8x32xbf16>
    %cst_37 = arith.constant dense<0.000000e+00> : vector<8x32xf32>
    %118 = tpu.matmul %116, %117, %cst_37 {dimension_numbers = #tpu.dot_dimension_numbers<[1], [0], [0], [1], [0, 0, 1, 1], [], []>} : vector<8x8xbf16>, vector<8x32xbf16>, vector<8x32xf32> -> vector<8x32xf32>
    %119 = arith.addf %93, %118 : vector<8x32xf32>
    %120 = arith.addf %1, %119 : vector<8x32xf32>
    %c0_38 = arith.constant 0 : index
    %c0_39 = arith.constant 0 : index
    %121 = vector.load %arg7[%c0_38, %c0_39] : memref<1x32xf32, #tpu.memory_space<vmem>>, vector<1x32xf32>
    %122 = vector.broadcast %121 : vector<1x32xf32> to vector<8x32xf32>
    %123 = arith.addf %120, %122 : vector<8x32xf32>
    %c0_40 = arith.constant 0 : index
    %c0_41 = arith.constant 0 : index
    %124 = vector.load %arg8[%c0_40, %c0_41] : memref<1x32xf32, #tpu.memory_space<vmem>>, vector<1x32xf32>
    %c0_42 = arith.constant 0 : index
    %c0_43 = arith.constant 0 : index
    %125 = vector.load %arg9[%c0_42, %c0_43] : memref<1x32xf32, #tpu.memory_space<vmem>>, vector<1x32xf32>
    %cst_44 = arith.constant dense<0.000000e+00> : vector<8xf32>
    %126 = vector.multi_reduction <add>, %123, %cst_44 [1] : vector<8x32xf32> to vector<8xf32>
    %127 = vector.shape_cast %126 : vector<8xf32> to vector<8x1xf32>
    %cst_45 = arith.constant 3.200000e+01 : f32
    %128 = vector.broadcast %cst_45 : f32 to vector<8x1xf32>
    %129 = arith.divf %127, %128 : vector<8x1xf32>
    %130 = vector.broadcast %129 : vector<8x1xf32> to vector<8x32xf32>
    %131 = arith.subf %123, %130 : vector<8x32xf32>
    %132 = arith.mulf %131, %131 : vector<8x32xf32>
    %cst_46 = arith.constant dense<0.000000e+00> : vector<8xf32>
    %133 = vector.multi_reduction <add>, %132, %cst_46 [1] : vector<8x32xf32> to vector<8xf32>
    %134 = vector.shape_cast %133 : vector<8xf32> to vector<8x1xf32>
    %cst_47 = arith.constant 3.200000e+01 : f32
    %135 = vector.broadcast %cst_47 : f32 to vector<8x1xf32>
    %136 = arith.divf %134, %135 : vector<8x1xf32>
    %137 = vector.broadcast %129 : vector<8x1xf32> to vector<8x32xf32>
    %138 = arith.subf %123, %137 : vector<8x32xf32>
    %cst_48 = arith.constant 9.99999974E-6 : f32
    %139 = vector.broadcast %cst_48 : f32 to vector<8x1xf32>
    %140 = arith.addf %136, %139 : vector<8x1xf32>
    %141 = math.rsqrt %140 : vector<8x1xf32>
    %142 = vector.broadcast %141 : vector<8x1xf32> to vector<8x32xf32>
    %143 = arith.mulf %138, %142 : vector<8x32xf32>
    %144 = vector.broadcast %124 : vector<1x32xf32> to vector<8x32xf32>
    %145 = arith.mulf %143, %144 : vector<8x32xf32>
    %146 = vector.broadcast %125 : vector<1x32xf32> to vector<8x32xf32>
    %147 = arith.addf %145, %146 : vector<8x32xf32>
    %148 = arith.truncf %147 : vector<8x32xf32> to vector<8x32xbf16>
    %c0_49 = arith.constant 0 : index
    %c0_50 = arith.constant 0 : index
    %149 = vector.load %arg10[%c0_49, %c0_50] : memref<32x32xbf16, #tpu.memory_space<vmem>>, vector<32x32xbf16>
    %cst_51 = arith.constant dense<0.000000e+00> : vector<8x32xf32>
    %150 = tpu.matmul %148, %149, %cst_51 {dimension_numbers = #tpu.dot_dimension_numbers<[1], [0], [0], [1], [0, 0, 1, 1], [], []>} : vector<8x32xbf16>, vector<32x32xbf16>, vector<8x32xf32> -> vector<8x32xf32>
    %c0_52 = arith.constant 0 : index
    %c0_53 = arith.constant 0 : index
    %151 = vector.load %arg11[%c0_52, %c0_53] : memref<1x32xf32, #tpu.memory_space<vmem>>, vector<1x32xf32>
    %152 = vector.broadcast %151 : vector<1x32xf32> to vector<8x32xf32>
    %153 = arith.addf %150, %152 : vector<8x32xf32>
    %154 = arith.truncf %3 : vector<16x32xf32> to vector<16x32xbf16>
    %c0_54 = arith.constant 0 : index
    %c0_55 = arith.constant 0 : index
    %155 = vector.load %arg12[%c0_54, %c0_55] : memref<32x64xbf16, #tpu.memory_space<vmem>>, vector<32x64xbf16>
    %cst_56 = arith.constant dense<0.000000e+00> : vector<16x64xf32>
    %156 = tpu.matmul %154, %155, %cst_56 {dimension_numbers = #tpu.dot_dimension_numbers<[1], [0], [0], [1], [0, 0, 1, 1], [], []>} : vector<16x32xbf16>, vector<32x64xbf16>, vector<16x64xf32> -> vector<16x64xf32>
    %c0_57 = arith.constant 0 : index
    %c0_58 = arith.constant 0 : index
    %157 = vector.load %arg13[%c0_57, %c0_58] : memref<1x64xf32, #tpu.memory_space<vmem>>, vector<1x64xf32>
    %158 = vector.broadcast %157 : vector<1x64xf32> to vector<16x64xf32>
    %159 = arith.addf %156, %158 : vector<16x64xf32>
    %160 = vector.extract_strided_slice %159 {offsets = [0, 0], sizes = [16, 32], strides = [1, 1]} : vector<16x64xf32> to vector<16x32xf32>
    %161 = vector.extract_strided_slice %159 {offsets = [0, 32], sizes = [16, 32], strides = [1, 1]} : vector<16x64xf32> to vector<16x32xf32>
    %c0_59 = arith.constant 0 : index
    %c0_60 = arith.constant 0 : index
    %162 = vector.load %arg14[%c0_59, %c0_60] : memref<32x32xbf16, #tpu.memory_space<vmem>>, vector<32x32xbf16>
    %cst_61 = arith.constant 0.000000e+00 : f32
    %163 = vector.broadcast %cst_61 : f32 to vector<8x32xf32>
    %164 = vector.extract_strided_slice %153 {offsets = [0, 0], sizes = [8, 8], strides = [1, 1]} : vector<8x32xf32> to vector<8x8xf32>
    %165 = arith.truncf %164 : vector<8x8xf32> to vector<8x8xbf16>
    %166 = vector.extract_strided_slice %160 {offsets = [0, 0], sizes = [16, 8], strides = [1, 1]} : vector<16x32xf32> to vector<16x8xf32>
    %167 = arith.truncf %166 : vector<16x8xf32> to vector<16x8xbf16>
    %168 = vector.extract_strided_slice %161 {offsets = [0, 0], sizes = [16, 8], strides = [1, 1]} : vector<16x32xf32> to vector<16x8xf32>
    %169 = arith.truncf %168 : vector<16x8xf32> to vector<16x8xbf16>
    %cst_62 = arith.constant dense<0.000000e+00> : vector<8x16xf32>
    %170 = tpu.matmul %165, %167, %cst_62 {dimension_numbers = #tpu.dot_dimension_numbers<[1], [1], [0], [0], [0, 0, 1, 0], [], []>} : vector<8x8xbf16>, vector<16x8xbf16>, vector<8x16xf32> -> vector<8x16xf32>
    %cst_63 = arith.constant 0.353553385 : f32
    %171 = vector.broadcast %cst_63 : f32 to vector<8x16xf32>
    %172 = arith.mulf %170, %171 : vector<8x16xf32>
    %cst_64 = arith.constant dense<0xFF800000> : vector<8xf32>
    %173 = vector.multi_reduction <maximumf>, %172, %cst_64 [1] : vector<8x16xf32> to vector<8xf32>
    %174 = vector.shape_cast %173 : vector<8xf32> to vector<8x1xf32>
    %175 = vector.broadcast %174 : vector<8x1xf32> to vector<8x16xf32>
    %176 = arith.subf %172, %175 : vector<8x16xf32>
    %177 = math.exp %176 : vector<8x16xf32>
    %cst_65 = arith.constant dense<0.000000e+00> : vector<8xf32>
    %178 = vector.multi_reduction <add>, %177, %cst_65 [1] : vector<8x16xf32> to vector<8xf32>
    %179 = vector.shape_cast %178 : vector<8xf32> to vector<8x1xf32>
    %180 = tpu.reciprocal %179 {approx = true} : vector<8x1xf32> -> vector<8x1xf32>
    %181 = vector.broadcast %180 : vector<8x1xf32> to vector<8x16xf32>
    %182 = arith.mulf %177, %181 : vector<8x16xf32>
    %183 = arith.truncf %182 : vector<8x16xf32> to vector<8x16xbf16>
    %cst_66 = arith.constant dense<0.000000e+00> : vector<8x8xf32>
    %184 = tpu.matmul %183, %169, %cst_66 {dimension_numbers = #tpu.dot_dimension_numbers<[1], [0], [0], [1], [0, 0, 1, 1], [], []>} : vector<8x16xbf16>, vector<16x8xbf16>, vector<8x8xf32> -> vector<8x8xf32>
    %185 = arith.truncf %184 : vector<8x8xf32> to vector<8x8xbf16>
    %186 = vector.extract_strided_slice %162 {offsets = [0, 0], sizes = [8, 32], strides = [1, 1]} : vector<32x32xbf16> to vector<8x32xbf16>
    %cst_67 = arith.constant dense<0.000000e+00> : vector<8x32xf32>
    %187 = tpu.matmul %185, %186, %cst_67 {dimension_numbers = #tpu.dot_dimension_numbers<[1], [0], [0], [1], [0, 0, 1, 1], [], []>} : vector<8x8xbf16>, vector<8x32xbf16>, vector<8x32xf32> -> vector<8x32xf32>
    %188 = arith.addf %163, %187 : vector<8x32xf32>
    %189 = vector.extract_strided_slice %153 {offsets = [0, 8], sizes = [8, 8], strides = [1, 1]} : vector<8x32xf32> to vector<8x8xf32>
    %190 = arith.truncf %189 : vector<8x8xf32> to vector<8x8xbf16>
    %191 = vector.extract_strided_slice %160 {offsets = [0, 8], sizes = [16, 8], strides = [1, 1]} : vector<16x32xf32> to vector<16x8xf32>
    %192 = arith.truncf %191 : vector<16x8xf32> to vector<16x8xbf16>
    %193 = vector.extract_strided_slice %161 {offsets = [0, 8], sizes = [16, 8], strides = [1, 1]} : vector<16x32xf32> to vector<16x8xf32>
    %194 = arith.truncf %193 : vector<16x8xf32> to vector<16x8xbf16>
    %cst_68 = arith.constant dense<0.000000e+00> : vector<8x16xf32>
    %195 = tpu.matmul %190, %192, %cst_68 {dimension_numbers = #tpu.dot_dimension_numbers<[1], [1], [0], [0], [0, 0, 1, 0], [], []>} : vector<8x8xbf16>, vector<16x8xbf16>, vector<8x16xf32> -> vector<8x16xf32>
    %cst_69 = arith.constant 0.353553385 : f32
    %196 = vector.broadcast %cst_69 : f32 to vector<8x16xf32>
    %197 = arith.mulf %195, %196 : vector<8x16xf32>
    %cst_70 = arith.constant dense<0xFF800000> : vector<8xf32>
    %198 = vector.multi_reduction <maximumf>, %197, %cst_70 [1] : vector<8x16xf32> to vector<8xf32>
    %199 = vector.shape_cast %198 : vector<8xf32> to vector<8x1xf32>
    %200 = vector.broadcast %199 : vector<8x1xf32> to vector<8x16xf32>
    %201 = arith.subf %197, %200 : vector<8x16xf32>
    %202 = math.exp %201 : vector<8x16xf32>
    %cst_71 = arith.constant dense<0.000000e+00> : vector<8xf32>
    %203 = vector.multi_reduction <add>, %202, %cst_71 [1] : vector<8x16xf32> to vector<8xf32>
    %204 = vector.shape_cast %203 : vector<8xf32> to vector<8x1xf32>
    %205 = tpu.reciprocal %204 {approx = true} : vector<8x1xf32> -> vector<8x1xf32>
    %206 = vector.broadcast %205 : vector<8x1xf32> to vector<8x16xf32>
    %207 = arith.mulf %202, %206 : vector<8x16xf32>
    %208 = arith.truncf %207 : vector<8x16xf32> to vector<8x16xbf16>
    %cst_72 = arith.constant dense<0.000000e+00> : vector<8x8xf32>
    %209 = tpu.matmul %208, %194, %cst_72 {dimension_numbers = #tpu.dot_dimension_numbers<[1], [0], [0], [1], [0, 0, 1, 1], [], []>} : vector<8x16xbf16>, vector<16x8xbf16>, vector<8x8xf32> -> vector<8x8xf32>
    %210 = arith.truncf %209 : vector<8x8xf32> to vector<8x8xbf16>
    %211 = vector.extract_strided_slice %162 {offsets = [8, 0], sizes = [8, 32], strides = [1, 1]} : vector<32x32xbf16> to vector<8x32xbf16>
    %cst_73 = arith.constant dense<0.000000e+00> : vector<8x32xf32>
    %212 = tpu.matmul %210, %211, %cst_73 {dimension_numbers = #tpu.dot_dimension_numbers<[1], [0], [0], [1], [0, 0, 1, 1], [], []>} : vector<8x8xbf16>, vector<8x32xbf16>, vector<8x32xf32> -> vector<8x32xf32>
    %213 = arith.addf %188, %212 : vector<8x32xf32>
    %214 = vector.extract_strided_slice %153 {offsets = [0, 16], sizes = [8, 8], strides = [1, 1]} : vector<8x32xf32> to vector<8x8xf32>
    %215 = arith.truncf %214 : vector<8x8xf32> to vector<8x8xbf16>
    %216 = vector.extract_strided_slice %160 {offsets = [0, 16], sizes = [16, 8], strides = [1, 1]} : vector<16x32xf32> to vector<16x8xf32>
    %217 = arith.truncf %216 : vector<16x8xf32> to vector<16x8xbf16>
    %218 = vector.extract_strided_slice %161 {offsets = [0, 16], sizes = [16, 8], strides = [1, 1]} : vector<16x32xf32> to vector<16x8xf32>
    %219 = arith.truncf %218 : vector<16x8xf32> to vector<16x8xbf16>
    %cst_74 = arith.constant dense<0.000000e+00> : vector<8x16xf32>
    %220 = tpu.matmul %215, %217, %cst_74 {dimension_numbers = #tpu.dot_dimension_numbers<[1], [1], [0], [0], [0, 0, 1, 0], [], []>} : vector<8x8xbf16>, vector<16x8xbf16>, vector<8x16xf32> -> vector<8x16xf32>
    %cst_75 = arith.constant 0.353553385 : f32
    %221 = vector.broadcast %cst_75 : f32 to vector<8x16xf32>
    %222 = arith.mulf %220, %221 : vector<8x16xf32>
    %cst_76 = arith.constant dense<0xFF800000> : vector<8xf32>
    %223 = vector.multi_reduction <maximumf>, %222, %cst_76 [1] : vector<8x16xf32> to vector<8xf32>
    %224 = vector.shape_cast %223 : vector<8xf32> to vector<8x1xf32>
    %225 = vector.broadcast %224 : vector<8x1xf32> to vector<8x16xf32>
    %226 = arith.subf %222, %225 : vector<8x16xf32>
    %227 = math.exp %226 : vector<8x16xf32>
    %cst_77 = arith.constant dense<0.000000e+00> : vector<8xf32>
    %228 = vector.multi_reduction <add>, %227, %cst_77 [1] : vector<8x16xf32> to vector<8xf32>
    %229 = vector.shape_cast %228 : vector<8xf32> to vector<8x1xf32>
    %230 = tpu.reciprocal %229 {approx = true} : vector<8x1xf32> -> vector<8x1xf32>
    %231 = vector.broadcast %230 : vector<8x1xf32> to vector<8x16xf32>
    %232 = arith.mulf %227, %231 : vector<8x16xf32>
    %233 = arith.truncf %232 : vector<8x16xf32> to vector<8x16xbf16>
    %cst_78 = arith.constant dense<0.000000e+00> : vector<8x8xf32>
    %234 = tpu.matmul %233, %219, %cst_78 {dimension_numbers = #tpu.dot_dimension_numbers<[1], [0], [0], [1], [0, 0, 1, 1], [], []>} : vector<8x16xbf16>, vector<16x8xbf16>, vector<8x8xf32> -> vector<8x8xf32>
    %235 = arith.truncf %234 : vector<8x8xf32> to vector<8x8xbf16>
    %236 = vector.extract_strided_slice %162 {offsets = [16, 0], sizes = [8, 32], strides = [1, 1]} : vector<32x32xbf16> to vector<8x32xbf16>
    %cst_79 = arith.constant dense<0.000000e+00> : vector<8x32xf32>
    %237 = tpu.matmul %235, %236, %cst_79 {dimension_numbers = #tpu.dot_dimension_numbers<[1], [0], [0], [1], [0, 0, 1, 1], [], []>} : vector<8x8xbf16>, vector<8x32xbf16>, vector<8x32xf32> -> vector<8x32xf32>
    %238 = arith.addf %213, %237 : vector<8x32xf32>
    %239 = vector.extract_strided_slice %153 {offsets = [0, 24], sizes = [8, 8], strides = [1, 1]} : vector<8x32xf32> to vector<8x8xf32>
    %240 = arith.truncf %239 : vector<8x8xf32> to vector<8x8xbf16>
    %241 = vector.extract_strided_slice %160 {offsets = [0, 24], sizes = [16, 8], strides = [1, 1]} : vector<16x32xf32> to vector<16x8xf32>
    %242 = arith.truncf %241 : vector<16x8xf32> to vector<16x8xbf16>
    %243 = vector.extract_strided_slice %161 {offsets = [0, 24], sizes = [16, 8], strides = [1, 1]} : vector<16x32xf32> to vector<16x8xf32>
    %244 = arith.truncf %243 : vector<16x8xf32> to vector<16x8xbf16>
    %cst_80 = arith.constant dense<0.000000e+00> : vector<8x16xf32>
    %245 = tpu.matmul %240, %242, %cst_80 {dimension_numbers = #tpu.dot_dimension_numbers<[1], [1], [0], [0], [0, 0, 1, 0], [], []>} : vector<8x8xbf16>, vector<16x8xbf16>, vector<8x16xf32> -> vector<8x16xf32>
    %cst_81 = arith.constant 0.353553385 : f32
    %246 = vector.broadcast %cst_81 : f32 to vector<8x16xf32>
    %247 = arith.mulf %245, %246 : vector<8x16xf32>
    %cst_82 = arith.constant dense<0xFF800000> : vector<8xf32>
    %248 = vector.multi_reduction <maximumf>, %247, %cst_82 [1] : vector<8x16xf32> to vector<8xf32>
    %249 = vector.shape_cast %248 : vector<8xf32> to vector<8x1xf32>
    %250 = vector.broadcast %249 : vector<8x1xf32> to vector<8x16xf32>
    %251 = arith.subf %247, %250 : vector<8x16xf32>
    %252 = math.exp %251 : vector<8x16xf32>
    %cst_83 = arith.constant dense<0.000000e+00> : vector<8xf32>
    %253 = vector.multi_reduction <add>, %252, %cst_83 [1] : vector<8x16xf32> to vector<8xf32>
    %254 = vector.shape_cast %253 : vector<8xf32> to vector<8x1xf32>
    %255 = tpu.reciprocal %254 {approx = true} : vector<8x1xf32> -> vector<8x1xf32>
    %256 = vector.broadcast %255 : vector<8x1xf32> to vector<8x16xf32>
    %257 = arith.mulf %252, %256 : vector<8x16xf32>
    %258 = arith.truncf %257 : vector<8x16xf32> to vector<8x16xbf16>
    %cst_84 = arith.constant dense<0.000000e+00> : vector<8x8xf32>
    %259 = tpu.matmul %258, %244, %cst_84 {dimension_numbers = #tpu.dot_dimension_numbers<[1], [0], [0], [1], [0, 0, 1, 1], [], []>} : vector<8x16xbf16>, vector<16x8xbf16>, vector<8x8xf32> -> vector<8x8xf32>
    %260 = arith.truncf %259 : vector<8x8xf32> to vector<8x8xbf16>
    %261 = vector.extract_strided_slice %162 {offsets = [24, 0], sizes = [8, 32], strides = [1, 1]} : vector<32x32xbf16> to vector<8x32xbf16>
    %cst_85 = arith.constant dense<0.000000e+00> : vector<8x32xf32>
    %262 = tpu.matmul %260, %261, %cst_85 {dimension_numbers = #tpu.dot_dimension_numbers<[1], [0], [0], [1], [0, 0, 1, 1], [], []>} : vector<8x8xbf16>, vector<8x32xbf16>, vector<8x32xf32> -> vector<8x32xf32>
    %263 = arith.addf %238, %262 : vector<8x32xf32>
    %264 = arith.addf %147, %263 : vector<8x32xf32>
    %c0_86 = arith.constant 0 : index
    %c0_87 = arith.constant 0 : index
    %265 = vector.load %arg15[%c0_86, %c0_87] : memref<1x32xf32, #tpu.memory_space<vmem>>, vector<1x32xf32>
    %266 = vector.broadcast %265 : vector<1x32xf32> to vector<8x32xf32>
    %267 = arith.addf %264, %266 : vector<8x32xf32>
    %c0_88 = arith.constant 0 : index
    %c0_89 = arith.constant 0 : index
    %268 = vector.load %arg16[%c0_88, %c0_89] : memref<1x32xf32, #tpu.memory_space<vmem>>, vector<1x32xf32>
    %c0_90 = arith.constant 0 : index
    %c0_91 = arith.constant 0 : index
    %269 = vector.load %arg17[%c0_90, %c0_91] : memref<1x32xf32, #tpu.memory_space<vmem>>, vector<1x32xf32>
    %cst_92 = arith.constant dense<0.000000e+00> : vector<8xf32>
    %270 = vector.multi_reduction <add>, %267, %cst_92 [1] : vector<8x32xf32> to vector<8xf32>
    %271 = vector.shape_cast %270 : vector<8xf32> to vector<8x1xf32>
    %cst_93 = arith.constant 3.200000e+01 : f32
    %272 = vector.broadcast %cst_93 : f32 to vector<8x1xf32>
    %273 = arith.divf %271, %272 : vector<8x1xf32>
    %274 = vector.broadcast %273 : vector<8x1xf32> to vector<8x32xf32>
    %275 = arith.subf %267, %274 : vector<8x32xf32>
    %276 = arith.mulf %275, %275 : vector<8x32xf32>
    %cst_94 = arith.constant dense<0.000000e+00> : vector<8xf32>
    %277 = vector.multi_reduction <add>, %276, %cst_94 [1] : vector<8x32xf32> to vector<8xf32>
    %278 = vector.shape_cast %277 : vector<8xf32> to vector<8x1xf32>
    %cst_95 = arith.constant 3.200000e+01 : f32
    %279 = vector.broadcast %cst_95 : f32 to vector<8x1xf32>
    %280 = arith.divf %278, %279 : vector<8x1xf32>
    %281 = vector.broadcast %273 : vector<8x1xf32> to vector<8x32xf32>
    %282 = arith.subf %267, %281 : vector<8x32xf32>
    %cst_96 = arith.constant 9.99999974E-6 : f32
    %283 = vector.broadcast %cst_96 : f32 to vector<8x1xf32>
    %284 = arith.addf %280, %283 : vector<8x1xf32>
    %285 = math.rsqrt %284 : vector<8x1xf32>
    %286 = vector.broadcast %285 : vector<8x1xf32> to vector<8x32xf32>
    %287 = arith.mulf %282, %286 : vector<8x32xf32>
    %288 = vector.broadcast %268 : vector<1x32xf32> to vector<8x32xf32>
    %289 = arith.mulf %287, %288 : vector<8x32xf32>
    %290 = vector.broadcast %269 : vector<1x32xf32> to vector<8x32xf32>
    %291 = arith.addf %289, %290 : vector<8x32xf32>
    %292 = arith.truncf %291 : vector<8x32xf32> to vector<8x32xbf16>
    %c0_97 = arith.constant 0 : index
    %c0_98 = arith.constant 0 : index
    %293 = vector.load %arg18[%c0_97, %c0_98] : memref<32x64xbf16, #tpu.memory_space<vmem>>, vector<32x64xbf16>
    %cst_99 = arith.constant dense<0.000000e+00> : vector<8x64xf32>
    %294 = tpu.matmul %292, %293, %cst_99 {dimension_numbers = #tpu.dot_dimension_numbers<[1], [0], [0], [1], [0, 0, 1, 1], [], []>} : vector<8x32xbf16>, vector<32x64xbf16>, vector<8x64xf32> -> vector<8x64xf32>
    %c0_100 = arith.constant 0 : index
    %c0_101 = arith.constant 0 : index
    %295 = vector.load %arg19[%c0_100, %c0_101] : memref<1x64xf32, #tpu.memory_space<vmem>>, vector<1x64xf32>
    %296 = vector.broadcast %295 : vector<1x64xf32> to vector<8x64xf32>
    %297 = arith.addf %294, %296 : vector<8x64xf32>
    %cst_102 = arith.constant 0.000000e+00 : f32
    %298 = vector.broadcast %cst_102 : f32 to vector<8x64xf32>
    %299 = arith.maximumf %297, %298 : vector<8x64xf32>
    %300 = arith.truncf %299 : vector<8x64xf32> to vector<8x64xbf16>
    %c0_103 = arith.constant 0 : index
    %c0_104 = arith.constant 0 : index
    %301 = vector.load %arg20[%c0_103, %c0_104] : memref<64x32xbf16, #tpu.memory_space<vmem>>, vector<64x32xbf16>
    %cst_105 = arith.constant dense<0.000000e+00> : vector<8x32xf32>
    %302 = tpu.matmul %300, %301, %cst_105 {dimension_numbers = #tpu.dot_dimension_numbers<[1], [0], [0], [1], [0, 0, 1, 1], [], []>} : vector<8x64xbf16>, vector<64x32xbf16>, vector<8x32xf32> -> vector<8x32xf32>
    %c0_106 = arith.constant 0 : index
    %c0_107 = arith.constant 0 : index
    %303 = vector.load %arg21[%c0_106, %c0_107] : memref<1x32xf32, #tpu.memory_space<vmem>>, vector<1x32xf32>
    %304 = vector.broadcast %303 : vector<1x32xf32> to vector<8x32xf32>
    %305 = arith.addf %302, %304 : vector<8x32xf32>
    %306 = arith.addf %291, %305 : vector<8x32xf32>
    %c0_108 = arith.constant 0 : index
    %c0_109 = arith.constant 0 : index
    %307 = vector.load %arg22[%c0_108, %c0_109] : memref<1x32xf32, #tpu.memory_space<vmem>>, vector<1x32xf32>
    %c0_110 = arith.constant 0 : index
    %c0_111 = arith.constant 0 : index
    %308 = vector.load %arg23[%c0_110, %c0_111] : memref<1x32xf32, #tpu.memory_space<vmem>>, vector<1x32xf32>
    %cst_112 = arith.constant dense<0.000000e+00> : vector<8xf32>
    %309 = vector.multi_reduction <add>, %306, %cst_112 [1] : vector<8x32xf32> to vector<8xf32>
    %310 = vector.shape_cast %309 : vector<8xf32> to vector<8x1xf32>
    %cst_113 = arith.constant 3.200000e+01 : f32
    %311 = vector.broadcast %cst_113 : f32 to vector<8x1xf32>
    %312 = arith.divf %310, %311 : vector<8x1xf32>
    %313 = vector.broadcast %312 : vector<8x1xf32> to vector<8x32xf32>
    %314 = arith.subf %306, %313 : vector<8x32xf32>
    %315 = arith.mulf %314, %314 : vector<8x32xf32>
    %cst_114 = arith.constant dense<0.000000e+00> : vector<8xf32>
    %316 = vector.multi_reduction <add>, %315, %cst_114 [1] : vector<8x32xf32> to vector<8xf32>
    %317 = vector.shape_cast %316 : vector<8xf32> to vector<8x1xf32>
    %cst_115 = arith.constant 3.200000e+01 : f32
    %318 = vector.broadcast %cst_115 : f32 to vector<8x1xf32>
    %319 = arith.divf %317, %318 : vector<8x1xf32>
    %320 = vector.broadcast %312 : vector<8x1xf32> to vector<8x32xf32>
    %321 = arith.subf %306, %320 : vector<8x32xf32>
    %cst_116 = arith.constant 9.99999974E-6 : f32
    %322 = vector.broadcast %cst_116 : f32 to vector<8x1xf32>
    %323 = arith.addf %319, %322 : vector<8x1xf32>
    %324 = math.rsqrt %323 : vector<8x1xf32>
    %325 = vector.broadcast %324 : vector<8x1xf32> to vector<8x32xf32>
    %326 = arith.mulf %321, %325 : vector<8x32xf32>
    %327 = vector.broadcast %307 : vector<1x32xf32> to vector<8x32xf32>
    %328 = arith.mulf %326, %327 : vector<8x32xf32>
    %329 = vector.broadcast %308 : vector<1x32xf32> to vector<8x32xf32>
    %330 = arith.addf %328, %329 : vector<8x32xf32>
    %c0_117 = arith.constant 0 : index
    %c0_118 = arith.constant 0 : index
    %c0_119 = arith.constant 0 : index
    %331 = vector.load %arg24[%c0_117, %c0_118, %c0_119] : memref<1x8x32xf32, #tpu.memory_space<vmem>>, vector<1x8x32xf32>
    %332 = vector.shape_cast %331 : vector<1x8x32xf32> to vector<8x32xf32>
    %333 = vector.shape_cast %330 : vector<8x32xf32> to vector<1x8x32xf32>
    tpu.vector_store %arg24[%c0_117, %c0_118, %c0_119], %333 {strides = array<i32>} : memref<1x8x32xf32, #tpu.memory_space<vmem>>, vector<1x8x32xf32>,
    return
  }
  func.func @transform_0(%arg0: i32) -> (i32, i32, i32) {
    %c0_i32 = arith.constant 0 : i32
    %c0_i32_0 = arith.constant 0 : i32
    %c0_i32_1 = arith.constant 0 : i32
    return %arg0, %c0_i32, %c0_i32_0 : i32, i32, i32
  }
  func.func @transform_1(%arg0: i32) -> (i32, i32, i32) {
    %c0_i32 = arith.constant 0 : i32
    %c0_i32_0 = arith.constant 0 : i32
    %c0_i32_1 = arith.constant 0 : i32
    return %arg0, %c0_i32, %c0_i32_0 : i32, i32, i32
  }
  func.func @transform_2(%arg0: i32) -> (i32, i32) {
    %c0_i32 = arith.constant 0 : i32
    %c0_i32_0 = arith.constant 0 : i32
    %c0_i32_1 = arith.constant 0 : i32
    return %c0_i32, %c0_i32_0 : i32, i32
  }
  func.func @transform_3(%arg0: i32) -> (i32, i32) {
    %c0_i32 = arith.constant 0 : i32
    %c0_i32_0 = arith.constant 0 : i32
    %c0_i32_1 = arith.constant 0 : i32
    return %c0_i32, %c0_i32_0 : i32, i32
  }
  func.func @transform_4(%arg0: i32) -> (i32, i32) {
    %c0_i32 = arith.constant 0 : i32
    %c0_i32_0 = arith.constant 0 : i32
    %c0_i32_1 = arith.constant 0 : i32
    return %c0_i32, %c0_i32_0 : i32, i32
  }
  func.func @transform_5(%arg0: i32) -> (i32, i32) {
    %c0_i32 = arith.constant 0 : i32
    %c0_i32_0 = arith.constant 0 : i32
    %c0_i32_1 = arith.constant 0 : i32
    return %c0_i32, %c0_i32_0 : i32, i32
  }
  func.func @transform_6(%arg0: i32) -> (i32, i32) {
    %c0_i32 = arith.constant 0 : i32
    %c0_i32_0 = arith.constant 0 : i32
    %c0_i32_1 = arith.constant 0 : i32
    return %c0_i32, %c0_i32_0 : i32, i32
  }
  func.func @transform_7(%arg0: i32) -> (i32, i32) {
    %c0_i32 = arith.constant 0 : i32
    %c0_i32_0 = arith.constant 0 : i32
    %c0_i32_1 = arith.constant 0 : i32
    return %c0_i32, %c0_i32_0 : i32, i32
  }
  func.func @transform_8(%arg0: i32) -> (i32, i32) {
    %c0_i32 = arith.constant 0 : i32
    %c0_i32_0 = arith.constant 0 : i32
    %c0_i32_1 = arith.constant 0 : i32
    return %c0_i32, %c0_i32_0 : i32, i32
  }
  func.func @transform_9(%arg0: i32) -> (i32, i32) {
    %c0_i32 = arith.constant 0 : i32
    %c0_i32_0 = arith.constant 0 : i32
    %c0_i32_1 = arith.constant 0 : i32
    return %c0_i32, %c0_i32_0 : i32, i32
  }
  func.func @transform_10(%arg0: i32) -> (i32, i32) {
    %c0_i32 = arith.constant 0 : i32
    %c0_i32_0 = arith.constant 0 : i32
    %c0_i32_1 = arith.constant 0 : i32
    return %c0_i32, %c0_i32_0 : i32, i32
  }
  func.func @transform_11(%arg0: i32) -> (i32, i32) {
    %c0_i32 = arith.constant 0 : i32
    %c0_i32_0 = arith.constant 0 : i32
    %c0_i32_1 = arith.constant 0 : i32
    return %c0_i32, %c0_i32_0 : i32, i32
  }
  func.func @transform_12(%arg0: i32) -> (i32, i32) {
    %c0_i32 = arith.constant 0 : i32
    %c0_i32_0 = arith.constant 0 : i32
    %c0_i32_1 = arith.constant 0 : i32
    return %c0_i32, %c0_i32_0 : i32, i32
  }
  func.func @transform_13(%arg0: i32) -> (i32, i32) {
    %c0_i32 = arith.constant 0 : i32
    %c0_i32_0 = arith.constant 0 : i32
    %c0_i32_1 = arith.constant 0 : i32
    return %c0_i32, %c0_i32_0 : i32, i32
  }
  func.func @transform_14(%arg0: i32) -> (i32, i32) {
    %c0_i32 = arith.constant 0 : i32
    %c0_i32_0 = arith.constant 0 : i32
    %c0_i32_1 = arith.constant 0 : i32
    return %c0_i32, %c0_i32_0 : i32, i32
  }
  func.func @transform_15(%arg0: i32) -> (i32, i32) {
    %c0_i32 = arith.constant 0 : i32
    %c0_i32_0 = arith.constant 0 : i32
    %c0_i32_1 = arith.constant 0 : i32
    return %c0_i32, %c0_i32_0 : i32, i32
  }
  func.func @transform_16(%arg0: i32) -> (i32, i32) {
    %c0_i32 = arith.constant 0 : i32
    %c0_i32_0 = arith.constant 0 : i32
    %c0_i32_1 = arith.constant 0 : i32
    return %c0_i32, %c0_i32_0 : i32, i32
  }
  func.func @transform_17(%arg0: i32) -> (i32, i32) {
    %c0_i32 = arith.constant 0 : i32
    %c0_i32_0 = arith.constant 0 : i32
    %c0_i32_1 = arith.constant 0 : i32
    return %c0_i32, %c0_i32_0 : i32, i32
  }
  func.func @transform_18(%arg0: i32) -> (i32, i32) {
    %c0_i32 = arith.constant 0 : i32
    %c0_i32_0 = arith.constant 0 : i32
    %c0_i32_1 = arith.constant 0 : i32
    return %c0_i32, %c0_i32_0 : i32, i32
  }
  func.func @transform_19(%arg0: i32) -> (i32, i32) {
    %c0_i32 = arith.constant 0 : i32
    %c0_i32_0 = arith.constant 0 : i32
    %c0_i32_1 = arith.constant 0 : i32
    return %c0_i32, %c0_i32_0 : i32, i32
  }
  func.func @transform_20(%arg0: i32) -> (i32, i32) {
    %c0_i32 = arith.constant 0 : i32
    %c0_i32_0 = arith.constant 0 : i32
    %c0_i32_1 = arith.constant 0 : i32
    return %c0_i32, %c0_i32_0 : i32, i32
  }
  func.func @transform_21(%arg0: i32) -> (i32, i32) {
    %c0_i32 = arith.constant 0 : i32
    %c0_i32_0 = arith.constant 0 : i32
    %c0_i32_1 = arith.constant 0 : i32
    return %c0_i32, %c0_i32_0 : i32, i32
  }
  func.func @transform_22(%arg0: i32) -> (i32, i32) {
    %c0_i32 = arith.constant 0 : i32
    %c0_i32_0 = arith.constant 0 : i32
    %c0_i32_1 = arith.constant 0 : i32
    return %c0_i32, %c0_i32_0 : i32, i32
  }
  func.func @transform_23(%arg0: i32) -> (i32, i32, i32) {
    %c0_i32 = arith.constant 0 : i32
    %c0_i32_0 = arith.constant 0 : i32
    %c0_i32_1 = arith.constant 0 : i32
    return %arg0, %c0_i32, %c0_i32_0 : i32, i32, i32
  }
}

module attributes {stable_mosaic.version = 11 : i64} {
  func.func @_linear_kernel(%arg0: i32, %arg1: i32, %arg2: i32, %arg3: memref<16x128xbf16, #tpu.memory_space<vmem>>, %arg4: memref<128x128xbf16, #tpu.memory_space<vmem>>, %arg5: memref<1x128xf32, #tpu.memory_space<vmem>>, %arg6: memref<16x128xf32, #tpu.memory_space<vmem>>, %arg7: memref<16x128xf32, #tpu.memory_space<vmem>>) attributes {dimension_semantics = [#tpu.dimension_semantics<parallel>, #tpu.dimension_semantics<parallel>, #tpu.dimension_semantics<arbitrary>], iteration_bounds = array<i64: 1, 1, 1>, scalar_prefetch = 0 : i64, scratch_operands = 1 : i64, tpu.core_type = #tpu.core_type<tc>, window_params = [{transform_indices = @transform_0, window_bounds = array<i64: 16, 128>}, {transform_indices = @transform_1, window_bounds = array<i64: 128, 128>}, {transform_indices = @transform_2, window_bounds = array<i64: 1, 128>}, {transform_indices = @transform_3, window_bounds = array<i64: 16, 128>}]} {
    %c0_i32 = arith.constant 0 : i32
    %0 = arith.cmpi eq, %arg2, %c0_i32 : i32
    %1 = arith.extui %0 : i1 to i32
    %c0_i32_0 = arith.constant 0 : i32
    %2 = arith.cmpi ne, %1, %c0_i32_0 : i32
    scf.if %2 {
      %cst_10 = arith.constant 0.000000e+00 : f32
      %12 = vector.broadcast %cst_10 : f32 to vector<16x128xf32>
      %c0_11 = arith.constant 0 : index
      %c0_12 = arith.constant 0 : index
      %13 = vector.load %arg7[%c0_11, %c0_12] : memref<16x128xf32, #tpu.memory_space<vmem>>, vector<16x128xf32>
      tpu.vector_store %arg7[%c0_11, %c0_12], %12 {strides = array<i32>} : memref<16x128xf32, #tpu.memory_space<vmem>>, vector<16x128xf32>,
    } else {
    }
    %c0 = arith.constant 0 : index
    %c0_1 = arith.constant 0 : index
    %3 = vector.load %arg7[%c0, %c0_1] : memref<16x128xf32, #tpu.memory_space<vmem>>, vector<16x128xf32>
    %c0_2 = arith.constant 0 : index
    %c0_3 = arith.constant 0 : index
    %4 = vector.load %arg3[%c0_2, %c0_3] : memref<16x128xbf16, #tpu.memory_space<vmem>>, vector<16x128xbf16>
    %c0_4 = arith.constant 0 : index
    %c0_5 = arith.constant 0 : index
    %5 = vector.load %arg4[%c0_4, %c0_5] : memref<128x128xbf16, #tpu.memory_space<vmem>>, vector<128x128xbf16>
    %cst = arith.constant dense<0.000000e+00> : vector<16x128xf32>
    %6 = tpu.matmul %4, %5, %cst {dimension_numbers = #tpu.dot_dimension_numbers<[1], [0], [0], [1], [0, 0, 1, 1], [], []>} : vector<16x128xbf16>, vector<128x128xbf16>, vector<16x128xf32> -> vector<16x128xf32>
    %7 = arith.addf %3, %6 : vector<16x128xf32>
    %c0_6 = arith.constant 0 : index
    %c0_7 = arith.constant 0 : index
    %8 = vector.load %arg7[%c0_6, %c0_7] : memref<16x128xf32, #tpu.memory_space<vmem>>, vector<16x128xf32>
    tpu.vector_store %arg7[%c0_6, %c0_7], %7 {strides = array<i32>} : memref<16x128xf32, #tpu.memory_space<vmem>>, vector<16x128xf32>,
    %c0_i32_8 = arith.constant 0 : i32
    %9 = arith.cmpi eq, %arg2, %c0_i32_8 : i32
    %10 = arith.extui %9 : i1 to i32
    %c0_i32_9 = arith.constant 0 : i32
    %11 = arith.cmpi ne, %10, %c0_i32_9 : i32
    scf.if %11 {
      %c0_10 = arith.constant 0 : index
      %c0_11 = arith.constant 0 : index
      %12 = vector.load %arg7[%c0_10, %c0_11] : memref<16x128xf32, #tpu.memory_space<vmem>>, vector<16x128xf32>
      %c0_12 = arith.constant 0 : index
      %c0_13 = arith.constant 0 : index
      %13 = vector.load %arg5[%c0_12, %c0_13] : memref<1x128xf32, #tpu.memory_space<vmem>>, vector<1x128xf32>
      %14 = vector.broadcast %13 : vector<1x128xf32> to vector<16x128xf32>
      %15 = arith.addf %12, %14 : vector<16x128xf32>
      %c0_14 = arith.constant 0 : index
      %c0_15 = arith.constant 0 : index
      %16 = vector.load %arg6[%c0_14, %c0_15] : memref<16x128xf32, #tpu.memory_space<vmem>>, vector<16x128xf32>
      tpu.vector_store %arg6[%c0_14, %c0_15], %15 {strides = array<i32>} : memref<16x128xf32, #tpu.memory_space<vmem>>, vector<16x128xf32>,
    } else {
    }
    return
  }
  func.func @transform_0(%arg0: i32, %arg1: i32, %arg2: i32) -> (i32, i32) {
    %c0_i32 = arith.constant 0 : i32
    return %arg0, %arg2 : i32, i32
  }
  func.func @transform_1(%arg0: i32, %arg1: i32, %arg2: i32) -> (i32, i32) {
    %c0_i32 = arith.constant 0 : i32
    return %arg2, %arg1 : i32, i32
  }
  func.func @transform_2(%arg0: i32, %arg1: i32, %arg2: i32) -> (i32, i32) {
    %c0_i32 = arith.constant 0 : i32
    %c0_i32_0 = arith.constant 0 : i32
    return %c0_i32, %arg1 : i32, i32
  }
  func.func @transform_3(%arg0: i32, %arg1: i32, %arg2: i32) -> (i32, i32) {
    %c0_i32 = arith.constant 0 : i32
    return %arg0, %arg1 : i32, i32
  }
}

</mosaic_0001>

<bundles_post_ra>
// kernel: ufnet_cnn_forward.9
= control target key start
LH: loop header
LB: loop body
LE: loop exit
PB: predicated region body
PF: predicated region fallthrough
CT: control target
= control target key end

     0   :  { %s231_s1 = inlined_call_operand.vmem [shape: bf16[128,128], index: 1, kind: input, shape index: {}]   ;;  %s232_s2 = inlined_call_operand.vmem [shape: f32[1,128], index: 2, kind: input, shape index: {}]   ;;  %s233_s0 = inlined_call_operand.vmem [shape: bf16[16,128], index: 0, kind: input, shape index: {}]   ;;  %s234_s3 = inlined_call_operand.vmem [shape: f32[16,128], index: 3, kind: output, shape index: {}]  }
   0x1   :  { %v173_v0 = vld [vmem:[%s231_s1 + $0x38] sm:$0xff]  ;;  %v172_v1 = vld [vmem:[%s231_s1 + $0x30] sm:$0xff]  ;;  %v171_v2 = vld [vmem:[%s231_s1 + $0x28] sm:$0xff] }
   0x2   :  { %94 = vmatpush.bf16.msra.mxu0 %v173_v0  ;;  %v170_v3 = vld [vmem:[%s231_s1 + $0x20] sm:$0xff]  ;;  %v169_v4 = vld [vmem:[%s231_s1 + $0x18] sm:$0xff]  ;;  %v168_v5 = vld [vmem:[%s231_s1 + $0x10] sm:$0xff] }
   0x3   :  { %v167_v6 = vld [vmem:[%s231_s1 + $0x8] sm:$0xff]  ;;  %v166_v7 = vld [vmem:[%s231_s1] sm:$0xff] }
   0x4   :  { %v165_v8 = vld [vmem:[%s233_s0] sm:$0xff] }
   0x5   :  { %v174_v9 = vld [vmem:[%s232_s2] ss:$0 sm:$0xff] }
   0x6   :  { %95 = vmatpush.bf16.msra.mxu0 %v172_v1 }
   0xa   :  { %96 = vmatpush.bf16.msra.mxu0 %v171_v2 }
   0xe   :  { %97 = vmatpush.bf16.msra.mxu0 %v170_v3 }
  0x12   :  { %98 = vmatpush.bf16.msra.mxu0 %v169_v4 }
  0x16   :  { %99 = vmatpush.bf16.msra.mxu0 %v168_v5 }
  0x1a   :  { %100 = vmatpush.bf16.msra.mxu0 %v167_v6 }
  0x1e   :  { %101 = vmatpush.bf16.msra.mxu0 %v166_v7 }
  0x21   :  { %102 = vmatmul.bf16.vlgmr.msra.gmra.mxu0 %v165_v8 }
  0x9e   :  { %v103_v10 = vpop.f32.mrf.mxu0 }
  0x9f   :  { %v121_v11 = vadd.f32 %v174_v9, %v103_v10 }
  0xa1   :  { %123 = vst [vmem:[%s234_s3] sm:$0xff] %v121_v11 }
  0xa6   :  { %v105_v12 = vpop.f32.mrf.mxu0 }
  0xa7   :  { %v122_v13 = vadd.f32 %v174_v9, %v105_v12 }
  0xa9   :  { %124 = vst [vmem:[%s234_s3 + $0x8] sm:$0xff] %v122_v13 }

// kernel: ufnet_cnn_forward.5
= control target key start
LH: loop header
LB: loop body
LE: loop exit
PB: predicated region body
PF: predicated region fallthrough
CT: control target
= control target key end

     0   :  { %s1431_s25 = smov 0   ;;  %s1598_s0 = inlined_call_operand.vmem [shape: f32[2,16,32], index: 0, kind: input, shape index: {}]   ;;  %s1599_s1 = inlined_call_operand.vmem [shape: bf16[32,16], index: 1, kind: input, shape index: {}]   ;;  %s1600_s2 = inlined_call_operand.vmem [shape: bf16[32,32], index: 2, kind: input, shape index: {}]   ;;  %s1601_s3 = inlined_call_operand.vmem [shape: bf16[32,32], index: 3, kind: input, shape index: {}]   ;;  %s1602_s4 = inlined_call_operand.vmem [shape: bf16[48,16], index: 4, kind: input, shape index: {}]   ;;  %s1603_s5 = inlined_call_operand.vmem [shape: bf16[3,32,64], index: 5, kind: input, shape index: {}]   ;;  %s1604_s6 = inlined_call_operand.vmem [shape: f32[1,64], index: 6, kind: input, shape index: {}]   ;;  %s1605_s7 = inlined_call_operand.vmem [shape: bf16[3,64,32], index: 7, kind: input, shape index: {}]   ;;  %s1606_s8 = inlined_call_operand.vmem [shape: f32[1,32], index: 8, kind: input, shape index: {}]   ;;  %s1607_s9 = inlined_call_operand.vmem [shape: f32[1,32], index: 9, kind: input, shape index: {}]   ;;  %s1608_s10 = inlined_call_operand.vmem [shape: f32[1,32], index: 10, kind: input, shape index: {}]   ;;  %s1609_s11 = inlined_call_operand.vmem [shape: f32[1,32], index: 11, kind: input, shape index: {}]   ;;  %s1610_s12 = inlined_call_operand.vmem [shape: f32[1,32], index: 12, kind: input, shape index: {}]   ;;  %s1611_s13 = inlined_call_operand.vmem [shape: f32[2,16,32], index: 13, kind: output, shape index: {}]  }
   0x1 LB: > { %s1139_s26 = sadd.s32 4294967295, %s1358_s25   ;;  %p1143_p0 = scmp.ge.s32.totalorder %s1358_s25, 1  ;;  %s1358_s25 = sphi %s1431_s25, %s23_s25  }
   0x2   : > { %p387_p1 = scmp.lt.s32.totalorder %s1358_s25, 3 }
   0x4   : > { %p388_p2 = pnand %p1143_p0, %p387_p1 }
   0x5   : > { %p431_p3 = scmp.lt.s32.totalorder (!%p388_p2), %s1139_s26, 1 }
   0x6   : > { %391 = sbr.rel (%p388_p2) target bundleno = 1503 (0x5df), region = 72 }
   0xb   : > { %s1613_s26 = smov (!%p431_p3, %s1139_s26), 1  ;;  %v1300_v3 = vld [vmem:[%s1599_s1] sm:$0xff]  ;;  %vm459_vm0 = vcmask 130048   ;;  %v1301_v4 = vld [vmem:[%s1599_s1 + $0x8] sm:$0xff]  ;;  %vm510_vm1 = vcmask 261120   ;;  %v1360_v33 = vmov 32.0  }
   0xc   : > { %s1298_s27 = sshll.u32 %s1613_s26, 4  ;;  %v1303_v5 = vld [vmem:[%s1600_s2 + $0x8] sm:$0xff]  ;;  %v1302_v6 = vld [vmem:[%s1600_s2] sm:$0xff]  ;;  %1342 = vrcp.f32 %v1360_v33  ;;  %vm897_vm9 = vcmask 523264  }
   0xd   : > { %s435_s30 = scalar_lea.vmem %s1598_s0, %s1298_s27  ;;  %520 = vmatpush.bf16.msra.mxu2 %v1303_v5  ;;  %v1305_v7 = vld [vmem:[%s1601_s3 + $0x8] sm:$0xff]  ;;  %v1304_v8 = vld [vmem:[%s1601_s3] sm:$0xff]  ;;  %s440_s29 = scalar_lea.vmem %s1611_s13, %s1298_s27 }
   0xe   : > { %v442_v0 = vld [vmem:[%s435_s30] sm:$0xff]  ;;  %v443_v1 = vld [vmem:[%s435_s30 + $0x8] sm:$0xff] }
   0xf   : > { %v448_v2 = vpack.c.bf16 %v443_v1, %v442_v0  ;;  %v1336_v5 = vld [vmem:[%s1607_s9] ss:$0 sm:$0xff] }
  0x11   : > { %473 = vmatpush.bf16.msra.mxu0 %v448_v2  ;;  %521 = vmatpush.bf16.msra.mxu2 %v1302_v6 }
  0x12   : > { %v1343_v34 = vpop.eup %1342 }
  0x13   : > { %v579_v35 = vmul.f32 32.0, %v1343_v34  ;;  %vm583_vm2 = vweird.f32 %v1343_v34 }
  0x14   : > { %1156 = vmatmul.msk.bf16.vlgmr.msra.gmra.mxu0 %vm459_vm0, %v1300_v3 }
  0x15   : > { %558 = vmatpush.bf16.msrb.mxu2 %v1305_v7  ;;  %v580_v36 = vsub.f32 1.0, %v579_v35 }
  0x17   : > { %v581_v37 = vmul.f32 %v1343_v34, %v580_v36 }
  0x19   : > { %559 = vmatpush.bf16.msrb.mxu2 %v1304_v8  ;;  %v582_v38 = vadd.f32 %v1343_v34, %v581_v37 }
  0x1b   : > { %v1471_v39 = vsel %vm583_vm2, %v1343_v34, %v582_v38 }
  0x24   : > { %1157 = vmatmul.msk.bf16.gmra.mxu0 %vm459_vm0, %v1301_v4 }
  0x91   : > { %v475_v9 = vpop.f32.mrf.mxu0 }
  0x92   : > { %v485_v10 = vpack.c.bf16 %v475_v9, %v475_v9 }
  0x94   : > { %v495_v13 = vunpack.c.l.b16 %v485_v10  ;;  %v1337_v10 = vld [vmem:[%s1608_s10] ss:$0 sm:$0xff] }
  0x99   : > { %v477_v11 = vpop.f32.mrf.mxu0 }
  0x9a   : > { %v486_v12 = vpack.c.bf16 %v477_v11, %v477_v11 }
  0x9c   : > { %v496_v14 = vunpack.c.l.b16 %v486_v12 }
  0x9e   : > { %v497_v15 = vpack.c.b16 %v496_v14, %v495_v13 }
  0xa0   : > { %1166 = vmatmul.msk.bf16.vlgmr.msra.gmra.mxu2 %vm510_vm1, %v497_v15  ;;  %v1306_v15 = vld [vmem:[%s1602_s4] sm:$0xff] }
  0xa1   : > { %v480_v16 = vpop.f32.mrf.mxu0 }
  0xa2   : > { %v487_v17 = vpack.c.bf16 %v480_v16, %v480_v16  ;;  %v1307_v16 = vld [vmem:[%s1602_s4 + $0x8] sm:$0xff] }
  0xa4   : > { %v534_v20 = vunpack.c.l.b16 %v487_v17  ;;  %v1308_v17 = vld [vmem:[%s1602_s4 + $0x10] sm:$0xff] }
  0xa9   : > { %v482_v18 = vpop.f32.mrf.mxu0 }
  0xaa   : > { %v488_v19 = vpack.c.bf16 %v482_v18, %v482_v18  ;;  %v1310_v18 = vld [vmem:[%s1603_s5 + $0x8] sm:$0xff] }
  0xab   : > { %763 = vmatpush.bf16.msra.mxu2 %v1310_v18 }
  0xac   : > { %v535_v21 = vunpack.c.l.b16 %v488_v19  ;;  %v1309_v19 = vld [vmem:[%s1603_s5] sm:$0xff] }
  0xae   : > { %v536_v22 = vpack.c.b16 %v535_v21, %v534_v20  ;;  %v1312_v20 = vld [vmem:[%s1603_s5 + $0x18] sm:$0xff]  ;;  %v1311_v21 = vld [vmem:[%s1603_s5 + $0x10] sm:$0xff] }
  0xaf   : > { %764 = vmatpush.bf16.msra.mxu2 %v1309_v19  ;;  %729 = vmatpush.bf16.msra.mxu1 %v1312_v20 }
  0xb0   : > { %1175 = vmatmul.msk.bf16.vlgmr.msrb.gmra.mxu2 %vm510_vm1, %v536_v22  ;;  %v1314_v22 = vld [vmem:[%s1603_s5 + $0x28] sm:$0xff] }
  0xb1   : > { %802 = vmatpush.bf16.msrb.mxu0 %v1314_v22 }
  0xb3   : > { %730 = vmatpush.bf16.msra.mxu1 %v1311_v21 }
 0x123   : > { %v523_v23 = vpop.f32.mrf.mxu2 }
 0x12b   : > { %v525_v24 = vpop.f32.mrf.mxu2 }
 0x133   : > { %v561_v25 = vpop.f32.mrf.mxu2 }
 0x134   : > { %v566_v26 = vsub.f32 %v523_v23, %v561_v25 }
 0x136   : > { %v568_v27 = vadd.f32 %v566_v26, %v442_v0 }
 0x138   : > { %v572_v28 = vsel %vm510_vm1, %v568_v27, 0.0 }
 0x139   : > { %573 = vadd.xlane.f32.xlu0 %v572_v28 }
 0x13b   : > { %v563_v29 = vpop.f32.mrf.mxu2 }
 0x13c   : > { %v567_v30 = vsub.f32 %v525_v24, %v563_v29 }
 0x13e   : > { %v569_v31 = vadd.f32 %v567_v30, %v443_v1 }
 0x140   : > { %v575_v32 = vsel %vm510_vm1, %v569_v31, 0.0 }
 0x141   : > { %576 = vadd.xlane.f32.xlu0 %v575_v32 }
 0x1ac   : > { %v574_v40 = vpop.xlane.xlu0 %573 }
 0x1ad   : > { %v585_v41 = vmul.f32 %v1471_v39, %v574_v40 }
 0x1af   : > { %v587_v42 = vsub.f32 %v568_v27, %v585_v41  ;;  %v1313_v27 = vld [vmem:[%s1603_s5 + $0x20] sm:$0xff] }
 0x1b0   : > { %803 = vmatpush.bf16.msrb.mxu0 %v1313_v27 }
 0x1b1   : > { %v589_v43 = vmul.f32 %v587_v42, %v587_v42 }
 0x1b3   : > { %v591_v44 = vsel %vm510_vm1, %v589_v43, 0.0 }
 0x1b4   : > { %592 = vadd.xlane.f32.xlu1 %v591_v44  ;;  %v577_v45 = vpop.xlane.xlu0 %576 }
 0x1b5   : > { %v586_v46 = vmul.f32 %v1471_v39, %v577_v45 }
 0x1b7   : > { %v588_v47 = vsub.f32 %v569_v31, %v586_v46 }
 0x1b9   : > { %v590_v48 = vmul.f32 %v588_v47, %v588_v47 }
 0x1bb   : > { %v594_v49 = vsel %vm510_vm1, %v590_v48, 0.0 }
 0x1bc   : > { %595 = vadd.xlane.f32.xlu1 %v594_v49 }
 0x227   : > { %v593_v50 = vpop.xlane.xlu1 %592 }
 0x228   : > { %v597_v51 = vmul.f32 %v593_v50, %v1471_v39 }
 0x22a   : > { %v599_v52 = vadd.f32 1e-05, %v597_v51 }
 0x22c   : > { %1344 = vrsqrt.f32 %v599_v52  ;;  %vm607_vm4 = vweird.f32 %v599_v52 }
 0x22f   : > { %v596_v53 = vpop.xlane.xlu1 %595 }
 0x230   : > { %v598_v54 = vmul.f32 %v596_v53, %v1471_v39 }
 0x232   : > { %v1345_v55 = vpop.eup %1344  ;;  %v600_v56 = vadd.f32 1e-05, %v598_v54 }
 0x233   : > { %v602_v57 = vmul.f32 %v1345_v55, %v599_v52  ;;  %vm608_vm3 = vweird.f32 %v1345_v55  ;;  %v1338_v52 = vld [vmem:[%s1604_s6] ss:$0 sm:$0xff] }
 0x234   : > { %1346 = vrsqrt.f32 %v600_v56  ;;  %vm609_vm5 = vmor %vm607_vm4, %vm608_vm3  ;;  %vm617_vm7 = vweird.f32 %v600_v56 }
 0x235   : > { %v603_v58 = vmul.f32 %v1345_v55, %v602_v57 }
 0x237   : > { %v604_v59 = vmul.f32 0.5, %v603_v58 }
 0x239   : > { %v605_v60 = vsub.f32 1.5, %v604_v59 }
 0x23a   : > { %v1347_v61 = vpop.eup %1346 }
 0x23b   : > { %v606_v62 = vmul.f32 %v1345_v55, %v605_v60  ;;  %v612_v63 = vmul.f32 %v1347_v61, %v600_v56  ;;  %vm618_vm6 = vweird.f32 %v1347_v61 }
 0x23c   : > { %vm619_vm8 = vmor %vm617_vm7, %vm618_vm6 }
 0x23d   : > { %v613_v0 = vmul.f32 %v1347_v61, %v612_v63  ;;  %v610_v2 = vsel %vm609_vm5, %v1345_v55, %v606_v62  ;;  %v1318_v62 = vld [vmem:[%s1605_s7 + $0x18] sm:$0xff]  ;;  %v1317_v63 = vld [vmem:[%s1605_s7 + $0x10] sm:$0xff] }
 0x23e   : > { %v621_v4 = vmul.f32 %v610_v2, %v587_v42  ;;  %951 = vmatpush.bf16.msra.mxu0 %v1318_v62  ;;  %v1326_v2 = vld [vmem:[%s1605_s7 + $0x58] sm:$0xff] }
 0x23f   : > { %v614_v1 = vmul.f32 0.5, %v613_v0  ;;  %v1316_v0 = vld [vmem:[%s1605_s7 + $0x8] sm:$0xff] }
 0x240   : > { %v626_v9 = vmul.f32 %v1336_v5, %v621_v4  ;;  %v1321_v4 = vld [vmem:[%s1605_s7 + $0x30] sm:$0xff] }
 0x241   : > { %v615_v3 = vsub.f32 1.5, %v614_v1  ;;  %v1315_v1 = vld [vmem:[%s1605_s7] sm:$0xff] }
 0x242   : > { %v1485_v12 = vadd.f32 %v1337_v10, %v626_v9  ;;  %952 = vmatpush.bf16.msra.mxu0 %v1317_v63  ;;  %v1324_v9 = vld [vmem:[%s1605_s7 + $0x48] sm:$0xff] }
 0x243   : > { %v616_v6 = vmul.f32 %v1347_v61, %v615_v3  ;;  %v1322_v3 = vld [vmem:[%s1605_s7 + $0x38] sm:$0xff] }
 0x244   : > { %905 = vmatpush.bf16.msrb.mxu2 %v1322_v3 }
 0x245   : > { %v620_v7 = vsel %vm619_vm8, %v1347_v61, %v616_v6  ;;  %v1319_v6 = vld [vmem:[%s1605_s7 + $0x20] sm:$0xff] }
 0x246   : > { %v622_v8 = vmul.f32 %v620_v7, %v588_v47  ;;  %953 = vmatpush.bf16.msra.mxu0 %v1316_v0  ;;  %v1325_v7 = vld [vmem:[%s1605_s7 + $0x50] sm:$0xff] }
 0x248   : > { %v627_v11 = vmul.f32 %v1336_v5, %v622_v8  ;;  %906 = vmatpush.bf16.msrb.mxu2 %v1321_v4  ;;  %v1320_v5 = vld [vmem:[%s1605_s7 + $0x28] sm:$0xff] }
 0x24a   : > { %v1487_v13 = vadd.f32 %v1337_v10, %v627_v11  ;;  %954 = vmatpush.bf16.msra.mxu0 %v1315_v1 }
 0x24c   : > { %v639_v14 = vpack.c.bf16 %v1487_v13, %v1485_v12  ;;  %907 = vmatpush.bf16.msrb.mxu2 %v1320_v5 }
 0x24e   : > { %671 = vmatpush.bf16.msra.mxu3 %v639_v14 }
 0x250   : > { %908 = vmatpush.bf16.msrb.mxu2 %v1319_v6 }
 0x251   : > { %1188 = vmatmul.msk.bf16.vlgmr.msra.gmra.mxu3 %vm459_vm0, %v1306_v15 }
 0x252   : > { %1006 = vmatpush.bf16.msrb.mxu3 %v1326_v2 }
 0x256   : > { %1007 = vmatpush.bf16.msrb.mxu3 %v1325_v7 }
 0x25a   : > { %1008 = vmatpush.bf16.msrb.mxu3 %v1324_v9  ;;  %v1340_v9 = vld [vmem:[%s1609_s11] ss:$0 sm:$0xff] }
 0x261   : > { %1189 = vmatmul.msk.bf16.gmra.mxu3 %vm459_vm0, %v1307_v16 }
 0x271   : > { %1190 = vmatmul.msk.bf16.gmra.mxu3 %vm459_vm0, %v1308_v17 }
 0x2d4   : > { %v673_v23 = vpop.f32.mrf.mxu3 }
 0x2d5   : > { %v688_v24 = vpack.c.bf16 %v673_v23, %v673_v23 }
 0x2d7   : > { %v739_v28 = vunpack.c.l.b16 %v688_v24 }
 0x2dc   : > { %v675_v25 = vpop.f32.mrf.mxu3 }
 0x2dd   : > { %v689_v26 = vpack.c.bf16 %v675_v25, %v675_v25 }
 0x2df   : > { %v740_v29 = vunpack.c.l.b16 %v689_v26 }
 0x2e1   : > { %v741_v30 = vpack.c.b16 %v740_v29, %v739_v28 }
 0x2e3   : > { %1212 = vmatmul.msk.bf16.vlgmr.msra.gmra.mxu2 %vm510_vm1, %v741_v30 }
 0x2e4   : > { %v678_v31 = vpop.f32.mrf.mxu3 }
 0x2e5   : > { %v690_v32 = vpack.c.bf16 %v678_v31, %v678_v31 }
 0x2e7   : > { %v705_v35 = vunpack.c.l.b16 %v690_v32 }
 0x2ec   : > { %v680_v33 = vpop.f32.mrf.mxu3 }
 0x2ed   : > { %v691_v34 = vpack.c.bf16 %v680_v33, %v680_v33 }
 0x2ef   : > { %v706_v36 = vunpack.c.l.b16 %v691_v34 }
 0x2f1   : > { %v707_v37 = vpack.c.b16 %v706_v36, %v705_v35 }
 0x2f3   : > { %1203 = vmatmul.msk.bf16.vlgmr.msra.gmra.mxu1 %vm510_vm1, %v707_v37 }
 0x2f4   : > { %v683_v38 = vpop.f32.mrf.mxu3 }
 0x2f5   : > { %v692_v40 = vpack.c.bf16 %v683_v38, %v683_v38  ;;  %v1339_v38 = vld [vmem:[%s1606_s8] ss:$0 sm:$0xff] }
 0x2f7   : > { %v778_v43 = vunpack.c.l.b16 %v692_v40 }
 0x2fc   : > { %v685_v41 = vpop.f32.mrf.mxu3 }
 0x2fd   : > { %v693_v42 = vpack.c.bf16 %v685_v41, %v685_v41 }
 0x2ff   : > { %v779_v44 = vunpack.c.l.b16 %v693_v42 }
 0x301   : > { %v780_v45 = vpack.c.b16 %v779_v44, %v778_v43 }
 0x303   : > { %1225 = vmatmul.msk.bf16.vlgmr.msrb.gmra.mxu0 %vm510_vm1, %v780_v45 }
 0x366   : > { %v766_v47 = vpop.f32.mrf.mxu2 }
 0x36e   : > { %v768_v53 = vpop.f32.mrf.mxu2 }
 0x370   : > { %v732_v46 = vpop.f32.mrf.mxu1 }
 0x371   : > { %v767_v49 = vadd.f32 %v766_v47, %v732_v46 }
 0x378   : > { %v734_v50 = vpop.f32.mrf.mxu1 }
 0x379   : > { %v769_v54 = vadd.f32 %v768_v53, %v734_v50 }
 0x380   : > { %v805_v48 = vpop.f32.mrf.mxu0 }
 0x381   : > { %v810_v51 = vadd.f32 %v805_v48, %v767_v49 }
 0x383   : > { %v816_v56 = vadd.f32 %v1338_v52, %v810_v51 }
 0x385   : > { %v818_v59 = vmax.f32 %v816_v56, 0.0 }
 0x388   : > { %v807_v55 = vpop.f32.mrf.mxu0 }
 0x389   : > { %v811_v57 = vadd.f32 %v807_v55, %v769_v54 }
 0x38b   : > { %v817_v58 = vadd.f32 %v1338_v52, %v811_v57 }
 0x38d   : > { %v819_v60 = vmax.f32 %v817_v58, 0.0 }
 0x38f   : > { %v820_v61 = vpack.c.bf16 %v819_v60, %v818_v59 }
 0x391   : > { %828 = vmatpush.bf16.msrb.mxu1 %v820_v61 }
 0x394   : > { %1226 = vmatmul.msk.bf16.vlgmr.msrb.gmra.mxu1 %vm459_vm0, %v1306_v15  ;;  %v1323_v15 = vld [vmem:[%s1605_s7 + $0x40] sm:$0xff] }
 0x395   : > { %1009 = vmatpush.bf16.msrb.mxu3 %v1323_v15 }
 0x3a4   : > { %1227 = vmatmul.msk.bf16.gmra.mxu1 %vm459_vm0, %v1307_v16 }
 0x3b4   : > { %1228 = vmatmul.msk.bf16.gmra.mxu1 %vm459_vm0, %v1308_v17 }
 0x411   : > { %v830_v8 = vpop.f32.mrf.mxu1 }
 0x412   : > { %v845_v10 = vpack.c.bf16 %v830_v8, %v830_v8 }
 0x414   : > { %v917_v16 = vunpack.c.l.b16 %v845_v10 }
 0x419   : > { %v832_v11 = vpop.f32.mrf.mxu1 }
 0x41a   : > { %v846_v14 = vpack.c.bf16 %v832_v11, %v832_v11  ;;  %v1341_v11 = vld [vmem:[%s1610_s12] ss:$0 sm:$0xff] }
 0x41c   : > { %v918_v17 = vunpack.c.l.b16 %v846_v14 }
 0x41e   : > { %v919_v18 = vpack.c.b16 %v918_v17, %v917_v16 }
 0x420   : > { %1270 = vmatmul.msk.bf16.vlgmr.msra.gmra.mxu0 %vm897_vm9, %v919_v18 }
 0x421   : > { %v835_v19 = vpop.f32.mrf.mxu1 }
 0x422   : > { %v847_v20 = vpack.c.bf16 %v835_v19, %v835_v19 }
 0x424   : > { %v870_v23 = vunpack.c.l.b16 %v847_v20 }
 0x429   : > { %v837_v21 = vpop.f32.mrf.mxu1 }
 0x42a   : > { %v848_v22 = vpack.c.bf16 %v837_v21, %v837_v21 }
 0x42c   : > { %v871_v24 = vunpack.c.l.b16 %v848_v22 }
 0x42e   : > { %v872_v25 = vpack.c.b16 %v871_v24, %v870_v23 }
 0x430   : > { %1253 = vmatmul.msk.bf16.vlgmr.msrb.gmra.mxu2 %vm897_vm9, %v872_v25 }
 0x431   : > { %v840_v26 = vpop.f32.mrf.mxu1 }
 0x432   : > { %v849_v27 = vpack.c.bf16 %v840_v26, %v840_v26 }
 0x434   : > { %v972_v30 = vunpack.c.l.b16 %v849_v27 }
 0x439   : > { %v842_v28 = vpop.f32.mrf.mxu1 }
 0x43a   : > { %v850_v29 = vpack.c.bf16 %v842_v28, %v842_v28 }
 0x43c   : > { %v973_v31 = vunpack.c.l.b16 %v850_v29 }
 0x43e   : > { %v974_v32 = vpack.c.b16 %v973_v31, %v972_v30 }
 0x440   : > { %1295 = vmatmul.msk.bf16.vlgmr.msrb.gmra.mxu3 %vm897_vm9, %v974_v32 }
 0x49d   : > { %v956_v34 = vpop.f32.mrf.mxu0 }
 0x4a5   : > { %v958_v43 = vpop.f32.mrf.mxu0 }
 0x4b3   : > { %v910_v33 = vpop.f32.mrf.mxu2 }
 0x4b4   : > { %v957_v35 = vadd.f32 %v956_v34, %v910_v33 }
 0x4bb   : > { %v912_v41 = vpop.f32.mrf.mxu2 }
 0x4bc   : > { %v959_v44 = vadd.f32 %v958_v43, %v912_v41 }
 0x4c3   : > { %v1011_v36 = vpop.f32.mrf.mxu3 }
 0x4c4   : > { %v1016_v37 = vadd.f32 %v1011_v36, %v957_v35 }
 0x4c6   : > { %v1018_v40 = vadd.f32 %v1016_v37, %v1485_v12 }
 0x4c8   : > { %v1024_v42 = vadd.f32 %v1339_v38, %v1018_v40 }
 0x4ca   : > { %v1028_v45 = vsel %vm510_vm1, %v1024_v42, 0.0 }
 0x4cb   : > { %1029 = vadd.xlane.f32.xlu2 %v1028_v45  ;;  %v1013_v46 = vpop.f32.mrf.mxu3 }
 0x4cc   : > { %v1017_v47 = vadd.f32 %v1013_v46, %v959_v44 }
 0x4ce   : > { %v1019_v48 = vadd.f32 %v1017_v47, %v1487_v13 }
 0x4d0   : > { %v1025_v49 = vadd.f32 %v1339_v38, %v1019_v48 }
 0x4d2   : > { %v1031_v50 = vsel %vm510_vm1, %v1025_v49, 0.0 }
 0x4d3   : > { %1032 = vadd.xlane.f32.xlu2 %v1031_v50 }
 0x53e   : > { %v1030_v51 = vpop.xlane.xlu2 %1029 }
 0x53f   : > { %v1034_v52 = vmul.f32 %v1030_v51, %v1471_v39 }
 0x541   : > { %v1036_v53 = vsub.f32 %v1024_v42, %v1034_v52 }
 0x543   : > { %v1038_v12 = vmul.f32 %v1036_v53, %v1036_v53 }
 0x545   : > { %v1040_v54 = vsel %vm510_vm1, %v1038_v12, 0.0 }
 0x546   : > { %1041 = vadd.xlane.f32.xlu0 %v1040_v54  ;;  %v1033_v55 = vpop.xlane.xlu2 %1032 }
 0x547   : > { %v1035_v56 = vmul.f32 %v1033_v55, %v1471_v39 }
 0x549   : > { %v1037_v57 = vsub.f32 %v1025_v49, %v1035_v56 }
 0x54b   : > { %v1039_v58 = vmul.f32 %v1037_v57, %v1037_v57 }
 0x54d   : > { %v1043_v59 = vsel %vm510_vm1, %v1039_v58, 0.0 }
 0x54e   : > { %1044 = vadd.xlane.f32.xlu1 %v1043_v59 }
 0x5b9   : > { %v1042_v13 = vpop.xlane.xlu0 %1041 }
 0x5ba   : > { %v1046_v60 = vmul.f32 %v1042_v13, %v1471_v39 }
 0x5bc   : > { %v1048_v61 = vadd.f32 1e-05, %v1046_v60 }
 0x5be   : > { %1348 = vrsqrt.f32 %v1048_v61  ;;  %vm1056_vm11 = vweird.f32 %v1048_v61 }
 0x5c1   : > { %v1045_v62 = vpop.xlane.xlu1 %1044 }
 0x5c2   : > { %v1047_v63 = vmul.f32 %v1045_v62, %v1471_v39 }
 0x5c4   : > { %v1349_v0 = vpop.eup %1348  ;;  %v1049_v1 = vadd.f32 1e-05, %v1047_v63 }
 0x5c5   : > { %v1051_v2 = vmul.f32 %v1349_v0, %v1048_v61  ;;  %vm1057_vm10 = vweird.f32 %v1349_v0 }
 0x5c6   : > { %1350 = vrsqrt.f32 %v1049_v1  ;;  %vm1058_vm12 = vmor %vm1056_vm11, %vm1057_vm10  ;;  %vm1066_vm14 = vweird.f32 %v1049_v1 }
 0x5c7   : > { %v1052_v3 = vmul.f32 %v1349_v0, %v1051_v2 }
 0x5c9   : > { %v1053_v4 = vmul.f32 0.5, %v1052_v3 }
 0x5cb   : > { %v1054_v5 = vsub.f32 1.5, %v1053_v4 }
 0x5cc   : > { %v1351_v6 = vpop.eup %1350 }
 0x5cd   : > { %v1055_v7 = vmul.f32 %v1349_v0, %v1054_v5  ;;  %v1061_v8 = vmul.f32 %v1351_v6, %v1049_v1  ;;  %vm1067_vm13 = vweird.f32 %v1351_v6 }
 0x5ce   : > { %vm1068_vm15 = vmor %vm1066_vm14, %vm1067_vm13 }
 0x5cf   : > { %v1059_v10 = vsel %vm1058_vm12, %v1349_v0, %v1055_v7  ;;  %v1062_v39 = vmul.f32 %v1351_v6, %v1061_v8 }
 0x5d0   : > { %v1070_v14 = vmul.f32 %v1059_v10, %v1036_v53 }
 0x5d1   : > { %v1063_v15 = vmul.f32 0.5, %v1062_v39 }
 0x5d2   : > { %v1075_v16 = vmul.f32 %v1340_v9, %v1070_v14 }
 0x5d3   : > { %v1064_v17 = vsub.f32 1.5, %v1063_v15 }
 0x5d4   : > { %v1080_v18 = vadd.f32 %v1341_v11, %v1075_v16 }
 0x5d5   : > { %v1065_v19 = vmul.f32 %v1351_v6, %v1064_v17 }
 0x5d6   : > { %1082 = vst.msk [vmem:[%s440_s29] sm:$0xff] %vm510_vm1, %v1080_v18 }
 0x5d7   : > { %v1069_v20 = vsel %vm1068_vm15, %v1351_v6, %v1065_v19 }
 0x5d8   : > { %v1071_v21 = vmul.f32 %v1069_v20, %v1037_v57 }
 0x5da   : > { %v1076_v22 = vmul.f32 %v1340_v9, %v1071_v21 }
 0x5dc   : > { %v1081_v23 = vadd.f32 %v1341_v11, %v1076_v22 }
 0x5de   : > { %1083 = vst.msk [vmem:[%s440_s29 + $0x8] sm:$0xff] %vm510_vm1, %v1081_v23 }
 0x5df PF: > { %s23_s25 = sadd.s32 1, %s1358_s25  }
 0x5e0   : > { %p20_p4 = scmp.ge.s32.totalorder %s23_s25, 4  }
 0x5e2   :  { %22 = sbr.rel (!%p20_p4) target bundleno = 1 (0x1), region = 106 }

// kernel: ufnet_cnn_forward.7
= control target key start
LH: loop header
LB: loop body
LE: loop exit
PB: predicated region body
PF: predicated region fallthrough
CT: control target
= control target key end

     0   :  { %s2332_s0 = inlined_call_operand.vmem [shape: f32[2,8,32], index: 0, kind: input, shape index: {}]   ;;  %s2333_s1 = inlined_call_operand.vmem [shape: f32[2,16,32], index: 1, kind: input, shape index: {}]   ;;  %s2334_s2 = inlined_call_operand.vmem [shape: f32[8,8], index: 2, kind: input, shape index: {}]   ;;  %s2335_s3 = inlined_call_operand.vmem [shape: bf16[32,96], index: 3, kind: input, shape index: {}]   ;;  %s2336_s4 = inlined_call_operand.vmem [shape: f32[1,96], index: 4, kind: input, shape index: {}]   ;;  %s2337_s5 = inlined_call_operand.vmem [shape: bf16[32,32], index: 5, kind: input, shape index: {}]   ;;  %s2338_s6 = inlined_call_operand.vmem [shape: f32[1,32], index: 6, kind: input, shape index: {}]   ;;  %s2339_s7 = inlined_call_operand.vmem [shape: f32[1,32], index: 7, kind: input, shape index: {}]   ;;  %s2340_s8 = inlined_call_operand.vmem [shape: f32[1,32], index: 8, kind: input, shape index: {}]   ;;  %s2341_s9 = inlined_call_operand.vmem [shape: bf16[32,32], index: 9, kind: input, shape index: {}]   ;;  %s2342_s10 = inlined_call_operand.vmem [shape: f32[1,32], index: 10, kind: input, shape index: {}]   ;;  %s2343_s11 = inlined_call_operand.vmem [shape: bf16[32,64], index: 11, kind: input, shape index: {}]   ;;  %s2344_s12 = inlined_call_operand.vmem [shape: f32[1,64], index: 12, kind: input, shape index: {}]   ;;  %s2345_s13 = inlined_call_operand.vmem [shape: bf16[32,32], index: 13, kind: input, shape index: {}]   ;;  %s2346_s14 = inlined_call_operand.vmem [shape: f32[1,32], index: 14, kind: input, shape index: {}]   ;;  %s2347_s15 = inlined_call_operand.vmem [shape: f32[1,32], index: 15, kind: input, shape index: {}]   ;;  %s2348_s16 = inlined_call_operand.vmem [shape: f32[1,32], index: 16, kind: input, shape index: {}]   ;;  %s2349_s17 = inlined_call_operand.vmem [shape: bf16[32,64], index: 17, kind: input, shape index: {}]   ;;  %s2350_s18 = inlined_call_operand.vmem [shape: f32[1,64], index: 18, kind: input, shape index: {}]   ;;  %s2351_s19 = inlined_call_operand.vmem [shape: bf16[64,32], index: 19, kind: input, shape index: {}]   ;;  %s2352_s20 = inlined_call_operand.vmem [shape: f32[1,32], index: 20, kind: input, shape index: {}]   ;;  %s2353_s21 = inlined_call_operand.vmem [shape: f32[1,32], index: 21, kind: input, shape index: {}]   ;;  %s2354_s22 = inlined_call_operand.vmem [shape: f32[1,32], index: 22, kind: input, shape index: {}]   ;;  %s2355_s23 = inlined_call_operand.vmem [shape: f32[2,8,32], index: 23, kind: output, shape index: {}]  }
   0x1   :  { %2369 = sst [smem:[#allocation2_spill]] %s2332_s0 }
   0x2   :  { %2370 = sst [smem:[#allocation3_spill]] %s2333_s1 }
   0x3   :  { %2371 = sst [smem:[#allocation4_spill]] %s2334_s2 }
   0x4   :  { %2372 = sst [smem:[#allocation5_spill]] %s2335_s3 }
   0x5   :  { %2373 = sst [smem:[#allocation6_spill]] %s2336_s4  ;;  %s2059_s4 = smov 0  }
   0x6   :  { %2374 = sst [smem:[#allocation7_spill]] %s2337_s5 }
   0x7   :  { %2375 = sst [smem:[#allocation8_spill]] %s2338_s6 }
   0x8   :  { %2376 = sst [smem:[#allocation9_spill]] %s2339_s7 }
   0x9 LB: > { %s1745_s30 = sadd.s32 4294967295, %s1925_s4   ;;  %p1749_p0 = scmp.ge.s32.totalorder %s1925_s4, 1  ;;  %s1925_s4 = sphi %s2059_s4, %s33_s4  }
   0xa   : > { %p646_p1 = scmp.lt.s32.totalorder %s1925_s4, 3 }
   0xc   : > { %p647_p2 = pnand %p1749_p0, %p646_p1 }
   0xd   : > { %s2377_s5 = sld [smem:[#allocation5_spill]] (!%p647_p2)  ;;  %p713_p3 = scmp.lt.s32.totalorder (!%p647_p2), %s1745_s30, 1 }
   0xe   : > { %650 = sbr.rel (%p647_p2) target bundleno = 3905 (0xf41), region = 112  ;;  %s2378_s7 = sld [smem:[#allocation2_spill]] (!%p647_p2) }
   0xf   : > { %s2379_s0 = sld [smem:[#allocation6_spill]] (!%p647_p2)  ;;  %s2361_s24 = smov (!%p647_p2), 88  }
  0x10   : > { %s2368_s25 = smov (!%p647_p2), 96   ;;  %s2364_s1 = smov (!%p647_p2), 120  }
  0x11   : > { %s2360_s26 = smov (!%p647_p2), 80   ;;  %s2359_s6 = smov (!%p647_p2), 72  }
  0x12   : > { %s2362_s27 = smov (!%p647_p2), 112   ;;  %s2380_s29 = sld [smem:[#allocation7_spill]] (!%p647_p2) }
  0x13   : > { %v1835_v0 = vld [vmem:[%s2377_s5 + $0x8] sm:$0xff]  ;;  %v1834_v1 = vld [vmem:[%s2377_s5] sm:$0xff]  ;;  %s2394_s30 = smov (!%p713_p3, %s1745_s30), 1  ;;  %vm752_vm0 = vcmask 261120   ;;  %vm777_vm1 = vcmask 64512   ;;  %vm816_vm2 = vcmask 1043456  }
  0x14   : > { %762 = vmatpush.bf16.msra.mxu0 %v1835_v0  ;;  %s2358_s2 = sshll.u32 %s2394_s30, 3  ;;  %s1934_s3 = smov 40   ;;  %vm1235_vm7 = vcmask 130048   ;;  %vm1629_vm11 = vcmask 523264  }
  0x15   : > { %s716_s28 = scalar_lea.vmem %s2378_s7, %s2358_s2  ;;  %v1866_v4 = vld [vmem:[%s2379_s0] ss:$0 sm:$0xff]  ;;  %s2381_s7 = sld [smem:[#allocation4_spill]] }
  0x16   : > { %v2081_v2 = vld [vmem:[%s716_s28] sm:$0xff]  ;;  %s1933_s28 = smov 56   ;;  %s1935_s0 = smov 64  }
  0x17   : > { %v731_v3 = vpack.c.bf16 %v2081_v2, %v2081_v2  ;;  %s2385_s2 = smov 96  }
  0x18   : > { %763 = vmatpush.bf16.msra.mxu0 %v1834_v1  ;;  %v769_v14 = vld [vmem:[%s2380_s29] sm:$0xf]  ;;  %v770_v62 = vld [vmem:[%s2380_s29 + $0x4] sm:$0xf] }
  0x19   : > { %v916_v17 = vsel %vm816_vm2, %v769_v14, 0  ;;  %v897_v63 = vsel %vm816_vm2, %v770_v62, 0 }
  0x1b   : > { %1762 = vmatmul.msk.bf16.vlgmr.msra.gmra.mxu0 %vm752_vm0, %v731_v3  ;;  %v2118_v22 = vld [vmem:[%s2381_s7] sm:$0xff]  ;;  %s2366_s7 = smov 104  }
  0x1c   : > { %906 = vmatpush.bf16.msrb.mxu0 %v897_v63 }
  0x98   : > { %v765_v5 = vpop.f32.mrf.mxu0 }
  0x99   : > { %v766_v6 = vadd.f32 %v1866_v4, %v765_v5 }
  0x9b   : > { %v2089_v7 = vpack.c.bf16 %v766_v6, %v766_v6 }
  0x9d   : > { %836 = vrot.lane.b32.xlu2 %v2089_v7, %s2361_s24  ;;  %775 = vrot.lane.b32.xlu0 %v2089_v7, %s2368_s25  ;;  %s2387_s24 = smov 120  }
  0xa0   : > { %v767_v8 = vpop.f32.mrf.mxu0 }
  0xa5   : > { %834 = vrot.lane.b32.xlu2 %v2089_v7, %s2364_s1  ;;  %s2388_s1 = smov 112  }
  0xad   : > { %933 = vrot.lane.b32.xlu2 %v2089_v7, %s2360_s26  ;;  %s2384_s26 = sld [smem:[#allocation9_spill]] }
  0xb5   : > { %1012 = vrot.lane.b32.xlu2 %v2089_v7, %s2359_s6  ;;  %s1833_s6 = sshll.u32 %s2394_s30, 4 }
  0xbd   : > { %931 = vrot.lane.b32.xlu2 %v2089_v7, %s2362_s27  ;;  %s2389_s27 = smov 88  }
  0xf7   : > { %v837_v9 = vpop.permute.xlu2 %836 }
  0xf8   : > { %v842_v10 = vsel %vm777_vm1, %v837_v9, 0 }
  0xf9   : > { %851 = vmatpush.bf16.xpose.msra.mxu3 %v842_v10 }
  0xff   : > { %v835_v11 = vpop.permute.xlu2 %834 }
 0x100   : > { %1765 = vmatmul.msk.bf16.vlgmr.msra.gmra.mxu3 %vm777_vm1, %v835_v11 }
 0x107   : > { %v934_v12 = vpop.permute.xlu2 %933 }
 0x108   : > { %v939_v13 = vsel %vm777_vm1, %v934_v12, 0 }
 0x109   : > { %948 = vmatpush.bf16.xpose.msrb.mxu3 %v939_v13 }
 0x10f   : > { %v1013_v15 = vpop.permute.xlu2 %1012  ;;  %v776_v16 = vpop.permute.xlu0 %775 }
 0x110   : > { %v782_v18 = vsel %vm777_vm1, %v776_v16, 0  ;;  %v1018_v20 = vsel %vm777_vm1, %v1013_v15, 0 }
 0x111   : > { %791 = vmatpush.bf16.xpose.msra.mxu1 %v782_v18 }
 0x117   : > { %v932_v19 = vpop.permute.xlu2 %931 }
 0x118   : > { %1763 = vmatmul.msk.bf16.vlgmr.msra.gmra.mxu1 %vm777_vm1, %v2089_v7  ;;  %1769 = vmatmul.msk.bf16.vlgmr.msrb.gmra.mxu3 %vm777_vm1, %v932_v19 }
 0x119   : > { %925 = vmatpush.bf16.msrb.mxu1 %v916_v17 }
 0x11d   : > { %1027 = vmatpush.bf16.xpose.msra.mxu1 %v1018_v20 }
 0x183   : > { %v853_v21 = vpop.f32.mrf.mxu3 }
 0x184   : > { %v857_v23 = vmul.f32 0.35355338, %v853_v21 }
 0x186   : > { %v858_v24 = vadd.f32 %v857_v23, %v2118_v22 }
 0x188   : > { %v859_v25 = vsel %vm777_vm1, %v858_v24, -inf }
 0x189   : > { %860 = vmax.xlane.f32.xlu2 %v859_v25 }
 0x18b   : > { %v855_v26 = vpop.f32.mrf.mxu3 }
 0x195   : > { %v793_v27 = vpop.f32.mrf.mxu1 }
 0x196   : > { %v797_v28 = vmul.f32 0.35355338, %v793_v27 }
 0x198   : > { %v798_v29 = vadd.f32 %v797_v28, %v2118_v22 }
 0x19a   : > { %v799_v30 = vsel %vm777_vm1, %v798_v29, -inf }
 0x19b   : > { %v950_v31 = vpop.f32.mrf.mxu3  ;;  %800 = vmax.xlane.f32.xlu0 %v799_v30 }
 0x19c   : > { %v954_v32 = vmul.f32 0.35355338, %v950_v31 }
 0x19d   : > { %v795_v33 = vpop.f32.mrf.mxu1 }
 0x19e   : > { %v2125_v34 = vadd.f32 %v954_v32, %v2118_v22 }
 0x1a0   : > { %v956_v35 = vsel %vm777_vm1, %v2125_v34, -inf }
 0x1a3   : > { %v952_v36 = vpop.f32.mrf.mxu3  ;;  %957 = vmax.xlane.f32.xlu0 %v956_v35 }
 0x1fc   : > { %v861_v37 = vpop.xlane.xlu2 %860 }
 0x1fd   : > { %v862_v38 = vsub.f32 %v858_v24, %v861_v37 }
 0x1ff   : > { %v863_v39 = vmul.f32 1.442695, %v862_v38 }
 0x201   : > { %1879 = vpow2.f32 %v863_v39  ;;  %v771_v39 = vld [vmem:[%s2380_s29 + $0x8] sm:$0xf] }
 0x207   : > { %v1880_v40 = vpop.eup %1879 }
 0x208   : > { %v865_v41 = vsel %vm777_vm1, %v1880_v40, 0.0 }
 0x209   : > { %866 = vadd.xlane.f32.xlu0 %v865_v41 }
 0x20e   : > { %v801_v42 = vpop.xlane.xlu0 %800 }
 0x20f   : > { %v802_v43 = vsub.f32 %v798_v29, %v801_v42 }
 0x211   : > { %v803_v44 = vmul.f32 1.442695, %v802_v43 }
 0x213   : > { %1881 = vpow2.f32 %v803_v44 }
 0x216   : > { %v958_v47 = vpop.xlane.xlu0 %957 }
 0x217   : > { %v959_v11 = vsub.f32 %v2125_v34, %v958_v47 }
 0x219   : > { %v1882_v45 = vpop.eup %1881  ;;  %v960_v12 = vmul.f32 1.442695, %v959_v11  ;;  %v1837_v11 = vld [vmem:[%s2341_s9 + $0x8] sm:$0xff] }
 0x21a   : > { %v805_v46 = vsel %vm777_vm1, %v1882_v45, 0.0 }
 0x21b   : > { %806 = vadd.xlane.f32.xlu1 %v805_v46 }
 0x21d   : > { %871 = vrot.lane.b32.xlu0 %v2089_v7, %s1933_s28  ;;  %s2386_s28 = smov 104  }
 0x225   : > { %1047 = vrot.lane.b32.xlu0 %v2089_v7, %s1934_s3  ;;  %s2382_s3 = sld [smem:[#allocation8_spill]] }
 0x234   : > { %811 = vrot.lane.b32.xlu1 %v2089_v7, %s1935_s0  ;;  %s1937_s0 = smov 48  }
 0x23c   : > { %1010 = vrot.lane.b32.xlu1 %v2089_v7, %s2366_s7  ;;  %s2390_s7 = smov 80  }
 0x27c   : > { %v867_v48 = vpop.xlane.xlu0 %866 }
 0x28e   : > { %v807_v52 = vpop.xlane.xlu1 %806 }
 0x28f   : > { %v872_v49 = vpop.permute.xlu0 %871  ;;  %1883 = vrcp.f32 %v807_v52 }
 0x290   : > { %v877_v57 = vsel %vm816_vm2, %v872_v49, 0  ;;  %1885 = vrcp.f32 %v867_v48 }
 0x291   : > { %1887 = vpow2.f32 %v960_v12  ;;  %v1836_v12 = vld [vmem:[%s2341_s9] sm:$0xff] }
 0x295   : > { %v1884_v53 = vpop.eup %1883 }
 0x296   : > { %v809_v54 = vmul.f32 %v1884_v53, %v1882_v45  ;;  %v1886_v59 = vpop.eup %1885 }
 0x297   : > { %v1048_v50 = vpop.permute.xlu0 %1047  ;;  %v869_v60 = vmul.f32 %v1886_v59, %v1880_v40  ;;  %v1888_v21 = vpop.eup %1887  ;;  %v994_v40 = vsel %vm816_vm2, %v771_v39, 0 }
 0x298   : > { %v1053_v51 = vsel %vm816_vm2, %v1048_v50, 0  ;;  %v810_v58 = vpack.c.bf16 %v809_v54, %v809_v54  ;;  %v962_v23 = vsel %vm777_vm1, %v1888_v21, 0.0  ;;  %1003 = vmatpush.bf16.msra.mxu0 %v994_v40 }
 0x299   : > { %1062 = vmatpush.bf16.msra.mxu3 %v1053_v51  ;;  %v870_v61 = vpack.c.bf16 %v869_v60, %v869_v60  ;;  %v1867_v51 = vld [vmem:[%s2382_s3] ss:$0 sm:$0xff]  ;;  %s2383_s3 = sld [smem:[#allocation3_spill]] }
 0x2a6   : > { %v812_v55 = vpop.permute.xlu1 %811 }
 0x2a7   : > { %v818_v56 = vsel %vm816_vm2, %v812_v55, 0 }
 0x2a8   : > { %827 = vmatpush.bf16.msra.mxu2 %v818_v56 }
 0x2ab   : > { %1764 = vmatmul.msk.bf16.vlgmr.msra.gmra.mxu2 %vm777_vm1, %v810_v58  ;;  %v1839_v58 = vld [vmem:[%s2343_s11 + $0x8] sm:$0xff] }
 0x2ac   : > { %886 = vmatpush.bf16.msrb.mxu2 %v877_v57  ;;  %v1938_v57 = vmov 32.0  }
 0x2ae   : > { %v1011_v6 = vpop.permute.xlu1 %1010 }
 0x2bb   : > { %1766 = vmatmul.msk.bf16.vlgmr.msrb.gmra.mxu2 %vm777_vm1, %v870_v61 }
 0x32e   : > { %v829_v0 = vpop.f32.mrf.mxu2 }
 0x32f   : > { %v833_v1 = vpack.c.bf16 %v829_v0, %v829_v0 }
 0x331   : > { %1768 = vmatmul.msk.bf16.vlgmr.msrb.gmra.mxu1 %vm777_vm1, %v833_v1 }
 0x332   : > { %1201 = vmatpush.bf16.msrb.mxu1 %v1839_v58 }
 0x336   : > { %v831_v3 = vpop.f32.mrf.mxu2 }
 0x33e   : > { %v888_v4 = vpop.f32.mrf.mxu2 }
 0x33f   : > { %v892_v5 = vpack.c.bf16 %v888_v4, %v888_v4 }
 0x341   : > { %1767 = vmatmul.msk.bf16.vlgmr.msrb.gmra.mxu0 %vm777_vm1, %v892_v5  ;;  %1772 = vmatmul.msk.bf16.vlgmr.msra.gmra.mxu1 %vm777_vm1, %v1011_v6 }
 0x342   : > { %1164 = vmatpush.bf16.msrb.mxu0 %v1837_v11 }
 0x346   : > { %v890_v8 = vpop.f32.mrf.mxu2  ;;  %1165 = vmatpush.bf16.msrb.mxu0 %v1836_v12 }
 0x3ae   : > { %v927_v9 = vpop.f32.mrf.mxu1 }
 0x3b6   : > { %v929_v10 = vpop.f32.mrf.mxu1 }
 0x3be   : > { %v908_v13 = vpop.f32.mrf.mxu0  ;;  %v1029_v14 = vpop.f32.mrf.mxu1 }
 0x3bf   : > { %v928_v15 = vadd.f32 %v927_v9, %v908_v13  ;;  %v1033_v16 = vmul.f32 0.35355338, %v1029_v14  ;;  %v1838_v9 = vld [vmem:[%s2343_s11] sm:$0xff] }
 0x3c0   : > { %1202 = vmatpush.bf16.msrb.mxu1 %v1838_v9 }
 0x3c1   : > { %v1034_v17 = vadd.f32 %v1033_v16, %v2118_v22 }
 0x3c3   : > { %v1035_v18 = vsel %vm777_vm1, %v1034_v17, -inf }
 0x3c4   : > { %1036 = vmax.xlane.f32.xlu1 %v1035_v18 }
 0x3c6   : > { %v910_v19 = vpop.f32.mrf.mxu0  ;;  %v1031_v20 = vpop.f32.mrf.mxu1 }
 0x3cc   : > { %963 = vadd.xlane.f32.xlu1 %v962_v23  ;;  %v1868_v23 = vld [vmem:[%s2384_s26] ss:$0 sm:$0xff] }
 0x437   : > { %v1037_v24 = vpop.xlane.xlu1 %1036 }
 0x438   : > { %v1038_v25 = vsub.f32 %v1034_v17, %v1037_v24 }
 0x43a   : > { %v1039_v26 = vmul.f32 1.442695, %v1038_v25  ;;  %v1869_v25 = vld [vmem:[%s2340_s8] ss:$0 sm:$0xff] }
 0x43c   : > { %1889 = vpow2.f32 %v1039_v26 }
 0x43f   : > { %v964_v22 = vpop.xlane.xlu1 %963 }
 0x440   : > { %1891 = vrcp.f32 %v964_v22 }
 0x442   : > { %v1890_v27 = vpop.eup %1889 }
 0x443   : > { %v1041_v28 = vsel %vm777_vm1, %v1890_v27, 0.0 }
 0x444   : > { %1042 = vadd.xlane.f32.xlu2 %v1041_v28 }
 0x446   : > { %v1892_v30 = vpop.eup %1891 }
 0x447   : > { %v966_v32 = vmul.f32 %v1892_v30, %v1888_v21  ;;  %v1870_v30 = vld [vmem:[%s2344_s12] ss:$0 sm:$0xff] }
 0x449   : > { %v967_v37 = vpack.c.bf16 %v966_v32, %v966_v32 }
 0x45c   : > { %968 = vrot.lane.b32.xlu2 %v2089_v7, %s1937_s0  ;;  %v772_v7 = vld [vmem:[%s2380_s29 + $0xc] sm:$0xf]  ;;  %s721_s0 = scalar_lea.vmem %s2383_s3, %s1833_s6  ;;  %s2391_s6 = smov 72  }
 0x45d   : > { %v1073_v38 = vsel %vm816_vm2, %v772_v7, 0  ;;  %v728_v6 = vld [vmem:[%s721_s0] sm:$0xff]  ;;  %v729_v8 = vld [vmem:[%s721_s0 + $0x8] sm:$0xff] }
 0x45e   : > { %v1171_v10 = vpack.c.bf16 %v729_v8, %v728_v6 }
 0x460   : > { %1792 = vmatmul.msk.bf16.vlgmr.msrb.gmra.mxu1 %vm752_vm0, %v1171_v10 }
 0x4b7   : > { %v1043_v29 = vpop.xlane.xlu2 %1042 }
 0x4b8   : > { %1893 = vrcp.f32 %v1043_v29 }
 0x4b9   : > { %1895 = vrcp.f32 %v1938_v57 }
 0x4be   : > { %v1894_v31 = vpop.eup %1893 }
 0x4bf   : > { %v1045_v33 = vmul.f32 %v1894_v31, %v1890_v27  ;;  %v969_v34 = vpop.permute.xlu2 %968  ;;  %v1896_v59 = vpop.eup %1895 }
 0x4c0   : > { %v974_v35 = vsel %vm816_vm2, %v969_v34, 0  ;;  %v1101_v60 = vmul.f32 32.0, %v1896_v59  ;;  %vm1105_vm3 = vweird.f32 %v1896_v59 }
 0x4c1   : > { %v1046_v36 = vpack.c.bf16 %v1045_v33, %v1045_v33  ;;  %983 = vmatpush.bf16.msra.mxu2 %v974_v35 }
 0x4c2   : > { %v1102_v61 = vsub.f32 1.0, %v1101_v60 }
 0x4c3   : > { %1773 = vmatmul.msk.bf16.vlgmr.msra.gmra.mxu3 %vm777_vm1, %v1046_v36  ;;  %v1871_v36 = vld [vmem:[%s2342_s10] ss:$0 sm:$0xff] }
 0x4c4   : > { %1770 = vmatmul.msk.bf16.vlgmr.msra.gmra.mxu2 %vm777_vm1, %v967_v37  ;;  %v1103_v62 = vmul.f32 %v1896_v59, %v1102_v61 }
 0x4c5   : > { %1082 = vmatpush.bf16.msrb.mxu2 %v1073_v38 }
 0x4c6   : > { %v1104_v63 = vadd.f32 %v1896_v59, %v1103_v62 }
 0x4dd   : > { %v1204_v29 = vpop.f32.mrf.mxu1 }
 0x4de   : > { %v1205_v31 = vadd.f32 %v1870_v30, %v1204_v29 }
 0x4e5   : > { %v1206_v32 = vpop.f32.mrf.mxu1 }
 0x4e6   : > { %v1207_v33 = vadd.f32 %v1870_v30, %v1206_v32 }
 0x4e8   : > { %v2208_v34 = vpack.c.bf16 %v1207_v33, %v1205_v31 }
 0x4ea   : > { %1249 = vrot.lane.b32.xlu2 %v2208_v34, %s2385_s2  ;;  %v1219_v35 = vsel %vm777_vm1, %v2208_v34, 0 }
 0x4eb   : > { %1228 = vmatpush.bf16.xpose.msrb.mxu3 %v1219_v35 }
 0x544   : > { %v1250_v40 = vpop.permute.xlu2 %1249 }
 0x545   : > { %1262 = vmatpush.bf16.msra.mxu2 %v1250_v40 }
 0x546   : > { %v1064_v41 = vpop.f32.mrf.mxu3 }
 0x547   : > { %v1068_v42 = vpack.c.bf16 %v1064_v41, %v1064_v41  ;;  %v985_v43 = vpop.f32.mrf.mxu2 }
 0x548   : > { %v989_v44 = vpack.c.bf16 %v985_v43, %v985_v43 }
 0x549   : > { %1774 = vmatmul.msk.bf16.vlgmr.msrb.gmra.mxu2 %vm777_vm1, %v1068_v42 }
 0x54a   : > { %1771 = vmatmul.msk.bf16.vlgmr.msra.gmra.mxu0 %vm777_vm1, %v989_v44 }
 0x54e   : > { %v1066_v45 = vpop.f32.mrf.mxu3 }
 0x54f   : > { %v987_v46 = vpop.f32.mrf.mxu2 }
 0x5c7   : > { %v1005_v47 = vpop.f32.mrf.mxu0 }
 0x5c8   : > { %v1009_v48 = vadd.f32 %v1005_v47, %v928_v15 }
 0x5cc   : > { %v1084_v49 = vpop.f32.mrf.mxu2 }
 0x5cd   : > { %v1088_v50 = vadd.f32 %v1084_v49, %v1009_v48 }
 0x5cf   : > { %v1089_v52 = vadd.f32 %v1088_v50, %v2081_v2  ;;  %v1007_v53 = vpop.f32.mrf.mxu0  ;;  %v2175_v2 = vsel %vm1105_vm3, %v1896_v59, %v1104_v63  ;;  %v1209_v50 = vld [vmem:[%s2345_s13] sm:$0xf] }
 0x5d1   : > { %v1094_v54 = vadd.f32 %v1867_v51, %v1089_v52  ;;  %v1349_v51 = vsel %vm816_vm2, %v1209_v50, 0 }
 0x5d2   : > { %1358 = vmatpush.bf16.msrb.mxu2 %v1349_v51 }
 0x5d3   : > { %v1097_v55 = vsel %vm752_vm0, %v1094_v54, 0.0 }
 0x5d4   : > { %v1086_v56 = vpop.f32.mrf.mxu2  ;;  %1098 = vadd.xlane.f32.xlu1 %v1097_v55 }
 0x647   : > { %v1099_v0 = vpop.xlane.xlu1 %1098 }
 0x648   : > { %v1107_v1 = vmul.f32 %v2175_v2, %v1099_v0 }
 0x64a   : > { %v1108_v3 = vsub.f32 %v1094_v54, %v1107_v1 }
 0x64c   : > { %v1109_v4 = vmul.f32 %v1108_v3, %v1108_v3 }
 0x64e   : > { %v1110_v5 = vsel %vm752_vm0, %v1109_v4, 0.0 }
 0x64f   : > { %1111 = vadd.xlane.f32.xlu0 %v1110_v5 }
 0x663   : > { %1442 = vrot.lane.b32.xlu0 %v2208_v34, %s2386_s28 }
 0x6c2   : > { %v1112_v13 = vpop.xlane.xlu0 %1111 }
 0x6c3   : > { %v1113_v14 = vmul.f32 %v1112_v13, %v2175_v2 }
 0x6c5   : > { %v1114_v15 = vadd.f32 1e-05, %v1113_v14 }
 0x6c7   : > { %1897 = vrsqrt.f32 %v1114_v15  ;;  %vm1121_vm5 = vweird.f32 %v1114_v15 }
 0x6cd   : > { %v1898_v16 = vpop.eup %1897 }
 0x6ce   : > { %v1116_v17 = vmul.f32 %v1898_v16, %v1114_v15  ;;  %vm1122_vm4 = vweird.f32 %v1898_v16 }
 0x6cf   : > { %vm1123_vm6 = vmor %vm1121_vm5, %vm1122_vm4 }
 0x6d0   : > { %v1117_v18 = vmul.f32 %v1898_v16, %v1116_v17 }
 0x6d2   : > { %v1118_v19 = vmul.f32 0.5, %v1117_v18 }
 0x6d4   : > { %v1119_v20 = vsub.f32 1.5, %v1118_v19 }
 0x6d5   : > { %v1443_v55 = vpop.permute.xlu0 %1442 }
 0x6d6   : > { %v1120_v21 = vmul.f32 %v1898_v16, %v1119_v20  ;;  %v1448_v57 = vsel %vm777_vm1, %v1443_v55, 0 }
 0x6d8   : > { %v1124_v24 = vsel %vm1123_vm6, %v1898_v16, %v1120_v21 }
 0x6d9   : > { %v1125_v26 = vmul.f32 %v1124_v24, %v1108_v3 }
 0x6db   : > { %v1129_v27 = vmul.f32 %v1868_v23, %v1125_v26 }
 0x6dd   : > { %v2200_v28 = vadd.f32 %v1869_v25, %v1129_v27 }
 0x6df   : > { %v1134_v22 = vpack.c.bf16 %v2200_v28, %v2200_v28 }
 0x6e1   : > { %1783 = vmatmul.msk.bf16.vlgmr.msrb.gmra.mxu0 %vm752_vm0, %v1134_v22 }
 0x75e   : > { %v1167_v37 = vpop.f32.mrf.mxu0 }
 0x75f   : > { %v1168_v7 = vadd.f32 %v1871_v36, %v1167_v37 }
 0x761   : > { %v1213_v38 = vpack.c.bf16 %v1168_v7, %v1168_v7 }
 0x763   : > { %1270 = vrot.lane.b32.xlu2 %v1213_v38, %s2387_s24  ;;  %1793 = vmatmul.msk.bf16.vlgmr.msrb.gmra.mxu3 %vm777_vm1, %v1213_v38 }
 0x766   : > { %v1169_v39 = vpop.f32.mrf.mxu0 }
 0x76b   : > { %1366 = vrot.lane.b32.xlu2 %v2208_v34, %s2388_s1 }
 0x773   : > { %1364 = vrot.lane.b32.xlu2 %v1213_v38, %s2388_s1 }
 0x7bd   : > { %v1271_v58 = vpop.permute.xlu2 %1270 }
 0x7c5   : > { %v1367_v59 = vpop.permute.xlu2 %1366 }
 0x7c6   : > { %v1372_v62 = vsel %vm777_vm1, %v1367_v59, 0 }
 0x7cd   : > { %v1365_v63 = vpop.permute.xlu2 %1364 }
 0x7e6   : > { %v1230_v41 = vpop.f32.mrf.mxu3 }
 0x7e7   : > { %v1234_v42 = vmul.f32 0.35355338, %v1230_v41 }
 0x7e9   : > { %v1236_v43 = vsel %vm1235_vm7, %v1234_v42, -inf }
 0x7ea   : > { %1237 = vmax.xlane.f32.xlu1 %v1236_v43 }
 0x7ee   : > { %v1232_v44 = vpop.f32.mrf.mxu3 }
 0x85d   : > { %v1238_v45 = vpop.xlane.xlu1 %1237 }
 0x85e   : > { %v1239_v46 = vsub.f32 %v1234_v42, %v1238_v45 }
 0x860   : > { %v1240_v47 = vmul.f32 1.442695, %v1239_v46  ;;  %v1210_v46 = vld [vmem:[%s2345_s13 + $0x4] sm:$0xf] }
 0x862   : > { %1899 = vpow2.f32 %v1240_v47  ;;  %v1330_v47 = vsel %vm816_vm2, %v1210_v46, 0 }
 0x863   : > { %1339 = vmatpush.bf16.msra.mxu3 %v1330_v47 }
 0x868   : > { %v1900_v48 = vpop.eup %1899 }
 0x869   : > { %v1242_v49 = vsel %vm1235_vm7, %v1900_v48, 0.0 }
 0x86a   : > { %1243 = vadd.xlane.f32.xlu1 %v1242_v49 }
 0x883   : > { %1272 = vrot.lane.b32.xlu1 %v2208_v34, %s2387_s24 }
 0x88b   : > { %1440 = vrot.lane.b32.xlu1 %v1213_v38, %s2386_s28 }
 0x8dd   : > { %v1244_v52 = vpop.xlane.xlu1 %1243 }
 0x8de   : > { %1901 = vrcp.f32 %v1244_v52 }
 0x8e4   : > { %v1902_v53 = vpop.eup %1901 }
 0x8e5   : > { %v1246_v54 = vmul.f32 %v1902_v53, %v1900_v48  ;;  %v1211_v48 = vld [vmem:[%s2345_s13 + $0x8] sm:$0xf] }
 0x8e6   : > { %v1424_v49 = vsel %vm816_vm2, %v1211_v48, 0 }
 0x8e7   : > { %v1247_v56 = vpack.c.bf16 %v1246_v54, %v1246_v54  ;;  %1433 = vmatpush.bf16.msrb.mxu3 %v1424_v49  ;;  %v1876_v49 = vld [vmem:[%s2352_s20] ss:$0 sm:$0xff] }
 0x8e9   : > { %1794 = vmatmul.msk.bf16.vlgmr.msra.gmra.mxu2 %vm1235_vm7, %v1247_v56 }
 0x8ea   : > { %1457 = vmatpush.bf16.xpose.msra.mxu2 %v1448_v57 }
 0x8f5   : > { %v1273_v60 = vpop.permute.xlu1 %1272 }
 0x8f6   : > { %v1278_v61 = vsel %vm777_vm1, %v1273_v60, 0  ;;  %v1212_v60 = vld [vmem:[%s2345_s13 + $0xc] sm:$0xf] }
 0x8f7   : > { %1287 = vmatpush.bf16.xpose.msra.mxu0 %v1278_v61  ;;  %v1500_v61 = vsel %vm816_vm2, %v1212_v60, 0 }
 0x8fd   : > { %v1441_v6 = vpop.permute.xlu1 %1440 }
 0x8fe   : > { %1795 = vmatmul.msk.bf16.vlgmr.msra.gmra.mxu0 %vm777_vm1, %v1271_v58 }
 0x8ff   : > { %1381 = vmatpush.bf16.xpose.msrb.mxu0 %v1372_v62 }
 0x90e   : > { %1799 = vmatmul.msk.bf16.vlgmr.msrb.gmra.mxu0 %vm777_vm1, %v1365_v63 }
 0x96c   : > { %v1264_v0 = vpop.f32.mrf.mxu2 }
 0x96d   : > { %v1268_v1 = vpack.c.bf16 %v1264_v0, %v1264_v0 }
 0x96f   : > { %1798 = vmatmul.msk.bf16.vlgmr.msrb.gmra.mxu2 %vm777_vm1, %v1268_v1 }
 0x974   : > { %v1266_v3 = vpop.f32.mrf.mxu2 }
 0x97b   : > { %v1289_v4 = vpop.f32.mrf.mxu0 }
 0x97c   : > { %v1293_v5 = vmul.f32 0.35355338, %v1289_v4 }
 0x97e   : > { %v1294_v8 = vsel %vm1235_vm7, %v1293_v5, -inf }
 0x97f   : > { %1295 = vmax.xlane.f32.xlu2 %v1294_v8  ;;  %1802 = vmatmul.msk.bf16.vlgmr.msra.gmra.mxu2 %vm777_vm1, %v1441_v6 }
 0x983   : > { %v1291_v9 = vpop.f32.mrf.mxu0 }
 0x98b   : > { %v1383_v10 = vpop.f32.mrf.mxu0 }
 0x98c   : > { %v1387_v11 = vmul.f32 0.35355338, %v1383_v10 }
 0x98e   : > { %v1388_v12 = vsel %vm1235_vm7, %v1387_v11, -inf }
 0x98f   : > { %1389 = vmax.xlane.f32.xlu1 %v1388_v12 }
 0x993   : > { %v1385_v13 = vpop.f32.mrf.mxu0 }
 0x9a8   : > { %1306 = vrot.lane.b32.xlu1 %v2208_v34, %s2389_s27 }
 0x9f2   : > { %v2245_v14 = vpop.f32.mrf.mxu2  ;;  %v1296_v15 = vpop.xlane.xlu2 %1295 }
 0x9f3   : > { %v1297_v16 = vsub.f32 %v1293_v5, %v1296_v15 }
 0x9f5   : > { %v1298_v17 = vmul.f32 1.442695, %v1297_v16 }
 0x9f7   : > { %1903 = vpow2.f32 %v1298_v17 }
 0x9fa   : > { %v1362_v18 = vpop.f32.mrf.mxu2 }
 0x9fd   : > { %v1904_v19 = vpop.eup %1903 }
 0x9fe   : > { %v1300_v20 = vsel %vm1235_vm7, %v1904_v19, 0.0 }
 0x9ff   : > { %1301 = vadd.xlane.f32.xlu2 %v1300_v20 }
 0xa02   : > { %v1390_v21 = vpop.xlane.xlu1 %1389  ;;  %v1459_v23 = vpop.f32.mrf.mxu2 }
 0xa03   : > { %v1391_v24 = vsub.f32 %v1387_v11, %v1390_v21  ;;  %v1463_v25 = vmul.f32 0.35355338, %v1459_v23  ;;  %v1872_v11 = vld [vmem:[%s2346_s14] ss:$0 sm:$0xff]  ;;  %v1841_v21 = vld [vmem:[%s2349_s17 + $0x8] sm:$0xff]  ;;  %v1845_v23 = vld [vmem:[%s2351_s19 + $0x18] sm:$0xff] }
 0xa04   : > { %1637 = vmatpush.bf16.msrb.mxu2 %v1845_v23 }
 0xa05   : > { %v1392_v26 = vmul.f32 1.442695, %v1391_v24  ;;  %v1464_v27 = vsel %vm1235_vm7, %v1463_v25, -inf }
 0xa06   : > { %1465 = vmax.xlane.f32.xlu0 %v1464_v27 }
 0xa07   : > { %1905 = vpow2.f32 %v1392_v26  ;;  %v1844_v26 = vld [vmem:[%s2351_s19 + $0x10] sm:$0xff] }
 0xa08   : > { %1638 = vmatpush.bf16.msrb.mxu2 %v1844_v26 }
 0xa0a   : > { %v1461_v22 = vpop.f32.mrf.mxu2 }
 0xa0d   : > { %v1906_v29 = vpop.eup %1905 }
 0xa0e   : > { %v1394_v30 = vsel %vm1235_vm7, %v1906_v29, 0.0 }
 0xa0f   : > { %1395 = vadd.xlane.f32.xlu2 %v1394_v30 }
 0xa1a   : > { %v1307_v31 = vpop.permute.xlu1 %1306 }
 0xa1b   : > { %1319 = vmatpush.bf16.msra.mxu1 %v1307_v31 }
 0xa27   : > { %1400 = vrot.lane.b32.xlu2 %v2208_v34, %s2390_s7 }
 0xa72   : > { %v1302_v32 = vpop.xlane.xlu2 %1301 }
 0xa73   : > { %1907 = vrcp.f32 %v1302_v32 }
 0xa79   : > { %v1908_v33 = vpop.eup %1907  ;;  %v1466_v35 = vpop.xlane.xlu0 %1465 }
 0xa7a   : > { %v1304_v36 = vmul.f32 %v1908_v33, %v1904_v19  ;;  %v1467_v37 = vsub.f32 %v1463_v25, %v1466_v35  ;;  %v1873_v35 = vld [vmem:[%s2347_s15] ss:$0 sm:$0xff] }
 0xa7c   : > { %v1305_v7 = vpack.c.bf16 %v1304_v36, %v1304_v36  ;;  %v1468_v38 = vmul.f32 1.442695, %v1467_v37  ;;  %v1874_v37 = vld [vmem:[%s2348_s16] ss:$0 sm:$0xff] }
 0xa7e   : > { %1909 = vpow2.f32 %v1468_v38  ;;  %1796 = vmatmul.msk.bf16.vlgmr.msra.gmra.mxu1 %vm1235_vm7, %v1305_v7 }
 0xa82   : > { %v1396_v39 = vpop.xlane.xlu2 %1395 }
 0xa83   : > { %1911 = vrcp.f32 %v1396_v39 }
 0xa84   : > { %v1910_v40 = vpop.eup %1909 }
 0xa85   : > { %v1470_v41 = vsel %vm1235_vm7, %v1910_v40, 0.0 }
 0xa86   : > { %1471 = vadd.xlane.f32.xlu0 %v1470_v41  ;;  %v1843_v41 = vld [vmem:[%s2351_s19 + $0x8] sm:$0xff] }
 0xa87   : > { %1639 = vmatpush.bf16.msrb.mxu2 %v1843_v41 }
 0xa89   : > { %v1912_v42 = vpop.eup %1911 }
 0xa8a   : > { %v1398_v43 = vmul.f32 %v1912_v42, %v1906_v29  ;;  %v1401_v44 = vpop.permute.xlu2 %1400  ;;  %v1842_v42 = vld [vmem:[%s2351_s19] sm:$0xff] }
 0xa8b   : > { %1413 = vmatpush.bf16.msrb.mxu1 %v1401_v44  ;;  %1640 = vmatpush.bf16.msrb.mxu2 %v1842_v42 }
 0xa8c   : > { %v1399_v45 = vpack.c.bf16 %v1398_v43, %v1398_v43  ;;  %v1875_v43 = vld [vmem:[%s2350_s18] ss:$0 sm:$0xff] }
 0xa8e   : > { %1800 = vmatmul.msk.bf16.vlgmr.msrb.gmra.mxu1 %vm1235_vm7, %v1399_v45 }
 0xa8f   : > { %1509 = vmatpush.bf16.msra.mxu1 %v1500_v61 }
 0xa9a   : > { %1476 = vrot.lane.b32.xlu0 %v2208_v34, %s2391_s6  ;;  %s2392_s6 = sshll.u32 %s2394_s30, 3 }
 0xa9b   : > { %s725_s3 = scalar_lea.vmem %s2355_s23, %s2392_s6 }
 0xaf9   : > { %v1472_v52 = vpop.xlane.xlu0 %1471 }
 0xafa   : > { %1913 = vrcp.f32 %v1472_v52 }
 0xafb   : > { %v1321_v50 = vpop.f32.mrf.mxu1 }
 0xafc   : > { %v1325_v51 = vpack.c.bf16 %v1321_v50, %v1321_v50 }
 0xafe   : > { %1797 = vmatmul.msk.bf16.vlgmr.msra.gmra.mxu3 %vm777_vm1, %v1325_v51 }
 0xaff   : > { %1584 = vmatpush.bf16.msra.mxu3 %v1841_v21 }
 0xb00   : > { %v1914_v53 = vpop.eup %1913 }
 0xb01   : > { %v1474_v54 = vmul.f32 %v1914_v53, %v1910_v40 }
 0xb03   : > { %v1323_v34 = vpop.f32.mrf.mxu1  ;;  %v1475_v58 = vpack.c.bf16 %v1474_v54, %v1474_v54 }
 0xb0b   : > { %v1415_v55 = vpop.f32.mrf.mxu1 }
 0xb0c   : > { %v1419_v56 = vpack.c.bf16 %v1415_v55, %v1415_v55  ;;  %v1477_v57 = vpop.permute.xlu0 %1476 }
 0xb0d   : > { %1489 = vmatpush.bf16.msra.mxu0 %v1477_v57 }
 0xb0e   : > { %1801 = vmatmul.msk.bf16.vlgmr.msrb.gmra.mxu3 %vm777_vm1, %v1419_v56 }
 0xb10   : > { %1803 = vmatmul.msk.bf16.vlgmr.msra.gmra.mxu0 %vm1235_vm7, %v1475_v58 }
 0xb13   : > { %v1417_v59 = vpop.f32.mrf.mxu1 }
 0xb81   : > { %v1341_v62 = vpop.f32.mrf.mxu3 }
 0xb82   : > { %v1361_v3 = vadd.f32 %v2245_v14, %v1341_v62 }
 0xb89   : > { %v1343_v63 = vpop.f32.mrf.mxu3 }
 0xb8d   : > { %v1491_v0 = vpop.f32.mrf.mxu0 }
 0xb8e   : > { %v1495_v1 = vpack.c.bf16 %v1491_v0, %v1491_v0 }
 0xb90   : > { %1804 = vmatmul.msk.bf16.vlgmr.msra.gmra.mxu1 %vm777_vm1, %v1495_v1 }
 0xb91   : > { %v1435_v4 = vpop.f32.mrf.mxu3 }
 0xb92   : > { %v1439_v5 = vadd.f32 %v1435_v4, %v1361_v3 }
 0xb95   : > { %v1493_v6 = vpop.f32.mrf.mxu0 }
 0xb99   : > { %v1437_v8 = vpop.f32.mrf.mxu3 }
 0xc0d   : > { %v1511_v9 = vpop.f32.mrf.mxu1 }
 0xc0e   : > { %v1515_v10 = vadd.f32 %v1511_v9, %v1439_v5  ;;  %v1877_v5 = vld [vmem:[%s2353_s21] ss:$0 sm:$0xff] }
 0xc10   : > { %v1516_v12 = vadd.f32 %v1515_v10, %v2200_v28  ;;  %v1840_v28 = vld [vmem:[%s2349_s17] sm:$0xff] }
 0xc11   : > { %1585 = vmatpush.bf16.msra.mxu3 %v1840_v28 }
 0xc12   : > { %v1521_v13 = vadd.f32 %v1872_v11, %v1516_v12 }
 0xc14   : > { %v1524_v15 = vsel %vm752_vm0, %v1521_v13, 0.0 }
 0xc15   : > { %1525 = vadd.xlane.f32.xlu1 %v1524_v15  ;;  %v1513_v16 = vpop.f32.mrf.mxu1 }
 0xc88   : > { %v1526_v14 = vpop.xlane.xlu1 %1525 }
 0xc89   : > { %v1527_v17 = vmul.f32 %v1526_v14, %v2175_v2 }
 0xc8b   : > { %v1528_v18 = vsub.f32 %v1521_v13, %v1527_v17 }
 0xc8d   : > { %v1529_v19 = vmul.f32 %v1528_v18, %v1528_v18 }
 0xc8f   : > { %v1530_v20 = vsel %vm752_vm0, %v1529_v19, 0.0 }
 0xc90   : > { %1531 = vadd.xlane.f32.xlu0 %v1530_v20 }
 0xd03   : > { %v1532_v24 = vpop.xlane.xlu0 %1531 }
 0xd04   : > { %v1533_v25 = vmul.f32 %v1532_v24, %v2175_v2 }
 0xd06   : > { %v1534_v27 = vadd.f32 1e-05, %v1533_v25 }
 0xd08   : > { %1915 = vrsqrt.f32 %v1534_v27  ;;  %vm1541_vm9 = vweird.f32 %v1534_v27 }
 0xd0e   : > { %v1916_v22 = vpop.eup %1915 }
 0xd0f   : > { %v1536_v29 = vmul.f32 %v1916_v22, %v1534_v27  ;;  %vm1542_vm8 = vweird.f32 %v1916_v22 }
 0xd10   : > { %vm1543_vm10 = vmor %vm1541_vm9, %vm1542_vm8 }
 0xd11   : > { %v1537_v30 = vmul.f32 %v1916_v22, %v1536_v29 }
 0xd13   : > { %v1538_v31 = vmul.f32 0.5, %v1537_v30 }
 0xd15   : > { %v1539_v32 = vsub.f32 1.5, %v1538_v31 }
 0xd17   : > { %v1540_v33 = vmul.f32 %v1916_v22, %v1539_v32 }
 0xd19   : > { %v1544_v36 = vsel %vm1543_vm10, %v1916_v22, %v1540_v33 }
 0xd1a   : > { %v1545_v7 = vmul.f32 %v1544_v36, %v1528_v18 }
 0xd1c   : > { %v1549_v38 = vmul.f32 %v1873_v35, %v1545_v7 }
 0xd1e   : > { %v1553_v39 = vadd.f32 %v1874_v37, %v1549_v38 }
 0xd20   : > { %v1554_v40 = vpack.c.bf16 %v1553_v39, %v1553_v39 }
 0xd22   : > { %1813 = vmatmul.msk.bf16.vlgmr.msra.gmra.mxu3 %vm752_vm0, %v1554_v40 }
 0xda5   : > { %v1587_v44 = vpop.f32.mrf.mxu3 }
 0xda6   : > { %v1588_v45 = vadd.f32 %v1875_v43, %v1587_v44 }
 0xda8   : > { %v1591_v46 = vmax.f32 %v1588_v45, 0.0 }
 0xdaa   : > { %v1592_v47 = vpack.c.bf16 %v1591_v46, %v1591_v46 }
 0xdac   : > { %1830 = vmatmul.msk.bf16.vlgmr.msrb.gmra.mxu2 %vm1629_vm11, %v1592_v47 }
 0xdad   : > { %v1589_v48 = vpop.f32.mrf.mxu3 }
 0xe2f   : > { %v1642_v50 = vpop.f32.mrf.mxu2 }
 0xe30   : > { %v1643_v51 = vadd.f32 %v1876_v49, %v1642_v50 }
 0xe32   : > { %v1646_v52 = vadd.f32 %v1643_v51, %v1553_v39 }
 0xe34   : > { %v1649_v34 = vsel %vm752_vm0, %v1646_v52, 0.0 }
 0xe35   : > { %1650 = vadd.xlane.f32.xlu2 %v1649_v34 }
 0xe37   : > { %v1644_v53 = vpop.f32.mrf.mxu2 }
 0xea8   : > { %v1651_v54 = vpop.xlane.xlu2 %1650 }
 0xea9   : > { %v1652_v55 = vmul.f32 %v1651_v54, %v2175_v2 }
 0xeab   : > { %v1653_v56 = vsub.f32 %v1646_v52, %v1652_v55 }
 0xead   : > { %v1654_v57 = vmul.f32 %v1653_v56, %v1653_v56 }
 0xeaf   : > { %v1655_v58 = vsel %vm752_vm0, %v1654_v57, 0.0 }
 0xeb0   : > { %1656 = vadd.xlane.f32.xlu1 %v1655_v58 }
 0xf23   : > { %v1657_v59 = vpop.xlane.xlu1 %1656 }
 0xf24   : > { %v1658_v60 = vmul.f32 %v1657_v59, %v2175_v2  ;;  %v1878_v2 = vld [vmem:[%s2354_s22] ss:$0 sm:$0xff] }
 0xf26   : > { %v1659_v61 = vadd.f32 1e-05, %v1658_v60 }
 0xf28   : > { %1917 = vrsqrt.f32 %v1659_v61  ;;  %vm1666_vm13 = vweird.f32 %v1659_v61 }
 0xf2e   : > { %v1918_v62 = vpop.eup %1917 }
 0xf2f   : > { %v1661_v63 = vmul.f32 %v1918_v62, %v1659_v61  ;;  %vm1667_vm12 = vweird.f32 %v1918_v62 }
 0xf30   : > { %vm1668_vm14 = vmor %vm1666_vm13, %vm1667_vm12 }
 0xf31   : > { %v1662_v0 = vmul.f32 %v1918_v62, %v1661_v63 }
 0xf33   : > { %v1663_v1 = vmul.f32 0.5, %v1662_v0 }
 0xf35   : > { %v1664_v3 = vsub.f32 1.5, %v1663_v1 }
 0xf37   : > { %v1665_v4 = vmul.f32 %v1918_v62, %v1664_v3 }
 0xf39   : > { %v1669_v6 = vsel %vm1668_vm14, %v1918_v62, %v1665_v4 }
 0xf3a   : > { %v1670_v8 = vmul.f32 %v1669_v6, %v1653_v56 }
 0xf3c   : > { %v1674_v9 = vmul.f32 %v1877_v5, %v1670_v8 }
 0xf3e   : > { %v1678_v10 = vadd.f32 %v1878_v2, %v1674_v9 }
 0xf40   : > { %1679 = vst.msk [vmem:[%s725_s3] sm:$0xff] %vm752_vm0, %v1678_v10 }
 0xf41 PF: > { %s33_s4 = sadd.s32 1, %s1925_s4  }
 0xf42   : > { %p30_p4 = scmp.ge.s32.totalorder %s33_s4, 4  }
 0xf44   :  { %32 = sbr.rel (!%p30_p4) target bundleno = 9 (0x9), region = 145 }

// kernel: ufnet_cnn_forward.8
= control target key start
LH: loop header
LB: loop body
LE: loop exit
PB: predicated region body
PF: predicated region fallthrough
CT: control target
= control target key end

     0   :  { %s2492_s0 = inlined_call_operand.vmem [shape: f32[2,8,32], index: 0, kind: input, shape index: {}]   ;;  %s2493_s1 = inlined_call_operand.vmem [shape: f32[2,16,32], index: 1, kind: input, shape index: {}]   ;;  %s2494_s2 = inlined_call_operand.vmem [shape: f32[8,8], index: 2, kind: input, shape index: {}]   ;;  %s2495_s3 = inlined_call_operand.vmem [shape: bf16[32,96], index: 3, kind: input, shape index: {}]   ;;  %s2496_s4 = inlined_call_operand.vmem [shape: f32[1,96], index: 4, kind: input, shape index: {}]   ;;  %s2497_s5 = inlined_call_operand.vmem [shape: bf16[32,32], index: 5, kind: input, shape index: {}]   ;;  %s2498_s6 = inlined_call_operand.vmem [shape: f32[1,32], index: 6, kind: input, shape index: {}]   ;;  %s2499_s7 = inlined_call_operand.vmem [shape: f32[1,32], index: 7, kind: input, shape index: {}]   ;;  %s2500_s8 = inlined_call_operand.vmem [shape: f32[1,32], index: 8, kind: input, shape index: {}]   ;;  %s2501_s9 = inlined_call_operand.vmem [shape: bf16[32,32], index: 9, kind: input, shape index: {}]   ;;  %s2502_s10 = inlined_call_operand.vmem [shape: f32[1,32], index: 10, kind: input, shape index: {}]   ;;  %s2503_s11 = inlined_call_operand.vmem [shape: bf16[32,64], index: 11, kind: input, shape index: {}]   ;;  %s2504_s12 = inlined_call_operand.vmem [shape: f32[1,64], index: 12, kind: input, shape index: {}]   ;;  %s2505_s13 = inlined_call_operand.vmem [shape: bf16[32,32], index: 13, kind: input, shape index: {}]   ;;  %s2506_s14 = inlined_call_operand.vmem [shape: f32[1,32], index: 14, kind: input, shape index: {}]   ;;  %s2507_s15 = inlined_call_operand.vmem [shape: f32[1,32], index: 15, kind: input, shape index: {}]   ;;  %s2508_s16 = inlined_call_operand.vmem [shape: f32[1,32], index: 16, kind: input, shape index: {}]   ;;  %s2509_s17 = inlined_call_operand.vmem [shape: bf16[32,64], index: 17, kind: input, shape index: {}]   ;;  %s2510_s18 = inlined_call_operand.vmem [shape: f32[1,64], index: 18, kind: input, shape index: {}]   ;;  %s2511_s19 = inlined_call_operand.vmem [shape: bf16[64,32], index: 19, kind: input, shape index: {}]   ;;  %s2512_s20 = inlined_call_operand.vmem [shape: f32[1,32], index: 20, kind: input, shape index: {}]   ;;  %s2513_s21 = inlined_call_operand.hbm [shape: f32[1,32], index: 21, kind: input, shape index: {}]   ;;  %s2514_s22 = inlined_call_operand.hbm [shape: f32[1,32], index: 22, kind: input, shape index: {}]   ;;  %s2515_s23 = inlined_call_operand.vmem [shape: f32[2,8,32], index: 23, kind: output, shape index: {}]  }
   0x1   :  { %2529 = sst [smem:[#allocation8_spill]] %s2492_s0 }
   0x2   :  { %2530 = sst [smem:[#allocation9_spill]] %s2493_s1 }
   0x3   :  { %2531 = sst [smem:[#allocation10_spill]] %s2494_s2 }
   0x4   :  { %2532 = sst [smem:[#allocation11_spill]] %s2495_s3 }
   0x5   :  { %2533 = sst [smem:[#allocation12_spill]] %s2496_s4 }
   0x6   :  { %2534 = sst [smem:[#allocation13_spill]] %s2497_s5 }
   0x7   :  { %2535 = sst [smem:[#allocation14_spill]] %s2498_s6 }
   0x8   :  { %2536 = sst [smem:[#allocation15_spill]] %s2499_s7 }
   0x9   :  { %28 = vsyncpa [#allocation3], 0 }
   0xa   :  { %29 = vsyncpa [#allocation5], 0  ;;  %s2206_s4 = smov 0  }
   0xb LB: > { %s628_s25 = sshll.u32 %s2513_s21, 4  ;;  %s1797_s5 = sadd.s32 4294967295, %s2070_s4   ;;  %s2070_s4 = sphi %s2206_s4, %s35_s4   ;;  %s629_s25 = int_to_ptr.hbm [resolvable:$true] %s628_s25 }
   0xc   : > { %p1799_p0 = scmp.ge.s32.totalorder %s2070_s4, 1  ;;  %p559_p1 = scmp.lt.s32.totalorder %s2070_s4, 3 }
   0xd   : > { %p1917_p2 = scmp.eq.s32.totalorder %s1797_s5, 0  ;;  %s2072_s26 = smov [#allocation2]  }
   0xe   : > { %p2217_p3 = pnand %p1799_p0, %p559_p1  ;;  %s630_s2 = sshll.u32 %s2072_s26, 4  ;;  %s631_s2 = int_to_ptr.vmem [resolvable:$true] %s630_s2 }
   0xf   : > { %s640_s7 = sshll.u32 %s2514_s22, 4  ;;  %s2073_s28 = smov [#allocation4]   ;;  %s641_s7 = int_to_ptr.hbm [resolvable:$true] %s640_s7 }
  0x10   : > { %p1910_p4 = pneg %p2217_p3  ;;  %s642_s29 = sshll.u32 %s2073_s28, 4  ;;  %s643_s29 = int_to_ptr.vmem [resolvable:$true] %s642_s29 }
  0x11   : > { %670 = sbr.rel (%p2217_p3) target bundleno = 3918 (0xf4e), region = 112 }
  0x12   : > { %p1911_p5 = pnand %p1917_p2, %p1910_p4 }
  0x14   : > { %1913 = dma.hbm_to_vmem [thread:$0]  (!%p1911_p5), %s629_s25, 16, %s631_s2, [#allocation3]  }
  0x15   : > { %1916 = dma.hbm_to_vmem [thread:$0]  (!%p1911_p5), %s641_s7, 16, %s643_s29, [#allocation5]  }
  0x16   : > { %2061 = dma.done.wait (%p1917_p2), [#allocation3], 16  }
  0x17   : > { %2063 = vsyncadd (%p1917_p2), [#allocation3], 4294967280 }
  0x18   : > { %2065 = dma.done.wait (%p1917_p2), [#allocation5], 16  }
  0x19   : > { %2067 = vsyncadd (%p1917_p2), [#allocation5], 4294967280  ;;  %p743_p6 = scmp.lt.s32.totalorder %s1797_s5, 1  ;;  %s2538_s24 = sld [smem:[#allocation8_spill]]  ;;  %vm782_vm0 = vcmask 261120   ;;  %vm807_vm1 = vcmask 64512  }
  0x1a   : > { %s2539_s2 = sld [smem:[#allocation11_spill]]  ;;  %s2521_s0 = smov 88   ;;  %vm846_vm2 = vcmask 1043456   ;;  %vm1265_vm7 = vcmask 130048   ;;  %vm1659_vm11 = vcmask 523264  }
  0x1b   : > { %s2555_s5 = smov (!%p743_p6, %s1797_s5), 1  ;;  %s2540_s29 = sld [smem:[#allocation12_spill]] }
  0x1c   : > { %s2518_s3 = sshll.u32 %s2555_s5, 3  ;;  %s2528_s30 = smov 96  }
  0x1d   : > { %s2519_s1 = smov 72   ;;  %s2522_s26 = smov 112  }
  0x1e   : > { %s2541_s7 = sld [smem:[#allocation13_spill]]  ;;  %s2080_s27 = smov 56  }
  0x1f   : > { %s746_s25 = scalar_lea.vmem %s2538_s24, %s2518_s3  ;;  %s2524_s24 = smov 120  }
  0x20   : > { %v1891_v0 = vld [vmem:[%s2539_s2 + $0x8] sm:$0xff]  ;;  %v1890_v1 = vld [vmem:[%s2539_s2] sm:$0xff]  ;;  %s2542_s6 = sld [smem:[#allocation10_spill]]  ;;  %s2081_s28 = smov 40  }
  0x21   : > { %792 = vmatpush.bf16.msra.mxu0 %v1891_v0  ;;  %v2247_v2 = vld [vmem:[%s746_s25] sm:$0xff]  ;;  %s2520_s25 = smov 80   ;;  %s2546_s3 = smov 96  }
  0x22   : > { %v761_v3 = vpack.c.bf16 %v2247_v2, %v2247_v2  ;;  %v1943_v4 = vld [vmem:[%s2540_s29] ss:$0 sm:$0xff]  ;;  %s2082_s29 = smov 64  }
  0x24   : > { %v799_v14 = vld [vmem:[%s2541_s7] sm:$0xf]  ;;  %v800_v62 = vld [vmem:[%s2541_s7 + $0x4] sm:$0xf] }
  0x25   : > { %793 = vmatpush.bf16.msra.mxu0 %v1890_v1  ;;  %v946_v17 = vsel %vm846_vm2, %v799_v14, 0  ;;  %v927_v63 = vsel %vm846_vm2, %v800_v62, 0 }
  0x26   : > { %v2284_v22 = vld [vmem:[%s2542_s6] sm:$0xff]  ;;  %s2526_s6 = smov 104  }
  0x28   : > { %1818 = vmatmul.msk.bf16.vlgmr.msra.gmra.mxu0 %vm782_vm0, %v761_v3 }
  0x29   : > { %936 = vmatpush.bf16.msrb.mxu0 %v927_v63 }
  0xa5   : > { %v795_v5 = vpop.f32.mrf.mxu0 }
  0xa6   : > { %v796_v6 = vadd.f32 %v1943_v4, %v795_v5 }
  0xa8   : > { %v2255_v7 = vpack.c.bf16 %v796_v6, %v796_v6 }
  0xaa   : > { %866 = vrot.lane.b32.xlu2 %v2255_v7, %s2521_s0  ;;  %805 = vrot.lane.b32.xlu0 %v2255_v7, %s2528_s30  ;;  %s2548_s0 = smov 120  }
  0xad   : > { %v797_v8 = vpop.f32.mrf.mxu0 }
  0xb2   : > { %864 = vrot.lane.b32.xlu2 %v2255_v7, %s2524_s24  ;;  %s2549_s24 = smov 112  }
  0xba   : > { %963 = vrot.lane.b32.xlu2 %v2255_v7, %s2520_s25  ;;  %s2545_s25 = sld [smem:[#allocation15_spill]] }
  0xc2   : > { %1042 = vrot.lane.b32.xlu2 %v2255_v7, %s2519_s1  ;;  %s1889_s1 = sshll.u32 %s2555_s5, 4 }
  0xca   : > { %961 = vrot.lane.b32.xlu2 %v2255_v7, %s2522_s26  ;;  %s2550_s26 = smov 88  }
 0x104   : > { %v867_v9 = vpop.permute.xlu2 %866 }
 0x105   : > { %v872_v10 = vsel %vm807_vm1, %v867_v9, 0 }
 0x106   : > { %881 = vmatpush.bf16.xpose.msra.mxu3 %v872_v10 }
 0x10c   : > { %v865_v11 = vpop.permute.xlu2 %864 }
 0x10d   : > { %1821 = vmatmul.msk.bf16.vlgmr.msra.gmra.mxu3 %vm807_vm1, %v865_v11 }
 0x114   : > { %v964_v12 = vpop.permute.xlu2 %963 }
 0x115   : > { %v969_v13 = vsel %vm807_vm1, %v964_v12, 0 }
 0x116   : > { %978 = vmatpush.bf16.xpose.msrb.mxu3 %v969_v13 }
 0x11c   : > { %v1043_v15 = vpop.permute.xlu2 %1042  ;;  %v806_v16 = vpop.permute.xlu0 %805 }
 0x11d   : > { %v812_v18 = vsel %vm807_vm1, %v806_v16, 0  ;;  %v1048_v20 = vsel %vm807_vm1, %v1043_v15, 0 }
 0x11e   : > { %821 = vmatpush.bf16.xpose.msra.mxu1 %v812_v18 }
 0x124   : > { %v962_v19 = vpop.permute.xlu2 %961 }
 0x125   : > { %1819 = vmatmul.msk.bf16.vlgmr.msra.gmra.mxu1 %vm807_vm1, %v2255_v7  ;;  %1825 = vmatmul.msk.bf16.vlgmr.msrb.gmra.mxu3 %vm807_vm1, %v962_v19 }
 0x126   : > { %955 = vmatpush.bf16.msrb.mxu1 %v946_v17 }
 0x12a   : > { %1057 = vmatpush.bf16.xpose.msra.mxu1 %v1048_v20 }
 0x190   : > { %v883_v21 = vpop.f32.mrf.mxu3 }
 0x191   : > { %v887_v23 = vmul.f32 0.35355338, %v883_v21 }
 0x193   : > { %v888_v24 = vadd.f32 %v887_v23, %v2284_v22 }
 0x195   : > { %v889_v25 = vsel %vm807_vm1, %v888_v24, -inf }
 0x196   : > { %890 = vmax.xlane.f32.xlu2 %v889_v25 }
 0x198   : > { %v885_v26 = vpop.f32.mrf.mxu3 }
 0x1a2   : > { %v823_v27 = vpop.f32.mrf.mxu1 }
 0x1a3   : > { %v827_v28 = vmul.f32 0.35355338, %v823_v27 }
 0x1a5   : > { %v828_v29 = vadd.f32 %v827_v28, %v2284_v22 }
 0x1a7   : > { %v829_v30 = vsel %vm807_vm1, %v828_v29, -inf }
 0x1a8   : > { %v980_v31 = vpop.f32.mrf.mxu3  ;;  %830 = vmax.xlane.f32.xlu0 %v829_v30 }
 0x1a9   : > { %v984_v32 = vmul.f32 0.35355338, %v980_v31 }
 0x1aa   : > { %v825_v33 = vpop.f32.mrf.mxu1 }
 0x1ab   : > { %v2291_v34 = vadd.f32 %v984_v32, %v2284_v22 }
 0x1ad   : > { %v986_v35 = vsel %vm807_vm1, %v2291_v34, -inf }
 0x1b0   : > { %v982_v36 = vpop.f32.mrf.mxu3  ;;  %987 = vmax.xlane.f32.xlu0 %v986_v35 }
 0x209   : > { %v891_v37 = vpop.xlane.xlu2 %890 }
 0x20a   : > { %v892_v38 = vsub.f32 %v888_v24, %v891_v37 }
 0x20c   : > { %v893_v39 = vmul.f32 1.442695, %v892_v38 }
 0x20e   : > { %1956 = vpow2.f32 %v893_v39  ;;  %v801_v39 = vld [vmem:[%s2541_s7 + $0x8] sm:$0xf] }
 0x214   : > { %v1957_v40 = vpop.eup %1956 }
 0x215   : > { %v895_v41 = vsel %vm807_vm1, %v1957_v40, 0.0 }
 0x216   : > { %896 = vadd.xlane.f32.xlu0 %v895_v41 }
 0x21b   : > { %v831_v42 = vpop.xlane.xlu0 %830 }
 0x21c   : > { %v832_v43 = vsub.f32 %v828_v29, %v831_v42 }
 0x21e   : > { %v833_v44 = vmul.f32 1.442695, %v832_v43 }
 0x220   : > { %1958 = vpow2.f32 %v833_v44 }
 0x223   : > { %v988_v47 = vpop.xlane.xlu0 %987 }
 0x224   : > { %v989_v11 = vsub.f32 %v2291_v34, %v988_v47 }
 0x226   : > { %v1959_v45 = vpop.eup %1958  ;;  %v990_v12 = vmul.f32 1.442695, %v989_v11  ;;  %v1893_v11 = vld [vmem:[%s2501_s9 + $0x8] sm:$0xff] }
 0x227   : > { %v835_v46 = vsel %vm807_vm1, %v1959_v45, 0.0 }
 0x228   : > { %836 = vadd.xlane.f32.xlu1 %v835_v46 }
 0x22a   : > { %901 = vrot.lane.b32.xlu0 %v2255_v7, %s2080_s27  ;;  %s2547_s27 = smov 104  }
 0x232   : > { %1077 = vrot.lane.b32.xlu0 %v2255_v7, %s2081_s28  ;;  %s2543_s28 = sld [smem:[#allocation14_spill]] }
 0x241   : > { %841 = vrot.lane.b32.xlu1 %v2255_v7, %s2082_s29  ;;  %s2084_s29 = smov 48  }
 0x249   : > { %1040 = vrot.lane.b32.xlu1 %v2255_v7, %s2526_s6  ;;  %s2551_s6 = smov 80  }
 0x289   : > { %v897_v48 = vpop.xlane.xlu0 %896 }
 0x29b   : > { %v837_v52 = vpop.xlane.xlu1 %836 }
 0x29c   : > { %v902_v49 = vpop.permute.xlu0 %901  ;;  %1960 = vrcp.f32 %v837_v52 }
 0x29d   : > { %v907_v57 = vsel %vm846_vm2, %v902_v49, 0  ;;  %1962 = vrcp.f32 %v897_v48 }
 0x29e   : > { %1964 = vpow2.f32 %v990_v12  ;;  %v1892_v12 = vld [vmem:[%s2501_s9] sm:$0xff] }
 0x2a2   : > { %v1961_v53 = vpop.eup %1960 }
 0x2a3   : > { %v839_v54 = vmul.f32 %v1961_v53, %v1959_v45  ;;  %v1963_v59 = vpop.eup %1962 }
 0x2a4   : > { %v1078_v50 = vpop.permute.xlu0 %1077  ;;  %v899_v60 = vmul.f32 %v1963_v59, %v1957_v40  ;;  %v1965_v21 = vpop.eup %1964  ;;  %v1024_v40 = vsel %vm846_vm2, %v801_v39, 0 }
 0x2a5   : > { %v1083_v51 = vsel %vm846_vm2, %v1078_v50, 0  ;;  %v840_v58 = vpack.c.bf16 %v839_v54, %v839_v54  ;;  %v992_v23 = vsel %vm807_vm1, %v1965_v21, 0.0  ;;  %1033 = vmatpush.bf16.msra.mxu0 %v1024_v40 }
 0x2a6   : > { %1092 = vmatpush.bf16.msra.mxu3 %v1083_v51  ;;  %v900_v61 = vpack.c.bf16 %v899_v60, %v899_v60  ;;  %v1944_v51 = vld [vmem:[%s2543_s28] ss:$0 sm:$0xff]  ;;  %s2544_s28 = sld [smem:[#allocation9_spill]] }
 0x2b3   : > { %v842_v55 = vpop.permute.xlu1 %841 }
 0x2b4   : > { %v848_v56 = vsel %vm846_vm2, %v842_v55, 0 }
 0x2b5   : > { %857 = vmatpush.bf16.msra.mxu2 %v848_v56 }
 0x2b8   : > { %1820 = vmatmul.msk.bf16.vlgmr.msra.gmra.mxu2 %vm807_vm1, %v840_v58  ;;  %v1895_v58 = vld [vmem:[%s2503_s11 + $0x8] sm:$0xff] }
 0x2b9   : > { %916 = vmatpush.bf16.msrb.mxu2 %v907_v57  ;;  %v2085_v57 = vmov 32.0  }
 0x2bb   : > { %v1041_v6 = vpop.permute.xlu1 %1040 }
 0x2c8   : > { %1822 = vmatmul.msk.bf16.vlgmr.msrb.gmra.mxu2 %vm807_vm1, %v900_v61 }
 0x33b   : > { %v859_v0 = vpop.f32.mrf.mxu2 }
 0x33c   : > { %v863_v1 = vpack.c.bf16 %v859_v0, %v859_v0 }
 0x33e   : > { %1824 = vmatmul.msk.bf16.vlgmr.msrb.gmra.mxu1 %vm807_vm1, %v863_v1 }
 0x33f   : > { %1231 = vmatpush.bf16.msrb.mxu1 %v1895_v58 }
 0x343   : > { %v861_v3 = vpop.f32.mrf.mxu2 }
 0x34b   : > { %v918_v4 = vpop.f32.mrf.mxu2 }
 0x34c   : > { %v922_v5 = vpack.c.bf16 %v918_v4, %v918_v4 }
 0x34e   : > { %1823 = vmatmul.msk.bf16.vlgmr.msrb.gmra.mxu0 %vm807_vm1, %v922_v5  ;;  %1828 = vmatmul.msk.bf16.vlgmr.msra.gmra.mxu1 %vm807_vm1, %v1041_v6 }
 0x34f   : > { %1194 = vmatpush.bf16.msrb.mxu0 %v1893_v11 }
 0x353   : > { %v920_v8 = vpop.f32.mrf.mxu2  ;;  %1195 = vmatpush.bf16.msrb.mxu0 %v1892_v12 }
 0x3bb   : > { %v957_v9 = vpop.f32.mrf.mxu1 }
 0x3c3   : > { %v959_v10 = vpop.f32.mrf.mxu1 }
 0x3cb   : > { %v938_v13 = vpop.f32.mrf.mxu0  ;;  %v1059_v14 = vpop.f32.mrf.mxu1 }
 0x3cc   : > { %v958_v15 = vadd.f32 %v957_v9, %v938_v13  ;;  %v1063_v16 = vmul.f32 0.35355338, %v1059_v14  ;;  %v1894_v9 = vld [vmem:[%s2503_s11] sm:$0xff] }
 0x3cd   : > { %1232 = vmatpush.bf16.msrb.mxu1 %v1894_v9 }
 0x3ce   : > { %v1064_v17 = vadd.f32 %v1063_v16, %v2284_v22 }
 0x3d0   : > { %v1065_v18 = vsel %vm807_vm1, %v1064_v17, -inf }
 0x3d1   : > { %1066 = vmax.xlane.f32.xlu1 %v1065_v18 }
 0x3d3   : > { %v940_v19 = vpop.f32.mrf.mxu0  ;;  %v1061_v20 = vpop.f32.mrf.mxu1 }
 0x3d9   : > { %993 = vadd.xlane.f32.xlu1 %v992_v23  ;;  %v1945_v23 = vld [vmem:[%s2545_s25] ss:$0 sm:$0xff]  ;;  %s2553_s25 = sshll.u32 %s2555_s5, 3 }
 0x444   : > { %v1067_v24 = vpop.xlane.xlu1 %1066 }
 0x445   : > { %v1068_v25 = vsub.f32 %v1064_v17, %v1067_v24 }
 0x447   : > { %v1069_v26 = vmul.f32 1.442695, %v1068_v25  ;;  %v1946_v25 = vld [vmem:[%s2500_s8] ss:$0 sm:$0xff] }
 0x449   : > { %1966 = vpow2.f32 %v1069_v26 }
 0x44c   : > { %v994_v22 = vpop.xlane.xlu1 %993 }
 0x44d   : > { %1968 = vrcp.f32 %v994_v22 }
 0x44f   : > { %v1967_v27 = vpop.eup %1966 }
 0x450   : > { %v1071_v28 = vsel %vm807_vm1, %v1967_v27, 0.0 }
 0x451   : > { %1072 = vadd.xlane.f32.xlu2 %v1071_v28 }
 0x453   : > { %v1969_v30 = vpop.eup %1968 }
 0x454   : > { %v996_v32 = vmul.f32 %v1969_v30, %v1965_v21  ;;  %v1947_v30 = vld [vmem:[%s2504_s12] ss:$0 sm:$0xff] }
 0x456   : > { %v997_v37 = vpack.c.bf16 %v996_v32, %v996_v32 }
 0x469   : > { %998 = vrot.lane.b32.xlu2 %v2255_v7, %s2084_s29  ;;  %v802_v7 = vld [vmem:[%s2541_s7 + $0xc] sm:$0xf]  ;;  %s751_s29 = scalar_lea.vmem %s2544_s28, %s1889_s1  ;;  %s2552_s1 = smov 72  }
 0x46a   : > { %v1103_v38 = vsel %vm846_vm2, %v802_v7, 0  ;;  %v758_v6 = vld [vmem:[%s751_s29] sm:$0xff]  ;;  %v759_v8 = vld [vmem:[%s751_s29 + $0x8] sm:$0xff] }
 0x46b   : > { %v1201_v10 = vpack.c.bf16 %v759_v8, %v758_v6 }
 0x46d   : > { %1848 = vmatmul.msk.bf16.vlgmr.msrb.gmra.mxu1 %vm782_vm0, %v1201_v10 }
 0x4c4   : > { %v1073_v29 = vpop.xlane.xlu2 %1072 }
 0x4c5   : > { %1970 = vrcp.f32 %v1073_v29 }
 0x4c6   : > { %1972 = vrcp.f32 %v2085_v57 }
 0x4cb   : > { %v1971_v31 = vpop.eup %1970 }
 0x4cc   : > { %v1075_v33 = vmul.f32 %v1971_v31, %v1967_v27  ;;  %v999_v34 = vpop.permute.xlu2 %998  ;;  %v1973_v59 = vpop.eup %1972 }
 0x4cd   : > { %v1004_v35 = vsel %vm846_vm2, %v999_v34, 0  ;;  %v1131_v60 = vmul.f32 32.0, %v1973_v59  ;;  %vm1135_vm3 = vweird.f32 %v1973_v59 }
 0x4ce   : > { %v1076_v36 = vpack.c.bf16 %v1075_v33, %v1075_v33  ;;  %1013 = vmatpush.bf16.msra.mxu2 %v1004_v35 }
 0x4cf   : > { %v1132_v61 = vsub.f32 1.0, %v1131_v60 }
 0x4d0   : > { %1829 = vmatmul.msk.bf16.vlgmr.msra.gmra.mxu3 %vm807_vm1, %v1076_v36  ;;  %v1948_v36 = vld [vmem:[%s2502_s10] ss:$0 sm:$0xff] }
 0x4d1   : > { %1826 = vmatmul.msk.bf16.vlgmr.msra.gmra.mxu2 %vm807_vm1, %v997_v37  ;;  %v1133_v62 = vmul.f32 %v1973_v59, %v1132_v61 }
 0x4d2   : > { %1112 = vmatpush.bf16.msrb.mxu2 %v1103_v38 }
 0x4d3   : > { %v1134_v63 = vadd.f32 %v1973_v59, %v1133_v62 }
 0x4ea   : > { %v1234_v29 = vpop.f32.mrf.mxu1 }
 0x4eb   : > { %v1235_v31 = vadd.f32 %v1947_v30, %v1234_v29 }
 0x4f2   : > { %v1236_v32 = vpop.f32.mrf.mxu1 }
 0x4f3   : > { %v1237_v33 = vadd.f32 %v1947_v30, %v1236_v32 }
 0x4f5   : > { %v2374_v34 = vpack.c.bf16 %v1237_v33, %v1235_v31 }
 0x4f7   : > { %1279 = vrot.lane.b32.xlu2 %v2374_v34, %s2546_s3  ;;  %v1249_v35 = vsel %vm807_vm1, %v2374_v34, 0 }
 0x4f8   : > { %1258 = vmatpush.bf16.xpose.msrb.mxu3 %v1249_v35 }
 0x551   : > { %v1280_v40 = vpop.permute.xlu2 %1279 }
 0x552   : > { %1292 = vmatpush.bf16.msra.mxu2 %v1280_v40 }
 0x553   : > { %v1094_v41 = vpop.f32.mrf.mxu3 }
 0x554   : > { %v1098_v42 = vpack.c.bf16 %v1094_v41, %v1094_v41  ;;  %v1015_v43 = vpop.f32.mrf.mxu2 }
 0x555   : > { %v1019_v44 = vpack.c.bf16 %v1015_v43, %v1015_v43 }
 0x556   : > { %1830 = vmatmul.msk.bf16.vlgmr.msrb.gmra.mxu2 %vm807_vm1, %v1098_v42 }
 0x557   : > { %1827 = vmatmul.msk.bf16.vlgmr.msra.gmra.mxu0 %vm807_vm1, %v1019_v44 }
 0x55b   : > { %v1096_v45 = vpop.f32.mrf.mxu3 }
 0x55c   : > { %v1017_v46 = vpop.f32.mrf.mxu2 }
 0x5d4   : > { %v1035_v47 = vpop.f32.mrf.mxu0 }
 0x5d5   : > { %v1039_v48 = vadd.f32 %v1035_v47, %v958_v15 }
 0x5d9   : > { %v1114_v49 = vpop.f32.mrf.mxu2 }
 0x5da   : > { %v1118_v50 = vadd.f32 %v1114_v49, %v1039_v48 }
 0x5dc   : > { %v1119_v52 = vadd.f32 %v1118_v50, %v2247_v2  ;;  %v1037_v53 = vpop.f32.mrf.mxu0  ;;  %v2341_v2 = vsel %vm1135_vm3, %v1973_v59, %v1134_v63  ;;  %v1239_v50 = vld [vmem:[%s2505_s13] sm:$0xf] }
 0x5de   : > { %v1124_v54 = vadd.f32 %v1944_v51, %v1119_v52  ;;  %v1379_v51 = vsel %vm846_vm2, %v1239_v50, 0 }
 0x5df   : > { %1388 = vmatpush.bf16.msrb.mxu2 %v1379_v51 }
 0x5e0   : > { %v1127_v55 = vsel %vm782_vm0, %v1124_v54, 0.0 }
 0x5e1   : > { %v1116_v56 = vpop.f32.mrf.mxu2  ;;  %1128 = vadd.xlane.f32.xlu1 %v1127_v55 }
 0x654   : > { %v1129_v0 = vpop.xlane.xlu1 %1128 }
 0x655   : > { %v1137_v1 = vmul.f32 %v2341_v2, %v1129_v0 }
 0x657   : > { %v1138_v3 = vsub.f32 %v1124_v54, %v1137_v1 }
 0x659   : > { %v1139_v4 = vmul.f32 %v1138_v3, %v1138_v3 }
 0x65b   : > { %v1140_v5 = vsel %vm782_vm0, %v1139_v4, 0.0 }
 0x65c   : > { %1141 = vadd.xlane.f32.xlu0 %v1140_v5 }
 0x670   : > { %1472 = vrot.lane.b32.xlu0 %v2374_v34, %s2547_s27 }
 0x6cf   : > { %v1142_v13 = vpop.xlane.xlu0 %1141 }
 0x6d0   : > { %v1143_v14 = vmul.f32 %v1142_v13, %v2341_v2 }
 0x6d2   : > { %v1144_v15 = vadd.f32 1e-05, %v1143_v14 }
 0x6d4   : > { %1974 = vrsqrt.f32 %v1144_v15  ;;  %vm1151_vm5 = vweird.f32 %v1144_v15 }
 0x6da   : > { %v1975_v16 = vpop.eup %1974 }
 0x6db   : > { %v1146_v17 = vmul.f32 %v1975_v16, %v1144_v15  ;;  %vm1152_vm4 = vweird.f32 %v1975_v16 }
 0x6dc   : > { %vm1153_vm6 = vmor %vm1151_vm5, %vm1152_vm4 }
 0x6dd   : > { %v1147_v18 = vmul.f32 %v1975_v16, %v1146_v17 }
 0x6df   : > { %v1148_v19 = vmul.f32 0.5, %v1147_v18 }
 0x6e1   : > { %v1149_v20 = vsub.f32 1.5, %v1148_v19 }
 0x6e2   : > { %v1473_v55 = vpop.permute.xlu0 %1472 }
 0x6e3   : > { %v1150_v21 = vmul.f32 %v1975_v16, %v1149_v20  ;;  %v1478_v57 = vsel %vm807_vm1, %v1473_v55, 0 }
 0x6e5   : > { %v1154_v24 = vsel %vm1153_vm6, %v1975_v16, %v1150_v21 }
 0x6e6   : > { %v1155_v26 = vmul.f32 %v1154_v24, %v1138_v3 }
 0x6e8   : > { %v1159_v27 = vmul.f32 %v1945_v23, %v1155_v26 }
 0x6ea   : > { %v2366_v28 = vadd.f32 %v1946_v25, %v1159_v27 }
 0x6ec   : > { %v1164_v22 = vpack.c.bf16 %v2366_v28, %v2366_v28 }
 0x6ee   : > { %1839 = vmatmul.msk.bf16.vlgmr.msrb.gmra.mxu0 %vm782_vm0, %v1164_v22 }
 0x76b   : > { %v1197_v37 = vpop.f32.mrf.mxu0 }
 0x76c   : > { %v1198_v7 = vadd.f32 %v1948_v36, %v1197_v37 }
 0x76e   : > { %v1243_v38 = vpack.c.bf16 %v1198_v7, %v1198_v7 }
 0x770   : > { %1300 = vrot.lane.b32.xlu2 %v1243_v38, %s2548_s0  ;;  %1849 = vmatmul.msk.bf16.vlgmr.msrb.gmra.mxu3 %vm807_vm1, %v1243_v38 }
 0x773   : > { %v1199_v39 = vpop.f32.mrf.mxu0 }
 0x778   : > { %1396 = vrot.lane.b32.xlu2 %v2374_v34, %s2549_s24 }
 0x780   : > { %1394 = vrot.lane.b32.xlu2 %v1243_v38, %s2549_s24 }
 0x7ca   : > { %v1301_v58 = vpop.permute.xlu2 %1300 }
 0x7d2   : > { %v1397_v59 = vpop.permute.xlu2 %1396 }
 0x7d3   : > { %v1402_v62 = vsel %vm807_vm1, %v1397_v59, 0 }
 0x7da   : > { %v1395_v63 = vpop.permute.xlu2 %1394 }
 0x7f3   : > { %v1260_v41 = vpop.f32.mrf.mxu3 }
 0x7f4   : > { %v1264_v42 = vmul.f32 0.35355338, %v1260_v41 }
 0x7f6   : > { %v1266_v43 = vsel %vm1265_vm7, %v1264_v42, -inf }
 0x7f7   : > { %1267 = vmax.xlane.f32.xlu1 %v1266_v43 }
 0x7fb   : > { %v1262_v44 = vpop.f32.mrf.mxu3 }
 0x86a   : > { %v1268_v45 = vpop.xlane.xlu1 %1267 }
 0x86b   : > { %v1269_v46 = vsub.f32 %v1264_v42, %v1268_v45 }
 0x86d   : > { %v1270_v47 = vmul.f32 1.442695, %v1269_v46  ;;  %v1240_v46 = vld [vmem:[%s2505_s13 + $0x4] sm:$0xf] }
 0x86f   : > { %1976 = vpow2.f32 %v1270_v47  ;;  %v1360_v47 = vsel %vm846_vm2, %v1240_v46, 0 }
 0x870   : > { %1369 = vmatpush.bf16.msra.mxu3 %v1360_v47 }
 0x875   : > { %v1977_v48 = vpop.eup %1976 }
 0x876   : > { %v1272_v49 = vsel %vm1265_vm7, %v1977_v48, 0.0 }
 0x877   : > { %1273 = vadd.xlane.f32.xlu1 %v1272_v49 }
 0x890   : > { %1302 = vrot.lane.b32.xlu1 %v2374_v34, %s2548_s0 }
 0x898   : > { %1470 = vrot.lane.b32.xlu1 %v1243_v38, %s2547_s27 }
 0x8ea   : > { %v1274_v52 = vpop.xlane.xlu1 %1273 }
 0x8eb   : > { %1978 = vrcp.f32 %v1274_v52 }
 0x8f1   : > { %v1979_v53 = vpop.eup %1978 }
 0x8f2   : > { %v1276_v54 = vmul.f32 %v1979_v53, %v1977_v48  ;;  %v1241_v48 = vld [vmem:[%s2505_s13 + $0x8] sm:$0xf] }
 0x8f3   : > { %v1454_v49 = vsel %vm846_vm2, %v1241_v48, 0 }
 0x8f4   : > { %v1277_v56 = vpack.c.bf16 %v1276_v54, %v1276_v54  ;;  %1463 = vmatpush.bf16.msrb.mxu3 %v1454_v49  ;;  %v1953_v49 = vld [vmem:[%s2512_s20] ss:$0 sm:$0xff] }
 0x8f6   : > { %1850 = vmatmul.msk.bf16.vlgmr.msra.gmra.mxu2 %vm1265_vm7, %v1277_v56 }
 0x8f7   : > { %1487 = vmatpush.bf16.xpose.msra.mxu2 %v1478_v57 }
 0x902   : > { %v1303_v60 = vpop.permute.xlu1 %1302 }
 0x903   : > { %v1308_v61 = vsel %vm807_vm1, %v1303_v60, 0  ;;  %v1242_v60 = vld [vmem:[%s2505_s13 + $0xc] sm:$0xf] }
 0x904   : > { %1317 = vmatpush.bf16.xpose.msra.mxu0 %v1308_v61  ;;  %v1530_v61 = vsel %vm846_vm2, %v1242_v60, 0 }
 0x90a   : > { %v1471_v6 = vpop.permute.xlu1 %1470 }
 0x90b   : > { %1851 = vmatmul.msk.bf16.vlgmr.msra.gmra.mxu0 %vm807_vm1, %v1301_v58 }
 0x90c   : > { %1411 = vmatpush.bf16.xpose.msrb.mxu0 %v1402_v62 }
 0x91b   : > { %1855 = vmatmul.msk.bf16.vlgmr.msrb.gmra.mxu0 %vm807_vm1, %v1395_v63 }
 0x979   : > { %v1294_v0 = vpop.f32.mrf.mxu2 }
 0x97a   : > { %v1298_v1 = vpack.c.bf16 %v1294_v0, %v1294_v0 }
 0x97c   : > { %1854 = vmatmul.msk.bf16.vlgmr.msrb.gmra.mxu2 %vm807_vm1, %v1298_v1 }
 0x981   : > { %v1296_v3 = vpop.f32.mrf.mxu2 }
 0x988   : > { %v1319_v4 = vpop.f32.mrf.mxu0 }
 0x989   : > { %v1323_v5 = vmul.f32 0.35355338, %v1319_v4 }
 0x98b   : > { %v1324_v8 = vsel %vm1265_vm7, %v1323_v5, -inf }
 0x98c   : > { %1325 = vmax.xlane.f32.xlu2 %v1324_v8  ;;  %1858 = vmatmul.msk.bf16.vlgmr.msra.gmra.mxu2 %vm807_vm1, %v1471_v6 }
 0x990   : > { %v1321_v9 = vpop.f32.mrf.mxu0 }
 0x998   : > { %v1413_v10 = vpop.f32.mrf.mxu0 }
 0x999   : > { %v1417_v11 = vmul.f32 0.35355338, %v1413_v10 }
 0x99b   : > { %v1418_v12 = vsel %vm1265_vm7, %v1417_v11, -inf }
 0x99c   : > { %1419 = vmax.xlane.f32.xlu1 %v1418_v12 }
 0x9a0   : > { %v1415_v13 = vpop.f32.mrf.mxu0 }
 0x9b5   : > { %1336 = vrot.lane.b32.xlu1 %v2374_v34, %s2550_s26 }
 0x9ff   : > { %v2411_v14 = vpop.f32.mrf.mxu2  ;;  %v1326_v15 = vpop.xlane.xlu2 %1325 }
 0xa00   : > { %v1327_v16 = vsub.f32 %v1323_v5, %v1326_v15 }
 0xa02   : > { %v1328_v17 = vmul.f32 1.442695, %v1327_v16 }
 0xa04   : > { %1980 = vpow2.f32 %v1328_v17 }
 0xa07   : > { %v1392_v18 = vpop.f32.mrf.mxu2 }
 0xa0a   : > { %v1981_v19 = vpop.eup %1980 }
 0xa0b   : > { %v1330_v20 = vsel %vm1265_vm7, %v1981_v19, 0.0 }
 0xa0c   : > { %1331 = vadd.xlane.f32.xlu2 %v1330_v20 }
 0xa0f   : > { %v1420_v21 = vpop.xlane.xlu1 %1419  ;;  %v1489_v23 = vpop.f32.mrf.mxu2 }
 0xa10   : > { %v1421_v24 = vsub.f32 %v1417_v11, %v1420_v21  ;;  %v1493_v25 = vmul.f32 0.35355338, %v1489_v23  ;;  %v1949_v11 = vld [vmem:[%s2506_s14] ss:$0 sm:$0xff]  ;;  %v1897_v21 = vld [vmem:[%s2509_s17 + $0x8] sm:$0xff]  ;;  %v1901_v23 = vld [vmem:[%s2511_s19 + $0x18] sm:$0xff] }
 0xa11   : > { %1667 = vmatpush.bf16.msrb.mxu2 %v1901_v23 }
 0xa12   : > { %v1422_v26 = vmul.f32 1.442695, %v1421_v24  ;;  %v1494_v27 = vsel %vm1265_vm7, %v1493_v25, -inf }
 0xa13   : > { %1495 = vmax.xlane.f32.xlu0 %v1494_v27 }
 0xa14   : > { %1982 = vpow2.f32 %v1422_v26  ;;  %v1900_v26 = vld [vmem:[%s2511_s19 + $0x10] sm:$0xff] }
 0xa15   : > { %1668 = vmatpush.bf16.msrb.mxu2 %v1900_v26 }
 0xa17   : > { %v1491_v22 = vpop.f32.mrf.mxu2 }
 0xa1a   : > { %v1983_v29 = vpop.eup %1982 }
 0xa1b   : > { %v1424_v30 = vsel %vm1265_vm7, %v1983_v29, 0.0 }
 0xa1c   : > { %1425 = vadd.xlane.f32.xlu2 %v1424_v30 }
 0xa27   : > { %v1337_v31 = vpop.permute.xlu1 %1336 }
 0xa28   : > { %1349 = vmatpush.bf16.msra.mxu1 %v1337_v31 }
 0xa34   : > { %1430 = vrot.lane.b32.xlu2 %v2374_v34, %s2551_s6  ;;  %s755_s6 = scalar_lea.vmem %s2515_s23, %s2553_s25 }
 0xa7f   : > { %v1332_v32 = vpop.xlane.xlu2 %1331 }
 0xa80   : > { %1984 = vrcp.f32 %v1332_v32 }
 0xa86   : > { %v1985_v33 = vpop.eup %1984  ;;  %v1496_v35 = vpop.xlane.xlu0 %1495 }
 0xa87   : > { %v1334_v36 = vmul.f32 %v1985_v33, %v1981_v19  ;;  %v1497_v37 = vsub.f32 %v1493_v25, %v1496_v35  ;;  %v1950_v35 = vld [vmem:[%s2507_s15] ss:$0 sm:$0xff] }
 0xa89   : > { %v1335_v7 = vpack.c.bf16 %v1334_v36, %v1334_v36  ;;  %v1498_v38 = vmul.f32 1.442695, %v1497_v37  ;;  %v1951_v37 = vld [vmem:[%s2508_s16] ss:$0 sm:$0xff] }
 0xa8b   : > { %1986 = vpow2.f32 %v1498_v38  ;;  %1852 = vmatmul.msk.bf16.vlgmr.msra.gmra.mxu1 %vm1265_vm7, %v1335_v7 }
 0xa8f   : > { %v1426_v39 = vpop.xlane.xlu2 %1425 }
 0xa90   : > { %1988 = vrcp.f32 %v1426_v39 }
 0xa91   : > { %v1987_v40 = vpop.eup %1986 }
 0xa92   : > { %v1500_v41 = vsel %vm1265_vm7, %v1987_v40, 0.0 }
 0xa93   : > { %1501 = vadd.xlane.f32.xlu0 %v1500_v41  ;;  %v1899_v41 = vld [vmem:[%s2511_s19 + $0x8] sm:$0xff] }
 0xa94   : > { %1669 = vmatpush.bf16.msrb.mxu2 %v1899_v41 }
 0xa96   : > { %v1989_v42 = vpop.eup %1988 }
 0xa97   : > { %v1428_v43 = vmul.f32 %v1989_v42, %v1983_v29  ;;  %v1431_v44 = vpop.permute.xlu2 %1430  ;;  %v1898_v42 = vld [vmem:[%s2511_s19] sm:$0xff] }
 0xa98   : > { %1443 = vmatpush.bf16.msrb.mxu1 %v1431_v44  ;;  %1670 = vmatpush.bf16.msrb.mxu2 %v1898_v42 }
 0xa99   : > { %v1429_v45 = vpack.c.bf16 %v1428_v43, %v1428_v43  ;;  %v1952_v43 = vld [vmem:[%s2510_s18] ss:$0 sm:$0xff] }
 0xa9b   : > { %1856 = vmatmul.msk.bf16.vlgmr.msrb.gmra.mxu1 %vm1265_vm7, %v1429_v45 }
 0xa9c   : > { %1539 = vmatpush.bf16.msra.mxu1 %v1530_v61 }
 0xaa7   : > { %1506 = vrot.lane.b32.xlu0 %v2374_v34, %s2552_s1 }
 0xb06   : > { %v1502_v52 = vpop.xlane.xlu0 %1501 }
 0xb07   : > { %1990 = vrcp.f32 %v1502_v52 }
 0xb08   : > { %v1351_v50 = vpop.f32.mrf.mxu1 }
 0xb09   : > { %v1355_v51 = vpack.c.bf16 %v1351_v50, %v1351_v50 }
 0xb0b   : > { %1853 = vmatmul.msk.bf16.vlgmr.msra.gmra.mxu3 %vm807_vm1, %v1355_v51 }
 0xb0c   : > { %1614 = vmatpush.bf16.msra.mxu3 %v1897_v21 }
 0xb0d   : > { %v1991_v53 = vpop.eup %1990 }
 0xb0e   : > { %v1504_v54 = vmul.f32 %v1991_v53, %v1987_v40 }
 0xb10   : > { %v1353_v34 = vpop.f32.mrf.mxu1  ;;  %v1505_v58 = vpack.c.bf16 %v1504_v54, %v1504_v54 }
 0xb18   : > { %v1445_v55 = vpop.f32.mrf.mxu1 }
 0xb19   : > { %v1449_v56 = vpack.c.bf16 %v1445_v55, %v1445_v55  ;;  %v1507_v57 = vpop.permute.xlu0 %1506 }
 0xb1a   : > { %1519 = vmatpush.bf16.msra.mxu0 %v1507_v57 }
 0xb1b   : > { %1857 = vmatmul.msk.bf16.vlgmr.msrb.gmra.mxu3 %vm807_vm1, %v1449_v56 }
 0xb1d   : > { %1859 = vmatmul.msk.bf16.vlgmr.msra.gmra.mxu0 %vm1265_vm7, %v1505_v58 }
 0xb20   : > { %v1447_v59 = vpop.f32.mrf.mxu1 }
 0xb8e   : > { %v1371_v62 = vpop.f32.mrf.mxu3 }
 0xb8f   : > { %v1391_v3 = vadd.f32 %v2411_v14, %v1371_v62 }
 0xb96   : > { %v1373_v63 = vpop.f32.mrf.mxu3 }
 0xb9a   : > { %v1521_v0 = vpop.f32.mrf.mxu0 }
 0xb9b   : > { %v1525_v1 = vpack.c.bf16 %v1521_v0, %v1521_v0 }
 0xb9d   : > { %1860 = vmatmul.msk.bf16.vlgmr.msra.gmra.mxu1 %vm807_vm1, %v1525_v1 }
 0xb9e   : > { %v1465_v4 = vpop.f32.mrf.mxu3 }
 0xb9f   : > { %v1469_v5 = vadd.f32 %v1465_v4, %v1391_v3 }
 0xba2   : > { %v1523_v6 = vpop.f32.mrf.mxu0 }
 0xba6   : > { %v1467_v8 = vpop.f32.mrf.mxu3 }
 0xba7   : > { %v1955_v8 = vld [vmem:[#allocation4] ss:$0 sm:$0xff] }
 0xc1a   : > { %v1541_v9 = vpop.f32.mrf.mxu1 }
 0xc1b   : > { %v1545_v10 = vadd.f32 %v1541_v9, %v1469_v5  ;;  %v1954_v5 = vld [vmem:[#allocation2] ss:$0 sm:$0xff] }
 0xc1d   : > { %v1546_v12 = vadd.f32 %v1545_v10, %v2366_v28  ;;  %v1896_v28 = vld [vmem:[%s2509_s17] sm:$0xff] }
 0xc1e   : > { %1615 = vmatpush.bf16.msra.mxu3 %v1896_v28 }
 0xc1f   : > { %v1551_v13 = vadd.f32 %v1949_v11, %v1546_v12 }
 0xc21   : > { %v1554_v15 = vsel %vm782_vm0, %v1551_v13, 0.0 }
 0xc22   : > { %1555 = vadd.xlane.f32.xlu1 %v1554_v15  ;;  %v1543_v16 = vpop.f32.mrf.mxu1 }
 0xc95   : > { %v1556_v14 = vpop.xlane.xlu1 %1555 }
 0xc96   : > { %v1557_v17 = vmul.f32 %v1556_v14, %v2341_v2 }
 0xc98   : > { %v1558_v18 = vsub.f32 %v1551_v13, %v1557_v17 }
 0xc9a   : > { %v1559_v19 = vmul.f32 %v1558_v18, %v1558_v18 }
 0xc9c   : > { %v1560_v20 = vsel %vm782_vm0, %v1559_v19, 0.0 }
 0xc9d   : > { %1561 = vadd.xlane.f32.xlu0 %v1560_v20 }
 0xd10   : > { %v1562_v24 = vpop.xlane.xlu0 %1561 }
 0xd11   : > { %v1563_v25 = vmul.f32 %v1562_v24, %v2341_v2 }
 0xd13   : > { %v1564_v27 = vadd.f32 1e-05, %v1563_v25 }
 0xd15   : > { %1992 = vrsqrt.f32 %v1564_v27  ;;  %vm1571_vm9 = vweird.f32 %v1564_v27 }
 0xd1b   : > { %v1993_v22 = vpop.eup %1992 }
 0xd1c   : > { %v1566_v29 = vmul.f32 %v1993_v22, %v1564_v27  ;;  %vm1572_vm8 = vweird.f32 %v1993_v22 }
 0xd1d   : > { %vm1573_vm10 = vmor %vm1571_vm9, %vm1572_vm8 }
 0xd1e   : > { %v1567_v30 = vmul.f32 %v1993_v22, %v1566_v29 }
 0xd20   : > { %v1568_v31 = vmul.f32 0.5, %v1567_v30 }
 0xd22   : > { %v1569_v32 = vsub.f32 1.5, %v1568_v31 }
 0xd24   : > { %v1570_v33 = vmul.f32 %v1993_v22, %v1569_v32 }
 0xd26   : > { %v1574_v36 = vsel %vm1573_vm10, %v1993_v22, %v1570_v33 }
 0xd27   : > { %v1575_v7 = vmul.f32 %v1574_v36, %v1558_v18 }
 0xd29   : > { %v1579_v38 = vmul.f32 %v1950_v35, %v1575_v7 }
 0xd2b   : > { %v1583_v39 = vadd.f32 %v1951_v37, %v1579_v38 }
 0xd2d   : > { %v1584_v40 = vpack.c.bf16 %v1583_v39, %v1583_v39 }
 0xd2f   : > { %1869 = vmatmul.msk.bf16.vlgmr.msra.gmra.mxu3 %vm782_vm0, %v1584_v40 }
 0xdb2   : > { %v1617_v44 = vpop.f32.mrf.mxu3 }
 0xdb3   : > { %v1618_v45 = vadd.f32 %v1952_v43, %v1617_v44 }
 0xdb5   : > { %v1621_v46 = vmax.f32 %v1618_v45, 0.0 }
 0xdb7   : > { %v1622_v47 = vpack.c.bf16 %v1621_v46, %v1621_v46 }
 0xdb9   : > { %1886 = vmatmul.msk.bf16.vlgmr.msrb.gmra.mxu2 %vm1659_vm11, %v1622_v47 }
 0xdba   : > { %v1619_v48 = vpop.f32.mrf.mxu3 }
 0xe3c   : > { %v1672_v50 = vpop.f32.mrf.mxu2 }
 0xe3d   : > { %v1673_v51 = vadd.f32 %v1953_v49, %v1672_v50 }
 0xe3f   : > { %v1676_v52 = vadd.f32 %v1673_v51, %v1583_v39 }
 0xe41   : > { %v1679_v34 = vsel %vm782_vm0, %v1676_v52, 0.0 }
 0xe42   : > { %1680 = vadd.xlane.f32.xlu2 %v1679_v34 }
 0xe44   : > { %v1674_v53 = vpop.f32.mrf.mxu2 }
 0xeb5   : > { %v1681_v54 = vpop.xlane.xlu2 %1680 }
 0xeb6   : > { %v1682_v55 = vmul.f32 %v1681_v54, %v2341_v2 }
 0xeb8   : > { %v1683_v56 = vsub.f32 %v1676_v52, %v1682_v55 }
 0xeba   : > { %v1684_v57 = vmul.f32 %v1683_v56, %v1683_v56 }
 0xebc   : > { %v1685_v58 = vsel %vm782_vm0, %v1684_v57, 0.0 }
 0xebd   : > { %1686 = vadd.xlane.f32.xlu1 %v1685_v58 }
 0xf30   : > { %v1687_v59 = vpop.xlane.xlu1 %1686 }
 0xf31   : > { %v1688_v60 = vmul.f32 %v1687_v59, %v2341_v2 }
 0xf33   : > { %v1689_v61 = vadd.f32 1e-05, %v1688_v60 }
 0xf35   : > { %1994 = vrsqrt.f32 %v1689_v61  ;;  %vm1696_vm13 = vweird.f32 %v1689_v61 }
 0xf3b   : > { %v1995_v62 = vpop.eup %1994 }
 0xf3c   : > { %v1691_v63 = vmul.f32 %v1995_v62, %v1689_v61  ;;  %vm1697_vm12 = vweird.f32 %v1995_v62 }
 0xf3d   : > { %vm1698_vm14 = vmor %vm1696_vm13, %vm1697_vm12 }
 0xf3e   : > { %v1692_v0 = vmul.f32 %v1995_v62, %v1691_v63 }
 0xf40   : > { %v1693_v1 = vmul.f32 0.5, %v1692_v0 }
 0xf42   : > { %v1694_v3 = vsub.f32 1.5, %v1693_v1 }
 0xf44   : > { %v1695_v4 = vmul.f32 %v1995_v62, %v1694_v3 }
 0xf46   : > { %v1699_v6 = vsel %vm1698_vm14, %v1995_v62, %v1695_v4 }
 0xf47   : > { %v1700_v9 = vmul.f32 %v1699_v6, %v1683_v56 }
 0xf49   : > { %v1704_v10 = vmul.f32 %v1954_v5, %v1700_v9 }
 0xf4b   : > { %v1708_v2 = vadd.f32 %v1955_v8, %v1704_v10 }
 0xf4d   : > { %1709 = vst.msk [vmem:[%s755_s6] sm:$0xff] %vm782_vm0, %v1708_v2 }
 0xf4e PF: > { %s35_s4 = sadd.s32 1, %s2070_s4  }
 0xf4f   : > { %p32_p7 = scmp.ge.s32.totalorder %s35_s4, 4  }
 0xf51   :  { %34 = sbr.rel (!%p32_p7) target bundleno = 11 (0xb), region = 154 }
 0xf56   :  { %1729 = vsyncpa [#allocation3], 1 }
 0xf57   :  { %1731 = vsyncpa [#allocation3 + $0x1], 1 }
 0xf58   :  { %1732 = vsyncpa [#allocation5], 1 }

</bundles_post_ra>
